<compile_context>
chip_gen: v7x
topology: tpu7x:2x2x1
jax: 0.10.0
libtpu: 0.0.40
codegen_flags: <defaults>
</compile_context>

<pallas_src>
import math

import jax
import jax.numpy as jnp
from jax import lax
from jax.experimental import pallas as pl
from jax.experimental.pallas import tpu as pltpu

EMBED_DIM = 32
NUM_HEADS = 4
HEAD_DIM = EMBED_DIM // NUM_HEADS
NUM_JET_FEATS = 4
NUM_TRK_FEATS = 6
LN_EPS = 1e-5
NUM_ENCODERS = 4          # s1_jet_trk, s1_cross, s2_jet_trk, s2_cross (the live ones)
MAX_BATCH_TILE = 512      # batch rows per grid step (multiple of 8); sweep per TPU generation


# ---------------------------------------------------------------------------
# helpers (traced inside the kernel)
# ---------------------------------------------------------------------------
def _gelu(x):
    # exact (erf-based) GELU, matching torch.nn.functional.gelu default
    return 0.5 * x * (1.0 + lax.erf(x * (1.0 / math.sqrt(2.0))))


def _ln_raw(x):
    mu = jnp.mean(x, axis=-1, keepdims=True)
    var = jnp.mean((x - mu) ** 2, axis=-1, keepdims=True)
    return (x - mu) * lax.rsqrt(var + LN_EPS)


# ---------------------------------------------------------------------------
# fused forward kernel (one batch tile of TB rows per grid step)
# ---------------------------------------------------------------------------
def _make_kernel(TB, S_jt, S_trk):
    E, H, HD = EMBED_DIM, NUM_HEADS, HEAD_DIM

    def _attention(qp, kp, vp, Lq, Lk, wo, bo):
        # qp: (TB*Lq, E), kp/vp: (TB*Lk, E); scale already folded into the Q projection.
        q3 = qp.reshape(TB, Lq, E)
        k3 = kp.reshape(TB, Lk, E)
        v3 = vp.reshape(TB, Lk, E)
        heads = []
        for h in range(H):                                       # statically unrolled
            sl = slice(h * HD, (h + 1) * HD)
            s = jnp.einsum('bqd,bkd->bqk', q3[:, :, sl], k3[:, :, sl],
                           preferred_element_type=jnp.float32)
            s = s - jnp.max(s, axis=-1, keepdims=True)
            p = jnp.exp(s)
            p = p / jnp.sum(p, axis=-1, keepdims=True)
            heads.append(jnp.einsum('bqk,bkd->bqd', p, v3[:, :, sl],
                                    preferred_element_type=jnp.float32))
        # assemble all head contexts -> single K=32 out-projection matmul
        ctx = jnp.concatenate(heads, axis=-1).reshape(TB * Lq, E)
        return jnp.dot(ctx, wo, preferred_element_type=jnp.float32) + bo

    def kernel(jets_ref, jt_ref, tk_ref,
               wj_ref, bj_ref, wjt_ref, bjt_ref, wtk_ref, btk_ref,
               enc_wqkv_ref, enc_bqkv_ref, enc_woo_ref, enc_vec_ref,
               cls_w_ref, cls_b_ref,
               jet_out_ref, jt_out_ref, trk_out_ref):
        enc_wqkv = enc_wqkv_ref[...]    # (4E, 3E): per encoder [Wq'(scaled) | Wk' | Wv'], (in,out)
        enc_bqkv = enc_bqkv_ref[...]    # (4, 3E)
        enc_woo = enc_woo_ref[...]      # (8E, E): per encoder [Wo ; Wout], (in,out)
        enc_vec = enc_vec_ref[...]      # (24, E): per encoder [gQ, bQ, b_o, gPost, bPost, b_out]

        def encoder(e, q2, kv2, Lq, Lk, same):
            wqkv = enc_wqkv[e * E:(e + 1) * E]
            bqkv = enc_bqkv[e:e + 1]
            wo = enc_woo[2 * e * E:(2 * e + 1) * E]
            wout = enc_woo[(2 * e + 1) * E:(2 * e + 2) * E]
            vec = enc_vec[6 * e:6 * (e + 1)]
            gQ, bQ = vec[0:1], vec[1:2]
            b_o = vec[2:3]
            gP, bP = vec[3:4], vec[4:5]
            b_out = vec[5:6]

            qn_raw = _ln_raw(q2)
            Qn = qn_raw * gQ + bQ                         # needed for the residual
            if same:
                # self-encoder: K/V pre-norm stats equal Q's; one (N,32)@(32,96) matmul.
                qkv = jnp.dot(qn_raw, wqkv, preferred_element_type=jnp.float32) + bqkv
                qp = qkv[:, 0:E]
                kp = qkv[:, E:2 * E]
                vp = qkv[:, 2 * E:3 * E]
            else:
                kvn_raw = _ln_raw(kv2)
                qp = jnp.dot(qn_raw, wqkv[:, 0:E],
                             preferred_element_type=jnp.float32) + bqkv[:, 0:E]
                kv = jnp.dot(kvn_raw, wqkv[:, E:3 * E],
                             preferred_element_type=jnp.float32) + bqkv[:, E:3 * E]
                kp = kv[:, 0:E]
                vp = kv[:, E:2 * E]

            ctx2 = _attention(qp, kp, vp, Lq, Lk, wo, b_o)
            context = _ln_raw(ctx2) * gP + bP             # post_norm
            latent = Qn + context
            tmp = _gelu(jnp.dot(latent, wout, preferred_element_type=jnp.float32) + b_out)
            return latent + tmp

        # --- initializers + GELU ------------------------------------------------
        jet_emb = _gelu(jnp.dot(jets_ref[...], wj_ref[...],
                                preferred_element_type=jnp.float32) + bj_ref[...])   # (TB, E)
        jt_emb = _gelu(jnp.dot(jt_ref[...], wjt_ref[...],
                               preferred_element_type=jnp.float32) + bjt_ref[...])   # (TB*S, E)
        tk_emb = _gelu(jnp.dot(tk_ref[...], wtk_ref[...],
                               preferred_element_type=jnp.float32) + btk_ref[...])   # (TB*St, E)

        # --- stack1 ---------------------------------------------------------------
        jt_emb = encoder(0, jt_emb, jt_emb, S_jt, S_jt, True)      # jet_trk self-encoder
        jet_emb = encoder(1, jet_emb, jt_emb, 1, S_jt, False)      # jet <- jet_trk cross
        # --- stack2 ---------------------------------------------------------------
        jt_emb = encoder(2, jt_emb, jt_emb, S_jt, S_jt, True)
        jet_emb = encoder(3, jet_emb, jt_emb, 1, S_jt, False)

        # --- classification heads ---------------------------------------------------
        cls_w = cls_w_ref[...]          # (E, 3) columns: [jet, jet_trk, trk]
        cls_b = cls_b_ref[...]          # (1, 3)
        jet_out_ref[...] = jax.nn.sigmoid(
            jnp.dot(jet_emb, cls_w[:, 0:1], preferred_element_type=jnp.float32) + cls_b[:, 0:1])
        jt_out_ref[...] = jax.nn.sigmoid(
            jnp.dot(jt_emb, cls_w[:, 1:2], preferred_element_type=jnp.float32) + cls_b[:, 1:2])
        trk_out_ref[...] = jax.nn.sigmoid(
            jnp.dot(tk_emb, cls_w[:, 2:3], preferred_element_type=jnp.float32) + cls_b[:, 2:3])
        # TODO(synk): width-1 classifier outputs use masked stores; negligible here, revisit if B grows huge.

    return kernel


# ---------------------------------------------------------------------------
# full forward pass (mirrors Model.forward) — one batch-tiled pallas_call
# ---------------------------------------------------------------------------
def model_forward(params, jets, jet_trks, trks):
    B = jets.shape[0]
    S_jt = jet_trks.shape[1]
    S_trk = trks.shape[1]
    E, H, HD = EMBED_DIM, NUM_HEADS, HEAD_DIM

    TB = B if B <= MAX_BATCH_TILE else MAX_BATCH_TILE    # multiple of 8 when tiled
    grid = (pl.cdiv(B, TB),)

    jt_flat = jet_trks.reshape(B * S_jt, NUM_TRK_FEATS)
    tk_flat = trks.reshape(B * S_trk, NUM_TRK_FEATS)

    def row_spec(rows, cols):
        return pl.BlockSpec((rows, cols), lambda i: (i, 0))

    def const_spec(arr):
        return pl.BlockSpec(arr.shape, lambda i: (0, 0))   # weights: DMA once, VMEM-resident

    in_specs = [
        row_spec(TB, NUM_JET_FEATS),
        row_spec(TB * S_jt, NUM_TRK_FEATS),
        row_spec(TB * S_trk, NUM_TRK_FEATS),
        const_spec(params["jet_init_w"]), const_spec(params["jet_init_b"]),
        const_spec(params["jet_trk_init_w"]), const_spec(params["jet_trk_init_b"]),
        const_spec(params["trk_init_w"]), const_spec(params["trk_init_b"]),
        const_spec(params["enc_wqkv"]), const_spec(params["enc_bqkv"]),
        const_spec(params["enc_woo"]), const_spec(params["enc_vec"]),
        const_spec(params["cls_w"]), const_spec(params["cls_b"]),
    ]
    out_specs = (
        row_spec(TB, 1),
        row_spec(TB * S_jt, 1),
        row_spec(TB * S_trk, 1),
    )
    out_shape = (
        jax.ShapeDtypeStruct((B, 1), jnp.float32),
        jax.ShapeDtypeStruct((B * S_jt, 1), jnp.float32),
        jax.ShapeDtypeStruct((B * S_trk, 1), jnp.float32),
    )

    # Rough, advisory cost estimate for XLA's scheduler.
    n_jt, n_tk = B * S_jt, B * S_trk
    enc_tok = 2 * (n_jt + B)                                # query tokens over the 4 encoders
    flops = (
        2 * B * NUM_JET_FEATS * E + 2 * (n_jt + n_tk) * NUM_TRK_FEATS * E
        + enc_tok * (2 * E * 3 * E + 2 * E * E + 2 * E * E)           # qkv + out_proj + ffn
        + 2 * n_jt * (2 * E * 2 * E)                                   # cross-encoder K|V proj
        + 2 * (4 * B * H * S_jt * S_jt * HD) + 2 * (4 * B * H * S_jt * HD)   # attention
        + 2 * (B + n_jt + n_tk) * E                                    # classifier heads
    )
    transcendentals = (B + n_jt + n_tk) * (E + 1) + 2 * enc_tok * E + 2 * B * H * S_jt * (S_jt + 1)
    bytes_accessed = 4 * (B * NUM_JET_FEATS + (n_jt + n_tk) * NUM_TRK_FEATS + B + n_jt + n_tk
                          + sum(int(v.size) for v in params.values()))
    cost = pl.CostEstimate(flops=int(flops), transcendentals=int(transcendentals),
                           bytes_accessed=int(bytes_accessed))

    fwd = pl.pallas_call(
        _make_kernel(TB, S_jt, S_trk),
        grid_spec=pltpu.PrefetchScalarGridSpec(
            num_scalar_prefetch=0,
            grid=grid,
            in_specs=in_specs,
            out_specs=out_specs,
        ),
        out_shape=out_shape,
        compiler_params=pltpu.CompilerParams(
            dimension_semantics=("parallel",),      # megacore sharding on v7x
        ),
        cost_estimate=cost,
    )

    jet_cls, jt_cls, tk_cls = fwd(
        jets, jt_flat, tk_flat,
        params["jet_init_w"], params["jet_init_b"],
        params["jet_trk_init_w"], params["jet_trk_init_b"],
        params["trk_init_w"], params["trk_init_b"],
        params["enc_wqkv"], params["enc_bqkv"], params["enc_woo"], params["enc_vec"],
        params["cls_w"], params["cls_b"])

    return jet_cls, jt_cls.reshape(B, S_jt, 1), tk_cls.reshape(B, S_trk, 1)


# ---------------------------------------------------------------------------
# deterministic parameter construction
#   - all linear weights pre-transposed to (in, out) layout (kernel does x @ W)
#   - pre-norm gamma/beta and the 1/sqrt(head_dim) score scale folded into the
#     merged Q|K|V projection weights/biases
# ---------------------------------------------------------------------------
def _init_linear_t(key, in_dim, out_dim, std=0.05):
    kw, kb = jax.random.split(key)
    w = jax.random.normal(kw, (in_dim, out_dim), jnp.float32) * std     # (in, out)
    b = jax.random.normal(kb, (1, out_dim), jnp.float32) * std
    return w, b


def _init_encoder(key):
    E, HD = EMBED_DIM, HEAD_DIM
    std = 0.05
    ks = jax.random.split(key, 6)
    in_proj_w = jax.random.normal(ks[0], (3 * E, E), jnp.float32) * std   # torch (out, in)
    in_proj_b = jax.random.normal(ks[1], (3 * E,), jnp.float32) * std
    out_proj_w = jax.random.normal(ks[2], (E, E), jnp.float32) * std
    out_proj_b = jax.random.normal(ks[3], (E,), jnp.float32) * std
    out_w = jax.random.normal(ks[4], (E, E), jnp.float32) * std
    out_b = jax.random.normal(ks[5], (E,), jnp.float32) * std

    ones, zeros = jnp.ones((E,), jnp.float32), jnp.zeros((E,), jnp.float32)
    gQ, bQ = ones, zeros            # pre_norm_Q affine (fresh LayerNorm init)
    gK, bK = ones, zeros            # pre_norm_K
    gV, bV = ones, zeros            # pre_norm_V
    gP, bP = ones, zeros            # post_norm

    Wq, Wk, Wv = in_proj_w[0:E], in_proj_w[E:2 * E], in_proj_w[2 * E:3 * E]
    bq, bk, bv = in_proj_b[0:E], in_proj_b[E:2 * E], in_proj_b[2 * E:3 * E]

    scale = 1.0 / math.sqrt(HD)
    # fold: (LN_raw * g + b) @ W.T + bias  ==  LN_raw @ (diag(g) @ W.T) + (b @ W.T + bias)
    wq_f = (gQ[:, None] * Wq.T) * scale
    bq_f = (bQ @ Wq.T + bq) * scale
    wk_f = gK[:, None] * Wk.T
    bk_f = bK @ Wk.T + bk
    wv_f = gV[:, None] * Wv.T
    bv_f = bV @ Wv.T + bv

    w_qkv = jnp.concatenate([wq_f, wk_f, wv_f], axis=1)            # (E, 3E)
    b_qkv = jnp.concatenate([bq_f, bk_f, bv_f])[None, :]           # (1, 3E)
    w_oo = jnp.concatenate([out_proj_w.T, out_w.T], axis=0)        # (2E, E): [Wo ; Wout]
    vec = jnp.stack([gQ, bQ, out_proj_b, gP, bP, out_b], axis=0)   # (6, E)
    return w_qkv, b_qkv, w_oo, vec


def init_model_params(key):
    ks = jax.random.split(key, 10)
    p = {}
    p["jet_init_w"], p["jet_init_b"] = _init_linear_t(ks[0], NUM_JET_FEATS, EMBED_DIM)
    p["jet_trk_init_w"], p["jet_trk_init_b"] = _init_linear_t(ks[1], NUM_TRK_FEATS, EMBED_DIM)
    p["trk_init_w"], p["trk_init_b"] = _init_linear_t(ks[2], NUM_TRK_FEATS, EMBED_DIM)

    # Only jet_trk_encoder / jet_trk_cross_encoder of each Stack are live in the forward.
    encs = [_init_encoder(ks[3 + i]) for i in range(NUM_ENCODERS)]
    p["enc_wqkv"] = jnp.concatenate([e[0] for e in encs], axis=0)   # (4E, 3E)
    p["enc_bqkv"] = jnp.concatenate([e[1] for e in encs], axis=0)   # (4, 3E)
    p["enc_woo"] = jnp.concatenate([e[2] for e in encs], axis=0)    # (8E, E)
    p["enc_vec"] = jnp.concatenate([e[3] for e in encs], axis=0)    # (24, E)

    # classification heads stacked lane-wise: columns [jet, jet_trk, trk]
    cls_ws, cls_bs = [], []
    for i in range(3):
        w, b = _init_linear_t(ks[7 + i], EMBED_DIM, 1)
        cls_ws.append(w)
        cls_bs.append(b)
    p["cls_w"] = jnp.concatenate(cls_ws, axis=1)                    # (E, 3)
    p["cls_b"] = jnp.concatenate(cls_bs, axis=1)                    # (1, 3)
    return p


# ---------------------------------------------------------------------------
if __name__ == "__main__":
    key = jax.random.PRNGKey(0)
    k_param, k_jet, k_jt, k_trk = jax.random.split(key, 4)

    B, S = 2, 8
    jets = jax.random.normal(k_jet, (B, NUM_JET_FEATS), jnp.float32)
    jet_trks = jax.random.normal(k_jt, (B, S, NUM_TRK_FEATS), jnp.float32)
    trks = jax.random.normal(k_trk, (B, S, NUM_TRK_FEATS), jnp.float32)

    params = init_model_params(k_param)

    fwd = jax.jit(model_forward)
    out, jet_trk_out, trk_out = fwd(params, jets, jet_trks, trks)
    jax.block_until_ready((out, jet_trk_out, trk_out))

    assert out.shape == (B, 1)
    assert jet_trk_out.shape == (B, S, 1)
    assert trk_out.shape == (B, S, 1)
    assert bool(jnp.all(jnp.isfinite(out)))
    assert bool(jnp.all(jnp.isfinite(jet_trk_out)))
    assert bool(jnp.all(jnp.isfinite(trk_out)))
    print("KERNEL_OK")
</pallas_src>

<mosaic_0001>
module attributes {stable_mosaic.version = 11 : i64} {
  func.func @kernel(%arg0: i32, %arg1: memref<2x4xf32, #tpu.memory_space<vmem>>, %arg2: memref<16x6xf32, #tpu.memory_space<vmem>>, %arg3: memref<16x6xf32, #tpu.memory_space<vmem>>, %arg4: memref<4x32xf32, #tpu.memory_space<vmem>>, %arg5: memref<1x32xf32, #tpu.memory_space<vmem>>, %arg6: memref<6x32xf32, #tpu.memory_space<vmem>>, %arg7: memref<1x32xf32, #tpu.memory_space<vmem>>, %arg8: memref<6x32xf32, #tpu.memory_space<vmem>>, %arg9: memref<1x32xf32, #tpu.memory_space<vmem>>, %arg10: memref<128x96xf32, #tpu.memory_space<vmem>>, %arg11: memref<4x96xf32, #tpu.memory_space<vmem>>, %arg12: memref<256x32xf32, #tpu.memory_space<vmem>>, %arg13: memref<24x32xf32, #tpu.memory_space<vmem>>, %arg14: memref<32x3xf32, #tpu.memory_space<vmem>>, %arg15: memref<1x3xf32, #tpu.memory_space<vmem>>, %arg16: memref<2x1xf32, #tpu.memory_space<vmem>>, %arg17: memref<16x1xf32, #tpu.memory_space<vmem>>, %arg18: memref<16x1xf32, #tpu.memory_space<vmem>>) attributes {dimension_semantics = [#tpu.dimension_semantics<parallel>], iteration_bounds = array<i64: 1>, scalar_prefetch = 0 : i64, scratch_operands = 0 : i64, tpu.core_type = #tpu.core_type<tc>, window_params = [{transform_indices = @transform_0, window_bounds = array<i64: 2, 4>}, {transform_indices = @transform_1, window_bounds = array<i64: 16, 6>}, {transform_indices = @transform_2, window_bounds = array<i64: 16, 6>}, {pipeline_mode = #tpu.pipeline_mode<synchronous>, transform_indices = @transform_3, window_bounds = array<i64: 4, 32>}, {pipeline_mode = #tpu.pipeline_mode<synchronous>, transform_indices = @transform_4, window_bounds = array<i64: 1, 32>}, {pipeline_mode = #tpu.pipeline_mode<synchronous>, transform_indices = @transform_5, window_bounds = array<i64: 6, 32>}, {pipeline_mode = #tpu.pipeline_mode<synchronous>, transform_indices = @transform_6, window_bounds = array<i64: 1, 32>}, {pipeline_mode = #tpu.pipeline_mode<synchronous>, transform_indices = @transform_7, window_bounds = array<i64: 6, 32>}, {pipeline_mode = #tpu.pipeline_mode<synchronous>, transform_indices = @transform_8, window_bounds = array<i64: 1, 32>}, {pipeline_mode = #tpu.pipeline_mode<synchronous>, transform_indices = @transform_9, window_bounds = array<i64: 128, 96>}, {pipeline_mode = #tpu.pipeline_mode<synchronous>, transform_indices = @transform_10, window_bounds = array<i64: 4, 96>}, {pipeline_mode = #tpu.pipeline_mode<synchronous>, transform_indices = @transform_11, window_bounds = array<i64: 256, 32>}, {pipeline_mode = #tpu.pipeline_mode<synchronous>, transform_indices = @transform_12, window_bounds = array<i64: 24, 32>}, {pipeline_mode = #tpu.pipeline_mode<synchronous>, transform_indices = @transform_13, window_bounds = array<i64: 32, 3>}, {pipeline_mode = #tpu.pipeline_mode<synchronous>, transform_indices = @transform_14, window_bounds = array<i64: 1, 3>}, {transform_indices = @transform_15, window_bounds = array<i64: 2, 1>}, {transform_indices = @transform_16, window_bounds = array<i64: 16, 1>}, {transform_indices = @transform_17, window_bounds = array<i64: 16, 1>}]} {
    %c0 = arith.constant 0 : index
    %c0_0 = arith.constant 0 : index
    %0 = vector.load %arg10[%c0, %c0_0] : memref<128x96xf32, #tpu.memory_space<vmem>>, vector<128x96xf32>
    %c0_1 = arith.constant 0 : index
    %c0_2 = arith.constant 0 : index
    %1 = vector.load %arg11[%c0_1, %c0_2] : memref<4x96xf32, #tpu.memory_space<vmem>>, vector<4x96xf32>
    %c0_3 = arith.constant 0 : index
    %c0_4 = arith.constant 0 : index
    %2 = vector.load %arg12[%c0_3, %c0_4] : memref<256x32xf32, #tpu.memory_space<vmem>>, vector<256x32xf32>
    %c0_5 = arith.constant 0 : index
    %c0_6 = arith.constant 0 : index
    %3 = vector.load %arg13[%c0_5, %c0_6] : memref<24x32xf32, #tpu.memory_space<vmem>>, vector<24x32xf32>
    %c0_7 = arith.constant 0 : index
    %c0_8 = arith.constant 0 : index
    %4 = vector.load %arg1[%c0_7, %c0_8] : memref<2x4xf32, #tpu.memory_space<vmem>>, vector<2x4xf32>
    %c0_9 = arith.constant 0 : index
    %c0_10 = arith.constant 0 : index
    %5 = vector.load %arg4[%c0_9, %c0_10] : memref<4x32xf32, #tpu.memory_space<vmem>>, vector<4x32xf32>
    %cst = arith.constant dense<0.000000e+00> : vector<2x32xf32>
    %6 = tpu.matmul %4, %5, %cst {dimension_numbers = #tpu.dot_dimension_numbers<[1], [0], [0], [1], [0, 0, 1, 1], [], []>} : vector<2x4xf32>, vector<4x32xf32>, vector<2x32xf32> -> vector<2x32xf32>
    %c0_11 = arith.constant 0 : index
    %c0_12 = arith.constant 0 : index
    %7 = vector.load %arg5[%c0_11, %c0_12] : memref<1x32xf32, #tpu.memory_space<vmem>>, vector<1x32xf32>
    %8 = vector.broadcast %7 : vector<1x32xf32> to vector<2x32xf32>
    %9 = arith.addf %6, %8 : vector<2x32xf32>
    %cst_13 = arith.constant 5.000000e-01 : f32
    %10 = vector.broadcast %cst_13 : f32 to vector<2x32xf32>
    %11 = arith.mulf %10, %9 : vector<2x32xf32>
    %cst_14 = arith.constant 0.707106769 : f32
    %12 = vector.broadcast %cst_14 : f32 to vector<2x32xf32>
    %13 = arith.mulf %9, %12 : vector<2x32xf32>
    %14 = math.erf %13 : vector<2x32xf32>
    %cst_15 = arith.constant 1.000000e+00 : f32
    %15 = vector.broadcast %cst_15 : f32 to vector<2x32xf32>
    %16 = arith.addf %15, %14 : vector<2x32xf32>
    %17 = arith.mulf %11, %16 : vector<2x32xf32>
    %c0_16 = arith.constant 0 : index
    %c0_17 = arith.constant 0 : index
    %18 = vector.load %arg2[%c0_16, %c0_17] : memref<16x6xf32, #tpu.memory_space<vmem>>, vector<16x6xf32>
    %c0_18 = arith.constant 0 : index
    %c0_19 = arith.constant 0 : index
    %19 = vector.load %arg6[%c0_18, %c0_19] : memref<6x32xf32, #tpu.memory_space<vmem>>, vector<6x32xf32>
    %cst_20 = arith.constant dense<0.000000e+00> : vector<16x32xf32>
    %20 = tpu.matmul %18, %19, %cst_20 {dimension_numbers = #tpu.dot_dimension_numbers<[1], [0], [0], [1], [0, 0, 1, 1], [], []>} : vector<16x6xf32>, vector<6x32xf32>, vector<16x32xf32> -> vector<16x32xf32>
    %c0_21 = arith.constant 0 : index
    %c0_22 = arith.constant 0 : index
    %21 = vector.load %arg7[%c0_21, %c0_22] : memref<1x32xf32, #tpu.memory_space<vmem>>, vector<1x32xf32>
    %22 = vector.broadcast %21 : vector<1x32xf32> to vector<16x32xf32>
    %23 = arith.addf %20, %22 : vector<16x32xf32>
    %cst_23 = arith.constant 5.000000e-01 : f32
    %24 = vector.broadcast %cst_23 : f32 to vector<16x32xf32>
    %25 = arith.mulf %24, %23 : vector<16x32xf32>
    %cst_24 = arith.constant 0.707106769 : f32
    %26 = vector.broadcast %cst_24 : f32 to vector<16x32xf32>
    %27 = arith.mulf %23, %26 : vector<16x32xf32>
    %28 = math.erf %27 : vector<16x32xf32>
    %cst_25 = arith.constant 1.000000e+00 : f32
    %29 = vector.broadcast %cst_25 : f32 to vector<16x32xf32>
    %30 = arith.addf %29, %28 : vector<16x32xf32>
    %31 = arith.mulf %25, %30 : vector<16x32xf32>
    %c0_26 = arith.constant 0 : index
    %c0_27 = arith.constant 0 : index
    %32 = vector.load %arg3[%c0_26, %c0_27] : memref<16x6xf32, #tpu.memory_space<vmem>>, vector<16x6xf32>
    %c0_28 = arith.constant 0 : index
    %c0_29 = arith.constant 0 : index
    %33 = vector.load %arg8[%c0_28, %c0_29] : memref<6x32xf32, #tpu.memory_space<vmem>>, vector<6x32xf32>
    %cst_30 = arith.constant dense<0.000000e+00> : vector<16x32xf32>
    %34 = tpu.matmul %32, %33, %cst_30 {dimension_numbers = #tpu.dot_dimension_numbers<[1], [0], [0], [1], [0, 0, 1, 1], [], []>} : vector<16x6xf32>, vector<6x32xf32>, vector<16x32xf32> -> vector<16x32xf32>
    %c0_31 = arith.constant 0 : index
    %c0_32 = arith.constant 0 : index
    %35 = vector.load %arg9[%c0_31, %c0_32] : memref<1x32xf32, #tpu.memory_space<vmem>>, vector<1x32xf32>
    %36 = vector.broadcast %35 : vector<1x32xf32> to vector<16x32xf32>
    %37 = arith.addf %34, %36 : vector<16x32xf32>
    %cst_33 = arith.constant 5.000000e-01 : f32
    %38 = vector.broadcast %cst_33 : f32 to vector<16x32xf32>
    %39 = arith.mulf %38, %37 : vector<16x32xf32>
    %cst_34 = arith.constant 0.707106769 : f32
    %40 = vector.broadcast %cst_34 : f32 to vector<16x32xf32>
    %41 = arith.mulf %37, %40 : vector<16x32xf32>
    %42 = math.erf %41 : vector<16x32xf32>
    %cst_35 = arith.constant 1.000000e+00 : f32
    %43 = vector.broadcast %cst_35 : f32 to vector<16x32xf32>
    %44 = arith.addf %43, %42 : vector<16x32xf32>
    %45 = arith.mulf %39, %44 : vector<16x32xf32>
    %46 = vector.extract_strided_slice %0 {offsets = [0, 0], sizes = [32, 96], strides = [1, 1]} : vector<128x96xf32> to vector<32x96xf32>
    %47 = vector.extract_strided_slice %1 {offsets = [0, 0], sizes = [1, 96], strides = [1, 1]} : vector<4x96xf32> to vector<1x96xf32>
    %48 = vector.extract_strided_slice %2 {offsets = [0, 0], sizes = [32, 32], strides = [1, 1]} : vector<256x32xf32> to vector<32x32xf32>
    %49 = vector.extract_strided_slice %2 {offsets = [32, 0], sizes = [32, 32], strides = [1, 1]} : vector<256x32xf32> to vector<32x32xf32>
    %50 = vector.extract_strided_slice %3 {offsets = [0, 0], sizes = [6, 32], strides = [1, 1]} : vector<24x32xf32> to vector<6x32xf32>
    %51 = vector.extract_strided_slice %50 {offsets = [0, 0], sizes = [1, 32], strides = [1, 1]} : vector<6x32xf32> to vector<1x32xf32>
    %52 = vector.extract_strided_slice %50 {offsets = [1, 0], sizes = [1, 32], strides = [1, 1]} : vector<6x32xf32> to vector<1x32xf32>
    %53 = vector.extract_strided_slice %50 {offsets = [2, 0], sizes = [1, 32], strides = [1, 1]} : vector<6x32xf32> to vector<1x32xf32>
    %54 = vector.extract_strided_slice %50 {offsets = [3, 0], sizes = [1, 32], strides = [1, 1]} : vector<6x32xf32> to vector<1x32xf32>
    %55 = vector.extract_strided_slice %50 {offsets = [4, 0], sizes = [1, 32], strides = [1, 1]} : vector<6x32xf32> to vector<1x32xf32>
    %56 = vector.extract_strided_slice %50 {offsets = [5, 0], sizes = [1, 32], strides = [1, 1]} : vector<6x32xf32> to vector<1x32xf32>
    %cst_36 = arith.constant dense<0.000000e+00> : vector<16xf32>
    %57 = vector.multi_reduction <add>, %31, %cst_36 [1] : vector<16x32xf32> to vector<16xf32>
    %58 = vector.shape_cast %57 : vector<16xf32> to vector<16x1xf32>
    %cst_37 = arith.constant 3.200000e+01 : f32
    %59 = vector.broadcast %cst_37 : f32 to vector<16x1xf32>
    %60 = arith.divf %58, %59 : vector<16x1xf32>
    %61 = vector.broadcast %60 : vector<16x1xf32> to vector<16x32xf32>
    %62 = arith.subf %31, %61 : vector<16x32xf32>
    %63 = arith.mulf %62, %62 : vector<16x32xf32>
    %cst_38 = arith.constant dense<0.000000e+00> : vector<16xf32>
    %64 = vector.multi_reduction <add>, %63, %cst_38 [1] : vector<16x32xf32> to vector<16xf32>
    %65 = vector.shape_cast %64 : vector<16xf32> to vector<16x1xf32>
    %cst_39 = arith.constant 3.200000e+01 : f32
    %66 = vector.broadcast %cst_39 : f32 to vector<16x1xf32>
    %67 = arith.divf %65, %66 : vector<16x1xf32>
    %68 = vector.broadcast %60 : vector<16x1xf32> to vector<16x32xf32>
    %69 = arith.subf %31, %68 : vector<16x32xf32>
    %cst_40 = arith.constant 9.99999974E-6 : f32
    %70 = vector.broadcast %cst_40 : f32 to vector<16x1xf32>
    %71 = arith.addf %67, %70 : vector<16x1xf32>
    %72 = math.rsqrt %71 : vector<16x1xf32>
    %73 = vector.broadcast %72 : vector<16x1xf32> to vector<16x32xf32>
    %74 = arith.mulf %69, %73 : vector<16x32xf32>
    %75 = vector.broadcast %51 : vector<1x32xf32> to vector<16x32xf32>
    %76 = arith.mulf %74, %75 : vector<16x32xf32>
    %77 = vector.broadcast %52 : vector<1x32xf32> to vector<16x32xf32>
    %78 = arith.addf %76, %77 : vector<16x32xf32>
    %cst_41 = arith.constant dense<0.000000e+00> : vector<16x96xf32>
    %79 = tpu.matmul %74, %46, %cst_41 {dimension_numbers = #tpu.dot_dimension_numbers<[1], [0], [0], [1], [0, 0, 1, 1], [], []>} : vector<16x32xf32>, vector<32x96xf32>, vector<16x96xf32> -> vector<16x96xf32>
    %80 = vector.broadcast %47 : vector<1x96xf32> to vector<16x96xf32>
    %81 = arith.addf %79, %80 : vector<16x96xf32>
    %82 = vector.extract_strided_slice %81 {offsets = [0, 0], sizes = [16, 32], strides = [1, 1]} : vector<16x96xf32> to vector<16x32xf32>
    %83 = vector.extract_strided_slice %81 {offsets = [0, 32], sizes = [16, 32], strides = [1, 1]} : vector<16x96xf32> to vector<16x32xf32>
    %84 = vector.extract_strided_slice %81 {offsets = [0, 64], sizes = [16, 32], strides = [1, 1]} : vector<16x96xf32> to vector<16x32xf32>
    %85 = vector.shape_cast %82 : vector<16x32xf32> to vector<2x8x32xf32>
    %86 = vector.shape_cast %83 : vector<16x32xf32> to vector<2x8x32xf32>
    %87 = vector.shape_cast %84 : vector<16x32xf32> to vector<2x8x32xf32>
    %88 = vector.extract_strided_slice %85 {offsets = [0, 0, 0], sizes = [2, 8, 8], strides = [1, 1, 1]} : vector<2x8x32xf32> to vector<2x8x8xf32>
    %89 = vector.extract_strided_slice %86 {offsets = [0, 0, 0], sizes = [2, 8, 8], strides = [1, 1, 1]} : vector<2x8x32xf32> to vector<2x8x8xf32>
    "tpu.trace_start"() <{level = 10 : i32, message = "bqd,bkd->bqk"}> : () -> ()
    %cst_42 = arith.constant dense<0.000000e+00> : vector<2x8x8xf32>
    %90 = tpu.matmul %88, %89, %cst_42 {dimension_numbers = #tpu.dot_dimension_numbers<[2], [2], [1], [1], [0, 0, 0, 1, 1, 1], [0], [0]>} : vector<2x8x8xf32>, vector<2x8x8xf32>, vector<2x8x8xf32> -> vector<2x8x8xf32>
    "tpu.trace_stop"() : () -> ()
    %cst_43 = arith.constant dense<0xFF800000> : vector<2x8xf32>
    %91 = vector.multi_reduction <maximumf>, %90, %cst_43 [2] : vector<2x8x8xf32> to vector<2x8xf32>
    %92 = vector.shape_cast %91 : vector<2x8xf32> to vector<2x8x1xf32>
    %93 = vector.broadcast %92 : vector<2x8x1xf32> to vector<2x8x8xf32>
    %94 = arith.subf %90, %93 : vector<2x8x8xf32>
    %95 = math.exp %94 : vector<2x8x8xf32>
    %cst_44 = arith.constant dense<0.000000e+00> : vector<2x8xf32>
    %96 = vector.multi_reduction <add>, %95, %cst_44 [2] : vector<2x8x8xf32> to vector<2x8xf32>
    %97 = vector.shape_cast %96 : vector<2x8xf32> to vector<2x8x1xf32>
    %98 = vector.broadcast %97 : vector<2x8x1xf32> to vector<2x8x8xf32>
    %99 = arith.divf %95, %98 : vector<2x8x8xf32>
    %100 = vector.extract_strided_slice %87 {offsets = [0, 0, 0], sizes = [2, 8, 8], strides = [1, 1, 1]} : vector<2x8x32xf32> to vector<2x8x8xf32>
    "tpu.trace_start"() <{level = 10 : i32, message = "bqk,bkd->bqd"}> : () -> ()
    %cst_45 = arith.constant dense<0.000000e+00> : vector<2x8x8xf32>
    %101 = tpu.matmul %99, %100, %cst_45 {dimension_numbers = #tpu.dot_dimension_numbers<[2], [1], [1], [2], [0, 0, 0, 1, 1, 2], [0], [0]>} : vector<2x8x8xf32>, vector<2x8x8xf32>, vector<2x8x8xf32> -> vector<2x8x8xf32>
    "tpu.trace_stop"() : () -> ()
    %102 = vector.extract_strided_slice %85 {offsets = [0, 0, 8], sizes = [2, 8, 8], strides = [1, 1, 1]} : vector<2x8x32xf32> to vector<2x8x8xf32>
    %103 = vector.extract_strided_slice %86 {offsets = [0, 0, 8], sizes = [2, 8, 8], strides = [1, 1, 1]} : vector<2x8x32xf32> to vector<2x8x8xf32>
    "tpu.trace_start"() <{level = 10 : i32, message = "bqd,bkd->bqk"}> : () -> ()
    %cst_46 = arith.constant dense<0.000000e+00> : vector<2x8x8xf32>
    %104 = tpu.matmul %102, %103, %cst_46 {dimension_numbers = #tpu.dot_dimension_numbers<[2], [2], [1], [1], [0, 0, 0, 1, 1, 1], [0], [0]>} : vector<2x8x8xf32>, vector<2x8x8xf32>, vector<2x8x8xf32> -> vector<2x8x8xf32>
    "tpu.trace_stop"() : () -> ()
    %cst_47 = arith.constant dense<0xFF800000> : vector<2x8xf32>
    %105 = vector.multi_reduction <maximumf>, %104, %cst_47 [2] : vector<2x8x8xf32> to vector<2x8xf32>
    %106 = vector.shape_cast %105 : vector<2x8xf32> to vector<2x8x1xf32>
    %107 = vector.broadcast %106 : vector<2x8x1xf32> to vector<2x8x8xf32>
    %108 = arith.subf %104, %107 : vector<2x8x8xf32>
    %109 = math.exp %108 : vector<2x8x8xf32>
    %cst_48 = arith.constant dense<0.000000e+00> : vector<2x8xf32>
    %110 = vector.multi_reduction <add>, %109, %cst_48 [2] : vector<2x8x8xf32> to vector<2x8xf32>
    %111 = vector.shape_cast %110 : vector<2x8xf32> to vector<2x8x1xf32>
    %112 = vector.broadcast %111 : vector<2x8x1xf32> to vector<2x8x8xf32>
    %113 = arith.divf %109, %112 : vector<2x8x8xf32>
    %114 = vector.extract_strided_slice %87 {offsets = [0, 0, 8], sizes = [2, 8, 8], strides = [1, 1, 1]} : vector<2x8x32xf32> to vector<2x8x8xf32>
    "tpu.trace_start"() <{level = 10 : i32, message = "bqk,bkd->bqd"}> : () -> ()
    %cst_49 = arith.constant dense<0.000000e+00> : vector<2x8x8xf32>
    %115 = tpu.matmul %113, %114, %cst_49 {dimension_numbers = #tpu.dot_dimension_numbers<[2], [1], [1], [2], [0, 0, 0, 1, 1, 2], [0], [0]>} : vector<2x8x8xf32>, vector<2x8x8xf32>, vector<2x8x8xf32> -> vector<2x8x8xf32>
    "tpu.trace_stop"() : () -> ()
    %116 = vector.extract_strided_slice %85 {offsets = [0, 0, 16], sizes = [2, 8, 8], strides = [1, 1, 1]} : vector<2x8x32xf32> to vector<2x8x8xf32>
    %117 = vector.extract_strided_slice %86 {offsets = [0, 0, 16], sizes = [2, 8, 8], strides = [1, 1, 1]} : vector<2x8x32xf32> to vector<2x8x8xf32>
    "tpu.trace_start"() <{level = 10 : i32, message = "bqd,bkd->bqk"}> : () -> ()
    %cst_50 = arith.constant dense<0.000000e+00> : vector<2x8x8xf32>
    %118 = tpu.matmul %116, %117, %cst_50 {dimension_numbers = #tpu.dot_dimension_numbers<[2], [2], [1], [1], [0, 0, 0, 1, 1, 1], [0], [0]>} : vector<2x8x8xf32>, vector<2x8x8xf32>, vector<2x8x8xf32> -> vector<2x8x8xf32>
    "tpu.trace_stop"() : () -> ()
    %cst_51 = arith.constant dense<0xFF800000> : vector<2x8xf32>
    %119 = vector.multi_reduction <maximumf>, %118, %cst_51 [2] : vector<2x8x8xf32> to vector<2x8xf32>
    %120 = vector.shape_cast %119 : vector<2x8xf32> to vector<2x8x1xf32>
    %121 = vector.broadcast %120 : vector<2x8x1xf32> to vector<2x8x8xf32>
    %122 = arith.subf %118, %121 : vector<2x8x8xf32>
    %123 = math.exp %122 : vector<2x8x8xf32>
    %cst_52 = arith.constant dense<0.000000e+00> : vector<2x8xf32>
    %124 = vector.multi_reduction <add>, %123, %cst_52 [2] : vector<2x8x8xf32> to vector<2x8xf32>
    %125 = vector.shape_cast %124 : vector<2x8xf32> to vector<2x8x1xf32>
    %126 = vector.broadcast %125 : vector<2x8x1xf32> to vector<2x8x8xf32>
    %127 = arith.divf %123, %126 : vector<2x8x8xf32>
    %128 = vector.extract_strided_slice %87 {offsets = [0, 0, 16], sizes = [2, 8, 8], strides = [1, 1, 1]} : vector<2x8x32xf32> to vector<2x8x8xf32>
    "tpu.trace_start"() <{level = 10 : i32, message = "bqk,bkd->bqd"}> : () -> ()
    %cst_53 = arith.constant dense<0.000000e+00> : vector<2x8x8xf32>
    %129 = tpu.matmul %127, %128, %cst_53 {dimension_numbers = #tpu.dot_dimension_numbers<[2], [1], [1], [2], [0, 0, 0, 1, 1, 2], [0], [0]>} : vector<2x8x8xf32>, vector<2x8x8xf32>, vector<2x8x8xf32> -> vector<2x8x8xf32>
    "tpu.trace_stop"() : () -> ()
    %130 = vector.extract_strided_slice %85 {offsets = [0, 0, 24], sizes = [2, 8, 8], strides = [1, 1, 1]} : vector<2x8x32xf32> to vector<2x8x8xf32>
    %131 = vector.extract_strided_slice %86 {offsets = [0, 0, 24], sizes = [2, 8, 8], strides = [1, 1, 1]} : vector<2x8x32xf32> to vector<2x8x8xf32>
    "tpu.trace_start"() <{level = 10 : i32, message = "bqd,bkd->bqk"}> : () -> ()
    %cst_54 = arith.constant dense<0.000000e+00> : vector<2x8x8xf32>
    %132 = tpu.matmul %130, %131, %cst_54 {dimension_numbers = #tpu.dot_dimension_numbers<[2], [2], [1], [1], [0, 0, 0, 1, 1, 1], [0], [0]>} : vector<2x8x8xf32>, vector<2x8x8xf32>, vector<2x8x8xf32> -> vector<2x8x8xf32>
    "tpu.trace_stop"() : () -> ()
    %cst_55 = arith.constant dense<0xFF800000> : vector<2x8xf32>
    %133 = vector.multi_reduction <maximumf>, %132, %cst_55 [2] : vector<2x8x8xf32> to vector<2x8xf32>
    %134 = vector.shape_cast %133 : vector<2x8xf32> to vector<2x8x1xf32>
    %135 = vector.broadcast %134 : vector<2x8x1xf32> to vector<2x8x8xf32>
    %136 = arith.subf %132, %135 : vector<2x8x8xf32>
    %137 = math.exp %136 : vector<2x8x8xf32>
    %cst_56 = arith.constant dense<0.000000e+00> : vector<2x8xf32>
    %138 = vector.multi_reduction <add>, %137, %cst_56 [2] : vector<2x8x8xf32> to vector<2x8xf32>
    %139 = vector.shape_cast %138 : vector<2x8xf32> to vector<2x8x1xf32>
    %140 = vector.broadcast %139 : vector<2x8x1xf32> to vector<2x8x8xf32>
    %141 = arith.divf %137, %140 : vector<2x8x8xf32>
    %142 = vector.extract_strided_slice %87 {offsets = [0, 0, 24], sizes = [2, 8, 8], strides = [1, 1, 1]} : vector<2x8x32xf32> to vector<2x8x8xf32>
    "tpu.trace_start"() <{level = 10 : i32, message = "bqk,bkd->bqd"}> : () -> ()
    %cst_57 = arith.constant dense<0.000000e+00> : vector<2x8x8xf32>
    %143 = tpu.matmul %141, %142, %cst_57 {dimension_numbers = #tpu.dot_dimension_numbers<[2], [1], [1], [2], [0, 0, 0, 1, 1, 2], [0], [0]>} : vector<2x8x8xf32>, vector<2x8x8xf32>, vector<2x8x8xf32> -> vector<2x8x8xf32>
    "tpu.trace_stop"() : () -> ()
    %144 = tpu.concatenate %101, %115, %129, %143 in 2 : vector<2x8x8xf32>, vector<2x8x8xf32>, vector<2x8x8xf32>, vector<2x8x8xf32> -> vector<2x8x32xf32>
    %145 = vector.shape_cast %144 : vector<2x8x32xf32> to vector<16x32xf32>
    %cst_58 = arith.constant dense<0.000000e+00> : vector<16x32xf32>
    %146 = tpu.matmul %145, %48, %cst_58 {dimension_numbers = #tpu.dot_dimension_numbers<[1], [0], [0], [1], [0, 0, 1, 1], [], []>} : vector<16x32xf32>, vector<32x32xf32>, vector<16x32xf32> -> vector<16x32xf32>
    %147 = vector.broadcast %53 : vector<1x32xf32> to vector<16x32xf32>
    %148 = arith.addf %146, %147 : vector<16x32xf32>
    %cst_59 = arith.constant dense<0.000000e+00> : vector<16xf32>
    %149 = vector.multi_reduction <add>, %148, %cst_59 [1] : vector<16x32xf32> to vector<16xf32>
    %150 = vector.shape_cast %149 : vector<16xf32> to vector<16x1xf32>
    %cst_60 = arith.constant 3.200000e+01 : f32
    %151 = vector.broadcast %cst_60 : f32 to vector<16x1xf32>
    %152 = arith.divf %150, %151 : vector<16x1xf32>
    %153 = vector.broadcast %152 : vector<16x1xf32> to vector<16x32xf32>
    %154 = arith.subf %148, %153 : vector<16x32xf32>
    %155 = arith.mulf %154, %154 : vector<16x32xf32>
    %cst_61 = arith.constant dense<0.000000e+00> : vector<16xf32>
    %156 = vector.multi_reduction <add>, %155, %cst_61 [1] : vector<16x32xf32> to vector<16xf32>
    %157 = vector.shape_cast %156 : vector<16xf32> to vector<16x1xf32>
    %cst_62 = arith.constant 3.200000e+01 : f32
    %158 = vector.broadcast %cst_62 : f32 to vector<16x1xf32>
    %159 = arith.divf %157, %158 : vector<16x1xf32>
    %160 = vector.broadcast %152 : vector<16x1xf32> to vector<16x32xf32>
    %161 = arith.subf %148, %160 : vector<16x32xf32>
    %cst_63 = arith.constant 9.99999974E-6 : f32
    %162 = vector.broadcast %cst_63 : f32 to vector<16x1xf32>
    %163 = arith.addf %159, %162 : vector<16x1xf32>
    %164 = math.rsqrt %163 : vector<16x1xf32>
    %165 = vector.broadcast %164 : vector<16x1xf32> to vector<16x32xf32>
    %166 = arith.mulf %161, %165 : vector<16x32xf32>
    %167 = vector.broadcast %54 : vector<1x32xf32> to vector<16x32xf32>
    %168 = arith.mulf %166, %167 : vector<16x32xf32>
    %169 = vector.broadcast %55 : vector<1x32xf32> to vector<16x32xf32>
    %170 = arith.addf %168, %169 : vector<16x32xf32>
    %171 = arith.addf %78, %170 : vector<16x32xf32>
    %cst_64 = arith.constant dense<0.000000e+00> : vector<16x32xf32>
    %172 = tpu.matmul %171, %49, %cst_64 {dimension_numbers = #tpu.dot_dimension_numbers<[1], [0], [0], [1], [0, 0, 1, 1], [], []>} : vector<16x32xf32>, vector<32x32xf32>, vector<16x32xf32> -> vector<16x32xf32>
    %173 = vector.broadcast %56 : vector<1x32xf32> to vector<16x32xf32>
    %174 = arith.addf %172, %173 : vector<16x32xf32>
    %cst_65 = arith.constant 5.000000e-01 : f32
    %175 = vector.broadcast %cst_65 : f32 to vector<16x32xf32>
    %176 = arith.mulf %175, %174 : vector<16x32xf32>
    %cst_66 = arith.constant 0.707106769 : f32
    %177 = vector.broadcast %cst_66 : f32 to vector<16x32xf32>
    %178 = arith.mulf %174, %177 : vector<16x32xf32>
    %179 = math.erf %178 : vector<16x32xf32>
    %cst_67 = arith.constant 1.000000e+00 : f32
    %180 = vector.broadcast %cst_67 : f32 to vector<16x32xf32>
    %181 = arith.addf %180, %179 : vector<16x32xf32>
    %182 = arith.mulf %176, %181 : vector<16x32xf32>
    %183 = arith.addf %171, %182 : vector<16x32xf32>
    %184 = vector.extract_strided_slice %0 {offsets = [32, 0], sizes = [32, 96], strides = [1, 1]} : vector<128x96xf32> to vector<32x96xf32>
    %185 = vector.extract_strided_slice %1 {offsets = [1, 0], sizes = [1, 96], strides = [1, 1]} : vector<4x96xf32> to vector<1x96xf32>
    %186 = vector.extract_strided_slice %2 {offsets = [64, 0], sizes = [32, 32], strides = [1, 1]} : vector<256x32xf32> to vector<32x32xf32>
    %187 = vector.extract_strided_slice %2 {offsets = [96, 0], sizes = [32, 32], strides = [1, 1]} : vector<256x32xf32> to vector<32x32xf32>
    %188 = vector.extract_strided_slice %3 {offsets = [6, 0], sizes = [6, 32], strides = [1, 1]} : vector<24x32xf32> to vector<6x32xf32>
    %189 = vector.extract_strided_slice %188 {offsets = [0, 0], sizes = [1, 32], strides = [1, 1]} : vector<6x32xf32> to vector<1x32xf32>
    %190 = vector.extract_strided_slice %188 {offsets = [1, 0], sizes = [1, 32], strides = [1, 1]} : vector<6x32xf32> to vector<1x32xf32>
    %191 = vector.extract_strided_slice %188 {offsets = [2, 0], sizes = [1, 32], strides = [1, 1]} : vector<6x32xf32> to vector<1x32xf32>
    %192 = vector.extract_strided_slice %188 {offsets = [3, 0], sizes = [1, 32], strides = [1, 1]} : vector<6x32xf32> to vector<1x32xf32>
    %193 = vector.extract_strided_slice %188 {offsets = [4, 0], sizes = [1, 32], strides = [1, 1]} : vector<6x32xf32> to vector<1x32xf32>
    %194 = vector.extract_strided_slice %188 {offsets = [5, 0], sizes = [1, 32], strides = [1, 1]} : vector<6x32xf32> to vector<1x32xf32>
    %cst_68 = arith.constant dense<0.000000e+00> : vector<2xf32>
    %195 = vector.multi_reduction <add>, %17, %cst_68 [1] : vector<2x32xf32> to vector<2xf32>
    %196 = vector.shape_cast %195 : vector<2xf32> to vector<2x1xf32>
    %cst_69 = arith.constant 3.200000e+01 : f32
    %197 = vector.broadcast %cst_69 : f32 to vector<2x1xf32>
    %198 = arith.divf %196, %197 : vector<2x1xf32>
    %199 = vector.broadcast %198 : vector<2x1xf32> to vector<2x32xf32>
    %200 = arith.subf %17, %199 : vector<2x32xf32>
    %201 = arith.mulf %200, %200 : vector<2x32xf32>
    %cst_70 = arith.constant dense<0.000000e+00> : vector<2xf32>
    %202 = vector.multi_reduction <add>, %201, %cst_70 [1] : vector<2x32xf32> to vector<2xf32>
    %203 = vector.shape_cast %202 : vector<2xf32> to vector<2x1xf32>
    %cst_71 = arith.constant 3.200000e+01 : f32
    %204 = vector.broadcast %cst_71 : f32 to vector<2x1xf32>
    %205 = arith.divf %203, %204 : vector<2x1xf32>
    %206 = vector.broadcast %198 : vector<2x1xf32> to vector<2x32xf32>
    %207 = arith.subf %17, %206 : vector<2x32xf32>
    %cst_72 = arith.constant 9.99999974E-6 : f32
    %208 = vector.broadcast %cst_72 : f32 to vector<2x1xf32>
    %209 = arith.addf %205, %208 : vector<2x1xf32>
    %210 = math.rsqrt %209 : vector<2x1xf32>
    %211 = vector.broadcast %210 : vector<2x1xf32> to vector<2x32xf32>
    %212 = arith.mulf %207, %211 : vector<2x32xf32>
    %213 = vector.broadcast %189 : vector<1x32xf32> to vector<2x32xf32>
    %214 = arith.mulf %212, %213 : vector<2x32xf32>
    %215 = vector.broadcast %190 : vector<1x32xf32> to vector<2x32xf32>
    %216 = arith.addf %214, %215 : vector<2x32xf32>
    %cst_73 = arith.constant dense<0.000000e+00> : vector<16xf32>
    %217 = vector.multi_reduction <add>, %183, %cst_73 [1] : vector<16x32xf32> to vector<16xf32>
    %218 = vector.shape_cast %217 : vector<16xf32> to vector<16x1xf32>
    %cst_74 = arith.constant 3.200000e+01 : f32
    %219 = vector.broadcast %cst_74 : f32 to vector<16x1xf32>
    %220 = arith.divf %218, %219 : vector<16x1xf32>
    %221 = vector.broadcast %220 : vector<16x1xf32> to vector<16x32xf32>
    %222 = arith.subf %183, %221 : vector<16x32xf32>
    %223 = arith.mulf %222, %222 : vector<16x32xf32>
    %cst_75 = arith.constant dense<0.000000e+00> : vector<16xf32>
    %224 = vector.multi_reduction <add>, %223, %cst_75 [1] : vector<16x32xf32> to vector<16xf32>
    %225 = vector.shape_cast %224 : vector<16xf32> to vector<16x1xf32>
    %cst_76 = arith.constant 3.200000e+01 : f32
    %226 = vector.broadcast %cst_76 : f32 to vector<16x1xf32>
    %227 = arith.divf %225, %226 : vector<16x1xf32>
    %228 = vector.broadcast %220 : vector<16x1xf32> to vector<16x32xf32>
    %229 = arith.subf %183, %228 : vector<16x32xf32>
    %cst_77 = arith.constant 9.99999974E-6 : f32
    %230 = vector.broadcast %cst_77 : f32 to vector<16x1xf32>
    %231 = arith.addf %227, %230 : vector<16x1xf32>
    %232 = math.rsqrt %231 : vector<16x1xf32>
    %233 = vector.broadcast %232 : vector<16x1xf32> to vector<16x32xf32>
    %234 = arith.mulf %229, %233 : vector<16x32xf32>
    %235 = vector.extract_strided_slice %184 {offsets = [0, 0], sizes = [32, 32], strides = [1, 1]} : vector<32x96xf32> to vector<32x32xf32>
    %cst_78 = arith.constant dense<0.000000e+00> : vector<2x32xf32>
    %236 = tpu.matmul %212, %235, %cst_78 {dimension_numbers = #tpu.dot_dimension_numbers<[1], [0], [0], [1], [0, 0, 1, 1], [], []>} : vector<2x32xf32>, vector<32x32xf32>, vector<2x32xf32> -> vector<2x32xf32>
    %237 = vector.extract_strided_slice %185 {offsets = [0, 0], sizes = [1, 32], strides = [1, 1]} : vector<1x96xf32> to vector<1x32xf32>
    %238 = vector.broadcast %237 : vector<1x32xf32> to vector<2x32xf32>
    %239 = arith.addf %236, %238 : vector<2x32xf32>
    %240 = vector.extract_strided_slice %184 {offsets = [0, 32], sizes = [32, 64], strides = [1, 1]} : vector<32x96xf32> to vector<32x64xf32>
    %cst_79 = arith.constant dense<0.000000e+00> : vector<16x64xf32>
    %241 = tpu.matmul %234, %240, %cst_79 {dimension_numbers = #tpu.dot_dimension_numbers<[1], [0], [0], [1], [0, 0, 1, 1], [], []>} : vector<16x32xf32>, vector<32x64xf32>, vector<16x64xf32> -> vector<16x64xf32>
    %242 = vector.extract_strided_slice %185 {offsets = [0, 32], sizes = [1, 64], strides = [1, 1]} : vector<1x96xf32> to vector<1x64xf32>
    %243 = vector.broadcast %242 : vector<1x64xf32> to vector<16x64xf32>
    %244 = arith.addf %241, %243 : vector<16x64xf32>
    %245 = vector.extract_strided_slice %244 {offsets = [0, 0], sizes = [16, 32], strides = [1, 1]} : vector<16x64xf32> to vector<16x32xf32>
    %246 = vector.extract_strided_slice %244 {offsets = [0, 32], sizes = [16, 32], strides = [1, 1]} : vector<16x64xf32> to vector<16x32xf32>
    %247 = vector.shape_cast %239 : vector<2x32xf32> to vector<2x1x32xf32>
    %248 = vector.shape_cast %245 : vector<16x32xf32> to vector<2x8x32xf32>
    %249 = vector.shape_cast %246 : vector<16x32xf32> to vector<2x8x32xf32>
    %250 = vector.extract_strided_slice %247 {offsets = [0, 0, 0], sizes = [2, 1, 8], strides = [1, 1, 1]} : vector<2x1x32xf32> to vector<2x1x8xf32>
    %251 = vector.extract_strided_slice %248 {offsets = [0, 0, 0], sizes = [2, 8, 8], strides = [1, 1, 1]} : vector<2x8x32xf32> to vector<2x8x8xf32>
    "tpu.trace_start"() <{level = 10 : i32, message = "bqd,bkd->bqk"}> : () -> ()
    %cst_80 = arith.constant dense<0.000000e+00> : vector<2x1x8xf32>
    %252 = tpu.matmul %250, %251, %cst_80 {dimension_numbers = #tpu.dot_dimension_numbers<[2], [2], [1], [1], [0, 0, 0, 1, 1, 1], [0], [0]>} : vector<2x1x8xf32>, vector<2x8x8xf32>, vector<2x1x8xf32> -> vector<2x1x8xf32>
    "tpu.trace_stop"() : () -> ()
    %cst_81 = arith.constant dense<0xFF800000> : vector<2x1xf32>
    %253 = vector.multi_reduction <maximumf>, %252, %cst_81 [2] : vector<2x1x8xf32> to vector<2x1xf32>
    %254 = vector.shape_cast %253 : vector<2x1xf32> to vector<2x1x1xf32>
    %255 = vector.broadcast %254 : vector<2x1x1xf32> to vector<2x1x8xf32>
    %256 = arith.subf %252, %255 : vector<2x1x8xf32>
    %257 = math.exp %256 : vector<2x1x8xf32>
    %cst_82 = arith.constant dense<0.000000e+00> : vector<2x1xf32>
    %258 = vector.multi_reduction <add>, %257, %cst_82 [2] : vector<2x1x8xf32> to vector<2x1xf32>
    %259 = vector.shape_cast %258 : vector<2x1xf32> to vector<2x1x1xf32>
    %260 = vector.broadcast %259 : vector<2x1x1xf32> to vector<2x1x8xf32>
    %261 = arith.divf %257, %260 : vector<2x1x8xf32>
    %262 = vector.extract_strided_slice %249 {offsets = [0, 0, 0], sizes = [2, 8, 8], strides = [1, 1, 1]} : vector<2x8x32xf32> to vector<2x8x8xf32>
    "tpu.trace_start"() <{level = 10 : i32, message = "bqk,bkd->bqd"}> : () -> ()
    %cst_83 = arith.constant dense<0.000000e+00> : vector<2x1x8xf32>
    %263 = tpu.matmul %261, %262, %cst_83 {dimension_numbers = #tpu.dot_dimension_numbers<[2], [1], [1], [2], [0, 0, 0, 1, 1, 2], [0], [0]>} : vector<2x1x8xf32>, vector<2x8x8xf32>, vector<2x1x8xf32> -> vector<2x1x8xf32>
    "tpu.trace_stop"() : () -> ()
    %264 = vector.extract_strided_slice %247 {offsets = [0, 0, 8], sizes = [2, 1, 8], strides = [1, 1, 1]} : vector<2x1x32xf32> to vector<2x1x8xf32>
    %265 = vector.extract_strided_slice %248 {offsets = [0, 0, 8], sizes = [2, 8, 8], strides = [1, 1, 1]} : vector<2x8x32xf32> to vector<2x8x8xf32>
    "tpu.trace_start"() <{level = 10 : i32, message = "bqd,bkd->bqk"}> : () -> ()
    %cst_84 = arith.constant dense<0.000000e+00> : vector<2x1x8xf32>
    %266 = tpu.matmul %264, %265, %cst_84 {dimension_numbers = #tpu.dot_dimension_numbers<[2], [2], [1], [1], [0, 0, 0, 1, 1, 1], [0], [0]>} : vector<2x1x8xf32>, vector<2x8x8xf32>, vector<2x1x8xf32> -> vector<2x1x8xf32>
    "tpu.trace_stop"() : () -> ()
    %cst_85 = arith.constant dense<0xFF800000> : vector<2x1xf32>
    %267 = vector.multi_reduction <maximumf>, %266, %cst_85 [2] : vector<2x1x8xf32> to vector<2x1xf32>
    %268 = vector.shape_cast %267 : vector<2x1xf32> to vector<2x1x1xf32>
    %269 = vector.broadcast %268 : vector<2x1x1xf32> to vector<2x1x8xf32>
    %270 = arith.subf %266, %269 : vector<2x1x8xf32>
    %271 = math.exp %270 : vector<2x1x8xf32>
    %cst_86 = arith.constant dense<0.000000e+00> : vector<2x1xf32>
    %272 = vector.multi_reduction <add>, %271, %cst_86 [2] : vector<2x1x8xf32> to vector<2x1xf32>
    %273 = vector.shape_cast %272 : vector<2x1xf32> to vector<2x1x1xf32>
    %274 = vector.broadcast %273 : vector<2x1x1xf32> to vector<2x1x8xf32>
    %275 = arith.divf %271, %274 : vector<2x1x8xf32>
    %276 = vector.extract_strided_slice %249 {offsets = [0, 0, 8], sizes = [2, 8, 8], strides = [1, 1, 1]} : vector<2x8x32xf32> to vector<2x8x8xf32>
    "tpu.trace_start"() <{level = 10 : i32, message = "bqk,bkd->bqd"}> : () -> ()
    %cst_87 = arith.constant dense<0.000000e+00> : vector<2x1x8xf32>
    %277 = tpu.matmul %275, %276, %cst_87 {dimension_numbers = #tpu.dot_dimension_numbers<[2], [1], [1], [2], [0, 0, 0, 1, 1, 2], [0], [0]>} : vector<2x1x8xf32>, vector<2x8x8xf32>, vector<2x1x8xf32> -> vector<2x1x8xf32>
    "tpu.trace_stop"() : () -> ()
    %278 = vector.extract_strided_slice %247 {offsets = [0, 0, 16], sizes = [2, 1, 8], strides = [1, 1, 1]} : vector<2x1x32xf32> to vector<2x1x8xf32>
    %279 = vector.extract_strided_slice %248 {offsets = [0, 0, 16], sizes = [2, 8, 8], strides = [1, 1, 1]} : vector<2x8x32xf32> to vector<2x8x8xf32>
    "tpu.trace_start"() <{level = 10 : i32, message = "bqd,bkd->bqk"}> : () -> ()
    %cst_88 = arith.constant dense<0.000000e+00> : vector<2x1x8xf32>
    %280 = tpu.matmul %278, %279, %cst_88 {dimension_numbers = #tpu.dot_dimension_numbers<[2], [2], [1], [1], [0, 0, 0, 1, 1, 1], [0], [0]>} : vector<2x1x8xf32>, vector<2x8x8xf32>, vector<2x1x8xf32> -> vector<2x1x8xf32>
    "tpu.trace_stop"() : () -> ()
    %cst_89 = arith.constant dense<0xFF800000> : vector<2x1xf32>
    %281 = vector.multi_reduction <maximumf>, %280, %cst_89 [2] : vector<2x1x8xf32> to vector<2x1xf32>
    %282 = vector.shape_cast %281 : vector<2x1xf32> to vector<2x1x1xf32>
    %283 = vector.broadcast %282 : vector<2x1x1xf32> to vector<2x1x8xf32>
    %284 = arith.subf %280, %283 : vector<2x1x8xf32>
    %285 = math.exp %284 : vector<2x1x8xf32>
    %cst_90 = arith.constant dense<0.000000e+00> : vector<2x1xf32>
    %286 = vector.multi_reduction <add>, %285, %cst_90 [2] : vector<2x1x8xf32> to vector<2x1xf32>
    %287 = vector.shape_cast %286 : vector<2x1xf32> to vector<2x1x1xf32>
    %288 = vector.broadcast %287 : vector<2x1x1xf32> to vector<2x1x8xf32>
    %289 = arith.divf %285, %288 : vector<2x1x8xf32>
    %290 = vector.extract_strided_slice %249 {offsets = [0, 0, 16], sizes = [2, 8, 8], strides = [1, 1, 1]} : vector<2x8x32xf32> to vector<2x8x8xf32>
    "tpu.trace_start"() <{level = 10 : i32, message = "bqk,bkd->bqd"}> : () -> ()
    %cst_91 = arith.constant dense<0.000000e+00> : vector<2x1x8xf32>
    %291 = tpu.matmul %289, %290, %cst_91 {dimension_numbers = #tpu.dot_dimension_numbers<[2], [1], [1], [2], [0, 0, 0, 1, 1, 2], [0], [0]>} : vector<2x1x8xf32>, vector<2x8x8xf32>, vector<2x1x8xf32> -> vector<2x1x8xf32>
    "tpu.trace_stop"() : () -> ()
    %292 = vector.extract_strided_slice %247 {offsets = [0, 0, 24], sizes = [2, 1, 8], strides = [1, 1, 1]} : vector<2x1x32xf32> to vector<2x1x8xf32>
    %293 = vector.extract_strided_slice %248 {offsets = [0, 0, 24], sizes = [2, 8, 8], strides = [1, 1, 1]} : vector<2x8x32xf32> to vector<2x8x8xf32>
    "tpu.trace_start"() <{level = 10 : i32, message = "bqd,bkd->bqk"}> : () -> ()
    %cst_92 = arith.constant dense<0.000000e+00> : vector<2x1x8xf32>
    %294 = tpu.matmul %292, %293, %cst_92 {dimension_numbers = #tpu.dot_dimension_numbers<[2], [2], [1], [1], [0, 0, 0, 1, 1, 1], [0], [0]>} : vector<2x1x8xf32>, vector<2x8x8xf32>, vector<2x1x8xf32> -> vector<2x1x8xf32>
    "tpu.trace_stop"() : () -> ()
    %cst_93 = arith.constant dense<0xFF800000> : vector<2x1xf32>
    %295 = vector.multi_reduction <maximumf>, %294, %cst_93 [2] : vector<2x1x8xf32> to vector<2x1xf32>
    %296 = vector.shape_cast %295 : vector<2x1xf32> to vector<2x1x1xf32>
    %297 = vector.broadcast %296 : vector<2x1x1xf32> to vector<2x1x8xf32>
    %298 = arith.subf %294, %297 : vector<2x1x8xf32>
    %299 = math.exp %298 : vector<2x1x8xf32>
    %cst_94 = arith.constant dense<0.000000e+00> : vector<2x1xf32>
    %300 = vector.multi_reduction <add>, %299, %cst_94 [2] : vector<2x1x8xf32> to vector<2x1xf32>
    %301 = vector.shape_cast %300 : vector<2x1xf32> to vector<2x1x1xf32>
    %302 = vector.broadcast %301 : vector<2x1x1xf32> to vector<2x1x8xf32>
    %303 = arith.divf %299, %302 : vector<2x1x8xf32>
    %304 = vector.extract_strided_slice %249 {offsets = [0, 0, 24], sizes = [2, 8, 8], strides = [1, 1, 1]} : vector<2x8x32xf32> to vector<2x8x8xf32>
    "tpu.trace_start"() <{level = 10 : i32, message = "bqk,bkd->bqd"}> : () -> ()
    %cst_95 = arith.constant dense<0.000000e+00> : vector<2x1x8xf32>
    %305 = tpu.matmul %303, %304, %cst_95 {dimension_numbers = #tpu.dot_dimension_numbers<[2], [1], [1], [2], [0, 0, 0, 1, 1, 2], [0], [0]>} : vector<2x1x8xf32>, vector<2x8x8xf32>, vector<2x1x8xf32> -> vector<2x1x8xf32>
    "tpu.trace_stop"() : () -> ()
    %306 = tpu.concatenate %263, %277, %291, %305 in 2 : vector<2x1x8xf32>, vector<2x1x8xf32>, vector<2x1x8xf32>, vector<2x1x8xf32> -> vector<2x1x32xf32>
    %307 = vector.shape_cast %306 : vector<2x1x32xf32> to vector<2x32xf32>
    %cst_96 = arith.constant dense<0.000000e+00> : vector<2x32xf32>
    %308 = tpu.matmul %307, %186, %cst_96 {dimension_numbers = #tpu.dot_dimension_numbers<[1], [0], [0], [1], [0, 0, 1, 1], [], []>} : vector<2x32xf32>, vector<32x32xf32>, vector<2x32xf32> -> vector<2x32xf32>
    %309 = vector.broadcast %191 : vector<1x32xf32> to vector<2x32xf32>
    %310 = arith.addf %308, %309 : vector<2x32xf32>
    %cst_97 = arith.constant dense<0.000000e+00> : vector<2xf32>
    %311 = vector.multi_reduction <add>, %310, %cst_97 [1] : vector<2x32xf32> to vector<2xf32>
    %312 = vector.shape_cast %311 : vector<2xf32> to vector<2x1xf32>
    %cst_98 = arith.constant 3.200000e+01 : f32
    %313 = vector.broadcast %cst_98 : f32 to vector<2x1xf32>
    %314 = arith.divf %312, %313 : vector<2x1xf32>
    %315 = vector.broadcast %314 : vector<2x1xf32> to vector<2x32xf32>
    %316 = arith.subf %310, %315 : vector<2x32xf32>
    %317 = arith.mulf %316, %316 : vector<2x32xf32>
    %cst_99 = arith.constant dense<0.000000e+00> : vector<2xf32>
    %318 = vector.multi_reduction <add>, %317, %cst_99 [1] : vector<2x32xf32> to vector<2xf32>
    %319 = vector.shape_cast %318 : vector<2xf32> to vector<2x1xf32>
    %cst_100 = arith.constant 3.200000e+01 : f32
    %320 = vector.broadcast %cst_100 : f32 to vector<2x1xf32>
    %321 = arith.divf %319, %320 : vector<2x1xf32>
    %322 = vector.broadcast %314 : vector<2x1xf32> to vector<2x32xf32>
    %323 = arith.subf %310, %322 : vector<2x32xf32>
    %cst_101 = arith.constant 9.99999974E-6 : f32
    %324 = vector.broadcast %cst_101 : f32 to vector<2x1xf32>
    %325 = arith.addf %321, %324 : vector<2x1xf32>
    %326 = math.rsqrt %325 : vector<2x1xf32>
    %327 = vector.broadcast %326 : vector<2x1xf32> to vector<2x32xf32>
    %328 = arith.mulf %323, %327 : vector<2x32xf32>
    %329 = vector.broadcast %192 : vector<1x32xf32> to vector<2x32xf32>
    %330 = arith.mulf %328, %329 : vector<2x32xf32>
    %331 = vector.broadcast %193 : vector<1x32xf32> to vector<2x32xf32>
    %332 = arith.addf %330, %331 : vector<2x32xf32>
    %333 = arith.addf %216, %332 : vector<2x32xf32>
    %cst_102 = arith.constant dense<0.000000e+00> : vector<2x32xf32>
    %334 = tpu.matmul %333, %187, %cst_102 {dimension_numbers = #tpu.dot_dimension_numbers<[1], [0], [0], [1], [0, 0, 1, 1], [], []>} : vector<2x32xf32>, vector<32x32xf32>, vector<2x32xf32> -> vector<2x32xf32>
    %335 = vector.broadcast %194 : vector<1x32xf32> to vector<2x32xf32>
    %336 = arith.addf %334, %335 : vector<2x32xf32>
    %cst_103 = arith.constant 5.000000e-01 : f32
    %337 = vector.broadcast %cst_103 : f32 to vector<2x32xf32>
    %338 = arith.mulf %337, %336 : vector<2x32xf32>
    %cst_104 = arith.constant 0.707106769 : f32
    %339 = vector.broadcast %cst_104 : f32 to vector<2x32xf32>
    %340 = arith.mulf %336, %339 : vector<2x32xf32>
    %341 = math.erf %340 : vector<2x32xf32>
    %cst_105 = arith.constant 1.000000e+00 : f32
    %342 = vector.broadcast %cst_105 : f32 to vector<2x32xf32>
    %343 = arith.addf %342, %341 : vector<2x32xf32>
    %344 = arith.mulf %338, %343 : vector<2x32xf32>
    %345 = arith.addf %333, %344 : vector<2x32xf32>
    %346 = vector.extract_strided_slice %0 {offsets = [64, 0], sizes = [32, 96], strides = [1, 1]} : vector<128x96xf32> to vector<32x96xf32>
    %347 = vector.extract_strided_slice %1 {offsets = [2, 0], sizes = [1, 96], strides = [1, 1]} : vector<4x96xf32> to vector<1x96xf32>
    %348 = vector.extract_strided_slice %2 {offsets = [128, 0], sizes = [32, 32], strides = [1, 1]} : vector<256x32xf32> to vector<32x32xf32>
    %349 = vector.extract_strided_slice %2 {offsets = [160, 0], sizes = [32, 32], strides = [1, 1]} : vector<256x32xf32> to vector<32x32xf32>
    %350 = vector.extract_strided_slice %3 {offsets = [12, 0], sizes = [6, 32], strides = [1, 1]} : vector<24x32xf32> to vector<6x32xf32>
    %351 = vector.extract_strided_slice %350 {offsets = [0, 0], sizes = [1, 32], strides = [1, 1]} : vector<6x32xf32> to vector<1x32xf32>
    %352 = vector.extract_strided_slice %350 {offsets = [1, 0], sizes = [1, 32], strides = [1, 1]} : vector<6x32xf32> to vector<1x32xf32>
    %353 = vector.extract_strided_slice %350 {offsets = [2, 0], sizes = [1, 32], strides = [1, 1]} : vector<6x32xf32> to vector<1x32xf32>
    %354 = vector.extract_strided_slice %350 {offsets = [3, 0], sizes = [1, 32], strides = [1, 1]} : vector<6x32xf32> to vector<1x32xf32>
    %355 = vector.extract_strided_slice %350 {offsets = [4, 0], sizes = [1, 32], strides = [1, 1]} : vector<6x32xf32> to vector<1x32xf32>
    %356 = vector.extract_strided_slice %350 {offsets = [5, 0], sizes = [1, 32], strides = [1, 1]} : vector<6x32xf32> to vector<1x32xf32>
    %cst_106 = arith.constant dense<0.000000e+00> : vector<16xf32>
    %357 = vector.multi_reduction <add>, %183, %cst_106 [1] : vector<16x32xf32> to vector<16xf32>
    %358 = vector.shape_cast %357 : vector<16xf32> to vector<16x1xf32>
    %cst_107 = arith.constant 3.200000e+01 : f32
    %359 = vector.broadcast %cst_107 : f32 to vector<16x1xf32>
    %360 = arith.divf %358, %359 : vector<16x1xf32>
    %361 = vector.broadcast %360 : vector<16x1xf32> to vector<16x32xf32>
    %362 = arith.subf %183, %361 : vector<16x32xf32>
    %363 = arith.mulf %362, %362 : vector<16x32xf32>
    %cst_108 = arith.constant dense<0.000000e+00> : vector<16xf32>
    %364 = vector.multi_reduction <add>, %363, %cst_108 [1] : vector<16x32xf32> to vector<16xf32>
    %365 = vector.shape_cast %364 : vector<16xf32> to vector<16x1xf32>
    %cst_109 = arith.constant 3.200000e+01 : f32
    %366 = vector.broadcast %cst_109 : f32 to vector<16x1xf32>
    %367 = arith.divf %365, %366 : vector<16x1xf32>
    %368 = vector.broadcast %360 : vector<16x1xf32> to vector<16x32xf32>
    %369 = arith.subf %183, %368 : vector<16x32xf32>
    %cst_110 = arith.constant 9.99999974E-6 : f32
    %370 = vector.broadcast %cst_110 : f32 to vector<16x1xf32>
    %371 = arith.addf %367, %370 : vector<16x1xf32>
    %372 = math.rsqrt %371 : vector<16x1xf32>
    %373 = vector.broadcast %372 : vector<16x1xf32> to vector<16x32xf32>
    %374 = arith.mulf %369, %373 : vector<16x32xf32>
    %375 = vector.broadcast %351 : vector<1x32xf32> to vector<16x32xf32>
    %376 = arith.mulf %374, %375 : vector<16x32xf32>
    %377 = vector.broadcast %352 : vector<1x32xf32> to vector<16x32xf32>
    %378 = arith.addf %376, %377 : vector<16x32xf32>
    %cst_111 = arith.constant dense<0.000000e+00> : vector<16x96xf32>
    %379 = tpu.matmul %374, %346, %cst_111 {dimension_numbers = #tpu.dot_dimension_numbers<[1], [0], [0], [1], [0, 0, 1, 1], [], []>} : vector<16x32xf32>, vector<32x96xf32>, vector<16x96xf32> -> vector<16x96xf32>
    %380 = vector.broadcast %347 : vector<1x96xf32> to vector<16x96xf32>
    %381 = arith.addf %379, %380 : vector<16x96xf32>
    %382 = vector.extract_strided_slice %381 {offsets = [0, 0], sizes = [16, 32], strides = [1, 1]} : vector<16x96xf32> to vector<16x32xf32>
    %383 = vector.extract_strided_slice %381 {offsets = [0, 32], sizes = [16, 32], strides = [1, 1]} : vector<16x96xf32> to vector<16x32xf32>
    %384 = vector.extract_strided_slice %381 {offsets = [0, 64], sizes = [16, 32], strides = [1, 1]} : vector<16x96xf32> to vector<16x32xf32>
    %385 = vector.shape_cast %382 : vector<16x32xf32> to vector<2x8x32xf32>
    %386 = vector.shape_cast %383 : vector<16x32xf32> to vector<2x8x32xf32>
    %387 = vector.shape_cast %384 : vector<16x32xf32> to vector<2x8x32xf32>
    %388 = vector.extract_strided_slice %385 {offsets = [0, 0, 0], sizes = [2, 8, 8], strides = [1, 1, 1]} : vector<2x8x32xf32> to vector<2x8x8xf32>
    %389 = vector.extract_strided_slice %386 {offsets = [0, 0, 0], sizes = [2, 8, 8], strides = [1, 1, 1]} : vector<2x8x32xf32> to vector<2x8x8xf32>
    "tpu.trace_start"() <{level = 10 : i32, message = "bqd,bkd->bqk"}> : () -> ()
    %cst_112 = arith.constant dense<0.000000e+00> : vector<2x8x8xf32>
    %390 = tpu.matmul %388, %389, %cst_112 {dimension_numbers = #tpu.dot_dimension_numbers<[2], [2], [1], [1], [0, 0, 0, 1, 1, 1], [0], [0]>} : vector<2x8x8xf32>, vector<2x8x8xf32>, vector<2x8x8xf32> -> vector<2x8x8xf32>
    "tpu.trace_stop"() : () -> ()
    %cst_113 = arith.constant dense<0xFF800000> : vector<2x8xf32>
    %391 = vector.multi_reduction <maximumf>, %390, %cst_113 [2] : vector<2x8x8xf32> to vector<2x8xf32>
    %392 = vector.shape_cast %391 : vector<2x8xf32> to vector<2x8x1xf32>
    %393 = vector.broadcast %392 : vector<2x8x1xf32> to vector<2x8x8xf32>
    %394 = arith.subf %390, %393 : vector<2x8x8xf32>
    %395 = math.exp %394 : vector<2x8x8xf32>
    %cst_114 = arith.constant dense<0.000000e+00> : vector<2x8xf32>
    %396 = vector.multi_reduction <add>, %395, %cst_114 [2] : vector<2x8x8xf32> to vector<2x8xf32>
    %397 = vector.shape_cast %396 : vector<2x8xf32> to vector<2x8x1xf32>
    %398 = vector.broadcast %397 : vector<2x8x1xf32> to vector<2x8x8xf32>
    %399 = arith.divf %395, %398 : vector<2x8x8xf32>
    %400 = vector.extract_strided_slice %387 {offsets = [0, 0, 0], sizes = [2, 8, 8], strides = [1, 1, 1]} : vector<2x8x32xf32> to vector<2x8x8xf32>
    "tpu.trace_start"() <{level = 10 : i32, message = "bqk,bkd->bqd"}> : () -> ()
    %cst_115 = arith.constant dense<0.000000e+00> : vector<2x8x8xf32>
    %401 = tpu.matmul %399, %400, %cst_115 {dimension_numbers = #tpu.dot_dimension_numbers<[2], [1], [1], [2], [0, 0, 0, 1, 1, 2], [0], [0]>} : vector<2x8x8xf32>, vector<2x8x8xf32>, vector<2x8x8xf32> -> vector<2x8x8xf32>
    "tpu.trace_stop"() : () -> ()
    %402 = vector.extract_strided_slice %385 {offsets = [0, 0, 8], sizes = [2, 8, 8], strides = [1, 1, 1]} : vector<2x8x32xf32> to vector<2x8x8xf32>
    %403 = vector.extract_strided_slice %386 {offsets = [0, 0, 8], sizes = [2, 8, 8], strides = [1, 1, 1]} : vector<2x8x32xf32> to vector<2x8x8xf32>
    "tpu.trace_start"() <{level = 10 : i32, message = "bqd,bkd->bqk"}> : () -> ()
    %cst_116 = arith.constant dense<0.000000e+00> : vector<2x8x8xf32>
    %404 = tpu.matmul %402, %403, %cst_116 {dimension_numbers = #tpu.dot_dimension_numbers<[2], [2], [1], [1], [0, 0, 0, 1, 1, 1], [0], [0]>} : vector<2x8x8xf32>, vector<2x8x8xf32>, vector<2x8x8xf32> -> vector<2x8x8xf32>
    "tpu.trace_stop"() : () -> ()
    %cst_117 = arith.constant dense<0xFF800000> : vector<2x8xf32>
    %405 = vector.multi_reduction <maximumf>, %404, %cst_117 [2] : vector<2x8x8xf32> to vector<2x8xf32>
    %406 = vector.shape_cast %405 : vector<2x8xf32> to vector<2x8x1xf32>
    %407 = vector.broadcast %406 : vector<2x8x1xf32> to vector<2x8x8xf32>
    %408 = arith.subf %404, %407 : vector<2x8x8xf32>
    %409 = math.exp %408 : vector<2x8x8xf32>
    %cst_118 = arith.constant dense<0.000000e+00> : vector<2x8xf32>
    %410 = vector.multi_reduction <add>, %409, %cst_118 [2] : vector<2x8x8xf32> to vector<2x8xf32>
    %411 = vector.shape_cast %410 : vector<2x8xf32> to vector<2x8x1xf32>
    %412 = vector.broadcast %411 : vector<2x8x1xf32> to vector<2x8x8xf32>
    %413 = arith.divf %409, %412 : vector<2x8x8xf32>
    %414 = vector.extract_strided_slice %387 {offsets = [0, 0, 8], sizes = [2, 8, 8], strides = [1, 1, 1]} : vector<2x8x32xf32> to vector<2x8x8xf32>
    "tpu.trace_start"() <{level = 10 : i32, message = "bqk,bkd->bqd"}> : () -> ()
    %cst_119 = arith.constant dense<0.000000e+00> : vector<2x8x8xf32>
    %415 = tpu.matmul %413, %414, %cst_119 {dimension_numbers = #tpu.dot_dimension_numbers<[2], [1], [1], [2], [0, 0, 0, 1, 1, 2], [0], [0]>} : vector<2x8x8xf32>, vector<2x8x8xf32>, vector<2x8x8xf32> -> vector<2x8x8xf32>
    "tpu.trace_stop"() : () -> ()
    %416 = vector.extract_strided_slice %385 {offsets = [0, 0, 16], sizes = [2, 8, 8], strides = [1, 1, 1]} : vector<2x8x32xf32> to vector<2x8x8xf32>
    %417 = vector.extract_strided_slice %386 {offsets = [0, 0, 16], sizes = [2, 8, 8], strides = [1, 1, 1]} : vector<2x8x32xf32> to vector<2x8x8xf32>
    "tpu.trace_start"() <{level = 10 : i32, message = "bqd,bkd->bqk"}> : () -> ()
    %cst_120 = arith.constant dense<0.000000e+00> : vector<2x8x8xf32>
    %418 = tpu.matmul %416, %417, %cst_120 {dimension_numbers = #tpu.dot_dimension_numbers<[2], [2], [1], [1], [0, 0, 0, 1, 1, 1], [0], [0]>} : vector<2x8x8xf32>, vector<2x8x8xf32>, vector<2x8x8xf32> -> vector<2x8x8xf32>
    "tpu.trace_stop"() : () -> ()
    %cst_121 = arith.constant dense<0xFF800000> : vector<2x8xf32>
    %419 = vector.multi_reduction <maximumf>, %418, %cst_121 [2] : vector<2x8x8xf32> to vector<2x8xf32>
    %420 = vector.shape_cast %419 : vector<2x8xf32> to vector<2x8x1xf32>
    %421 = vector.broadcast %420 : vector<2x8x1xf32> to vector<2x8x8xf32>
    %422 = arith.subf %418, %421 : vector<2x8x8xf32>
    %423 = math.exp %422 : vector<2x8x8xf32>
    %cst_122 = arith.constant dense<0.000000e+00> : vector<2x8xf32>
    %424 = vector.multi_reduction <add>, %423, %cst_122 [2] : vector<2x8x8xf32> to vector<2x8xf32>
    %425 = vector.shape_cast %424 : vector<2x8xf32> to vector<2x8x1xf32>
    %426 = vector.broadcast %425 : vector<2x8x1xf32> to vector<2x8x8xf32>
    %427 = arith.divf %423, %426 : vector<2x8x8xf32>
    %428 = vector.extract_strided_slice %387 {offsets = [0, 0, 16], sizes = [2, 8, 8], strides = [1, 1, 1]} : vector<2x8x32xf32> to vector<2x8x8xf32>
    "tpu.trace_start"() <{level = 10 : i32, message = "bqk,bkd->bqd"}> : () -> ()
    %cst_123 = arith.constant dense<0.000000e+00> : vector<2x8x8xf32>
    %429 = tpu.matmul %427, %428, %cst_123 {dimension_numbers = #tpu.dot_dimension_numbers<[2], [1], [1], [2], [0, 0, 0, 1, 1, 2], [0], [0]>} : vector<2x8x8xf32>, vector<2x8x8xf32>, vector<2x8x8xf32> -> vector<2x8x8xf32>
    "tpu.trace_stop"() : () -> ()
    %430 = vector.extract_strided_slice %385 {offsets = [0, 0, 24], sizes = [2, 8, 8], strides = [1, 1, 1]} : vector<2x8x32xf32> to vector<2x8x8xf32>
    %431 = vector.extract_strided_slice %386 {offsets = [0, 0, 24], sizes = [2, 8, 8], strides = [1, 1, 1]} : vector<2x8x32xf32> to vector<2x8x8xf32>
    "tpu.trace_start"() <{level = 10 : i32, message = "bqd,bkd->bqk"}> : () -> ()
    %cst_124 = arith.constant dense<0.000000e+00> : vector<2x8x8xf32>
    %432 = tpu.matmul %430, %431, %cst_124 {dimension_numbers = #tpu.dot_dimension_numbers<[2], [2], [1], [1], [0, 0, 0, 1, 1, 1], [0], [0]>} : vector<2x8x8xf32>, vector<2x8x8xf32>, vector<2x8x8xf32> -> vector<2x8x8xf32>
    "tpu.trace_stop"() : () -> ()
    %cst_125 = arith.constant dense<0xFF800000> : vector<2x8xf32>
    %433 = vector.multi_reduction <maximumf>, %432, %cst_125 [2] : vector<2x8x8xf32> to vector<2x8xf32>
    %434 = vector.shape_cast %433 : vector<2x8xf32> to vector<2x8x1xf32>
    %435 = vector.broadcast %434 : vector<2x8x1xf32> to vector<2x8x8xf32>
    %436 = arith.subf %432, %435 : vector<2x8x8xf32>
    %437 = math.exp %436 : vector<2x8x8xf32>
    %cst_126 = arith.constant dense<0.000000e+00> : vector<2x8xf32>
    %438 = vector.multi_reduction <add>, %437, %cst_126 [2] : vector<2x8x8xf32> to vector<2x8xf32>
    %439 = vector.shape_cast %438 : vector<2x8xf32> to vector<2x8x1xf32>
    %440 = vector.broadcast %439 : vector<2x8x1xf32> to vector<2x8x8xf32>
    %441 = arith.divf %437, %440 : vector<2x8x8xf32>
    %442 = vector.extract_strided_slice %387 {offsets = [0, 0, 24], sizes = [2, 8, 8], strides = [1, 1, 1]} : vector<2x8x32xf32> to vector<2x8x8xf32>
    "tpu.trace_start"() <{level = 10 : i32, message = "bqk,bkd->bqd"}> : () -> ()
    %cst_127 = arith.constant dense<0.000000e+00> : vector<2x8x8xf32>
    %443 = tpu.matmul %441, %442, %cst_127 {dimension_numbers = #tpu.dot_dimension_numbers<[2], [1], [1], [2], [0, 0, 0, 1, 1, 2], [0], [0]>} : vector<2x8x8xf32>, vector<2x8x8xf32>, vector<2x8x8xf32> -> vector<2x8x8xf32>
    "tpu.trace_stop"() : () -> ()
    %444 = tpu.concatenate %401, %415, %429, %443 in 2 : vector<2x8x8xf32>, vector<2x8x8xf32>, vector<2x8x8xf32>, vector<2x8x8xf32> -> vector<2x8x32xf32>
    %445 = vector.shape_cast %444 : vector<2x8x32xf32> to vector<16x32xf32>
    %cst_128 = arith.constant dense<0.000000e+00> : vector<16x32xf32>
    %446 = tpu.matmul %445, %348, %cst_128 {dimension_numbers = #tpu.dot_dimension_numbers<[1], [0], [0], [1], [0, 0, 1, 1], [], []>} : vector<16x32xf32>, vector<32x32xf32>, vector<16x32xf32> -> vector<16x32xf32>
    %447 = vector.broadcast %353 : vector<1x32xf32> to vector<16x32xf32>
    %448 = arith.addf %446, %447 : vector<16x32xf32>
    %cst_129 = arith.constant dense<0.000000e+00> : vector<16xf32>
    %449 = vector.multi_reduction <add>, %448, %cst_129 [1] : vector<16x32xf32> to vector<16xf32>
    %450 = vector.shape_cast %449 : vector<16xf32> to vector<16x1xf32>
    %cst_130 = arith.constant 3.200000e+01 : f32
    %451 = vector.broadcast %cst_130 : f32 to vector<16x1xf32>
    %452 = arith.divf %450, %451 : vector<16x1xf32>
    %453 = vector.broadcast %452 : vector<16x1xf32> to vector<16x32xf32>
    %454 = arith.subf %448, %453 : vector<16x32xf32>
    %455 = arith.mulf %454, %454 : vector<16x32xf32>
    %cst_131 = arith.constant dense<0.000000e+00> : vector<16xf32>
    %456 = vector.multi_reduction <add>, %455, %cst_131 [1] : vector<16x32xf32> to vector<16xf32>
    %457 = vector.shape_cast %456 : vector<16xf32> to vector<16x1xf32>
    %cst_132 = arith.constant 3.200000e+01 : f32
    %458 = vector.broadcast %cst_132 : f32 to vector<16x1xf32>
    %459 = arith.divf %457, %458 : vector<16x1xf32>
    %460 = vector.broadcast %452 : vector<16x1xf32> to vector<16x32xf32>
    %461 = arith.subf %448, %460 : vector<16x32xf32>
    %cst_133 = arith.constant 9.99999974E-6 : f32
    %462 = vector.broadcast %cst_133 : f32 to vector<16x1xf32>
    %463 = arith.addf %459, %462 : vector<16x1xf32>
    %464 = math.rsqrt %463 : vector<16x1xf32>
    %465 = vector.broadcast %464 : vector<16x1xf32> to vector<16x32xf32>
    %466 = arith.mulf %461, %465 : vector<16x32xf32>
    %467 = vector.broadcast %354 : vector<1x32xf32> to vector<16x32xf32>
    %468 = arith.mulf %466, %467 : vector<16x32xf32>
    %469 = vector.broadcast %355 : vector<1x32xf32> to vector<16x32xf32>
    %470 = arith.addf %468, %469 : vector<16x32xf32>
    %471 = arith.addf %378, %470 : vector<16x32xf32>
    %cst_134 = arith.constant dense<0.000000e+00> : vector<16x32xf32>
    %472 = tpu.matmul %471, %349, %cst_134 {dimension_numbers = #tpu.dot_dimension_numbers<[1], [0], [0], [1], [0, 0, 1, 1], [], []>} : vector<16x32xf32>, vector<32x32xf32>, vector<16x32xf32> -> vector<16x32xf32>
    %473 = vector.broadcast %356 : vector<1x32xf32> to vector<16x32xf32>
    %474 = arith.addf %472, %473 : vector<16x32xf32>
    %cst_135 = arith.constant 5.000000e-01 : f32
    %475 = vector.broadcast %cst_135 : f32 to vector<16x32xf32>
    %476 = arith.mulf %475, %474 : vector<16x32xf32>
    %cst_136 = arith.constant 0.707106769 : f32
    %477 = vector.broadcast %cst_136 : f32 to vector<16x32xf32>
    %478 = arith.mulf %474, %477 : vector<16x32xf32>
    %479 = math.erf %478 : vector<16x32xf32>
    %cst_137 = arith.constant 1.000000e+00 : f32
    %480 = vector.broadcast %cst_137 : f32 to vector<16x32xf32>
    %481 = arith.addf %480, %479 : vector<16x32xf32>
    %482 = arith.mulf %476, %481 : vector<16x32xf32>
    %483 = arith.addf %471, %482 : vector<16x32xf32>
    %484 = vector.extract_strided_slice %0 {offsets = [96, 0], sizes = [32, 96], strides = [1, 1]} : vector<128x96xf32> to vector<32x96xf32>
    %485 = vector.extract_strided_slice %1 {offsets = [3, 0], sizes = [1, 96], strides = [1, 1]} : vector<4x96xf32> to vector<1x96xf32>
    %486 = vector.extract_strided_slice %2 {offsets = [192, 0], sizes = [32, 32], strides = [1, 1]} : vector<256x32xf32> to vector<32x32xf32>
    %487 = vector.extract_strided_slice %2 {offsets = [224, 0], sizes = [32, 32], strides = [1, 1]} : vector<256x32xf32> to vector<32x32xf32>
    %488 = vector.extract_strided_slice %3 {offsets = [18, 0], sizes = [6, 32], strides = [1, 1]} : vector<24x32xf32> to vector<6x32xf32>
    %489 = vector.extract_strided_slice %488 {offsets = [0, 0], sizes = [1, 32], strides = [1, 1]} : vector<6x32xf32> to vector<1x32xf32>
    %490 = vector.extract_strided_slice %488 {offsets = [1, 0], sizes = [1, 32], strides = [1, 1]} : vector<6x32xf32> to vector<1x32xf32>
    %491 = vector.extract_strided_slice %488 {offsets = [2, 0], sizes = [1, 32], strides = [1, 1]} : vector<6x32xf32> to vector<1x32xf32>
    %492 = vector.extract_strided_slice %488 {offsets = [3, 0], sizes = [1, 32], strides = [1, 1]} : vector<6x32xf32> to vector<1x32xf32>
    %493 = vector.extract_strided_slice %488 {offsets = [4, 0], sizes = [1, 32], strides = [1, 1]} : vector<6x32xf32> to vector<1x32xf32>
    %494 = vector.extract_strided_slice %488 {offsets = [5, 0], sizes = [1, 32], strides = [1, 1]} : vector<6x32xf32> to vector<1x32xf32>
    %cst_138 = arith.constant dense<0.000000e+00> : vector<2xf32>
    %495 = vector.multi_reduction <add>, %345, %cst_138 [1] : vector<2x32xf32> to vector<2xf32>
    %496 = vector.shape_cast %495 : vector<2xf32> to vector<2x1xf32>
    %cst_139 = arith.constant 3.200000e+01 : f32
    %497 = vector.broadcast %cst_139 : f32 to vector<2x1xf32>
    %498 = arith.divf %496, %497 : vector<2x1xf32>
    %499 = vector.broadcast %498 : vector<2x1xf32> to vector<2x32xf32>
    %500 = arith.subf %345, %499 : vector<2x32xf32>
    %501 = arith.mulf %500, %500 : vector<2x32xf32>
    %cst_140 = arith.constant dense<0.000000e+00> : vector<2xf32>
    %502 = vector.multi_reduction <add>, %501, %cst_140 [1] : vector<2x32xf32> to vector<2xf32>
    %503 = vector.shape_cast %502 : vector<2xf32> to vector<2x1xf32>
    %cst_141 = arith.constant 3.200000e+01 : f32
    %504 = vector.broadcast %cst_141 : f32 to vector<2x1xf32>
    %505 = arith.divf %503, %504 : vector<2x1xf32>
    %506 = vector.broadcast %498 : vector<2x1xf32> to vector<2x32xf32>
    %507 = arith.subf %345, %506 : vector<2x32xf32>
    %cst_142 = arith.constant 9.99999974E-6 : f32
    %508 = vector.broadcast %cst_142 : f32 to vector<2x1xf32>
    %509 = arith.addf %505, %508 : vector<2x1xf32>
    %510 = math.rsqrt %509 : vector<2x1xf32>
    %511 = vector.broadcast %510 : vector<2x1xf32> to vector<2x32xf32>
    %512 = arith.mulf %507, %511 : vector<2x32xf32>
    %513 = vector.broadcast %489 : vector<1x32xf32> to vector<2x32xf32>
    %514 = arith.mulf %512, %513 : vector<2x32xf32>
    %515 = vector.broadcast %490 : vector<1x32xf32> to vector<2x32xf32>
    %516 = arith.addf %514, %515 : vector<2x32xf32>
    %cst_143 = arith.constant dense<0.000000e+00> : vector<16xf32>
    %517 = vector.multi_reduction <add>, %483, %cst_143 [1] : vector<16x32xf32> to vector<16xf32>
    %518 = vector.shape_cast %517 : vector<16xf32> to vector<16x1xf32>
    %cst_144 = arith.constant 3.200000e+01 : f32
    %519 = vector.broadcast %cst_144 : f32 to vector<16x1xf32>
    %520 = arith.divf %518, %519 : vector<16x1xf32>
    %521 = vector.broadcast %520 : vector<16x1xf32> to vector<16x32xf32>
    %522 = arith.subf %483, %521 : vector<16x32xf32>
    %523 = arith.mulf %522, %522 : vector<16x32xf32>
    %cst_145 = arith.constant dense<0.000000e+00> : vector<16xf32>
    %524 = vector.multi_reduction <add>, %523, %cst_145 [1] : vector<16x32xf32> to vector<16xf32>
    %525 = vector.shape_cast %524 : vector<16xf32> to vector<16x1xf32>
    %cst_146 = arith.constant 3.200000e+01 : f32
    %526 = vector.broadcast %cst_146 : f32 to vector<16x1xf32>
    %527 = arith.divf %525, %526 : vector<16x1xf32>
    %528 = vector.broadcast %520 : vector<16x1xf32> to vector<16x32xf32>
    %529 = arith.subf %483, %528 : vector<16x32xf32>
    %cst_147 = arith.constant 9.99999974E-6 : f32
    %530 = vector.broadcast %cst_147 : f32 to vector<16x1xf32>
    %531 = arith.addf %527, %530 : vector<16x1xf32>
    %532 = math.rsqrt %531 : vector<16x1xf32>
    %533 = vector.broadcast %532 : vector<16x1xf32> to vector<16x32xf32>
    %534 = arith.mulf %529, %533 : vector<16x32xf32>
    %535 = vector.extract_strided_slice %484 {offsets = [0, 0], sizes = [32, 32], strides = [1, 1]} : vector<32x96xf32> to vector<32x32xf32>
    %cst_148 = arith.constant dense<0.000000e+00> : vector<2x32xf32>
    %536 = tpu.matmul %512, %535, %cst_148 {dimension_numbers = #tpu.dot_dimension_numbers<[1], [0], [0], [1], [0, 0, 1, 1], [], []>} : vector<2x32xf32>, vector<32x32xf32>, vector<2x32xf32> -> vector<2x32xf32>
    %537 = vector.extract_strided_slice %485 {offsets = [0, 0], sizes = [1, 32], strides = [1, 1]} : vector<1x96xf32> to vector<1x32xf32>
    %538 = vector.broadcast %537 : vector<1x32xf32> to vector<2x32xf32>
    %539 = arith.addf %536, %538 : vector<2x32xf32>
    %540 = vector.extract_strided_slice %484 {offsets = [0, 32], sizes = [32, 64], strides = [1, 1]} : vector<32x96xf32> to vector<32x64xf32>
    %cst_149 = arith.constant dense<0.000000e+00> : vector<16x64xf32>
    %541 = tpu.matmul %534, %540, %cst_149 {dimension_numbers = #tpu.dot_dimension_numbers<[1], [0], [0], [1], [0, 0, 1, 1], [], []>} : vector<16x32xf32>, vector<32x64xf32>, vector<16x64xf32> -> vector<16x64xf32>
    %542 = vector.extract_strided_slice %485 {offsets = [0, 32], sizes = [1, 64], strides = [1, 1]} : vector<1x96xf32> to vector<1x64xf32>
    %543 = vector.broadcast %542 : vector<1x64xf32> to vector<16x64xf32>
    %544 = arith.addf %541, %543 : vector<16x64xf32>
    %545 = vector.extract_strided_slice %544 {offsets = [0, 0], sizes = [16, 32], strides = [1, 1]} : vector<16x64xf32> to vector<16x32xf32>
    %546 = vector.extract_strided_slice %544 {offsets = [0, 32], sizes = [16, 32], strides = [1, 1]} : vector<16x64xf32> to vector<16x32xf32>
    %547 = vector.shape_cast %539 : vector<2x32xf32> to vector<2x1x32xf32>
    %548 = vector.shape_cast %545 : vector<16x32xf32> to vector<2x8x32xf32>
    %549 = vector.shape_cast %546 : vector<16x32xf32> to vector<2x8x32xf32>
    %550 = vector.extract_strided_slice %547 {offsets = [0, 0, 0], sizes = [2, 1, 8], strides = [1, 1, 1]} : vector<2x1x32xf32> to vector<2x1x8xf32>
    %551 = vector.extract_strided_slice %548 {offsets = [0, 0, 0], sizes = [2, 8, 8], strides = [1, 1, 1]} : vector<2x8x32xf32> to vector<2x8x8xf32>
    "tpu.trace_start"() <{level = 10 : i32, message = "bqd,bkd->bqk"}> : () -> ()
    %cst_150 = arith.constant dense<0.000000e+00> : vector<2x1x8xf32>
    %552 = tpu.matmul %550, %551, %cst_150 {dimension_numbers = #tpu.dot_dimension_numbers<[2], [2], [1], [1], [0, 0, 0, 1, 1, 1], [0], [0]>} : vector<2x1x8xf32>, vector<2x8x8xf32>, vector<2x1x8xf32> -> vector<2x1x8xf32>
    "tpu.trace_stop"() : () -> ()
    %cst_151 = arith.constant dense<0xFF800000> : vector<2x1xf32>
    %553 = vector.multi_reduction <maximumf>, %552, %cst_151 [2] : vector<2x1x8xf32> to vector<2x1xf32>
    %554 = vector.shape_cast %553 : vector<2x1xf32> to vector<2x1x1xf32>
    %555 = vector.broadcast %554 : vector<2x1x1xf32> to vector<2x1x8xf32>
    %556 = arith.subf %552, %555 : vector<2x1x8xf32>
    %557 = math.exp %556 : vector<2x1x8xf32>
    %cst_152 = arith.constant dense<0.000000e+00> : vector<2x1xf32>
    %558 = vector.multi_reduction <add>, %557, %cst_152 [2] : vector<2x1x8xf32> to vector<2x1xf32>
    %559 = vector.shape_cast %558 : vector<2x1xf32> to vector<2x1x1xf32>
    %560 = vector.broadcast %559 : vector<2x1x1xf32> to vector<2x1x8xf32>
    %561 = arith.divf %557, %560 : vector<2x1x8xf32>
    %562 = vector.extract_strided_slice %549 {offsets = [0, 0, 0], sizes = [2, 8, 8], strides = [1, 1, 1]} : vector<2x8x32xf32> to vector<2x8x8xf32>
    "tpu.trace_start"() <{level = 10 : i32, message = "bqk,bkd->bqd"}> : () -> ()
    %cst_153 = arith.constant dense<0.000000e+00> : vector<2x1x8xf32>
    %563 = tpu.matmul %561, %562, %cst_153 {dimension_numbers = #tpu.dot_dimension_numbers<[2], [1], [1], [2], [0, 0, 0, 1, 1, 2], [0], [0]>} : vector<2x1x8xf32>, vector<2x8x8xf32>, vector<2x1x8xf32> -> vector<2x1x8xf32>
    "tpu.trace_stop"() : () -> ()
    %564 = vector.extract_strided_slice %547 {offsets = [0, 0, 8], sizes = [2, 1, 8], strides = [1, 1, 1]} : vector<2x1x32xf32> to vector<2x1x8xf32>
    %565 = vector.extract_strided_slice %548 {offsets = [0, 0, 8], sizes = [2, 8, 8], strides = [1, 1, 1]} : vector<2x8x32xf32> to vector<2x8x8xf32>
    "tpu.trace_start"() <{level = 10 : i32, message = "bqd,bkd->bqk"}> : () -> ()
    %cst_154 = arith.constant dense<0.000000e+00> : vector<2x1x8xf32>
    %566 = tpu.matmul %564, %565, %cst_154 {dimension_numbers = #tpu.dot_dimension_numbers<[2], [2], [1], [1], [0, 0, 0, 1, 1, 1], [0], [0]>} : vector<2x1x8xf32>, vector<2x8x8xf32>, vector<2x1x8xf32> -> vector<2x1x8xf32>
    "tpu.trace_stop"() : () -> ()
    %cst_155 = arith.constant dense<0xFF800000> : vector<2x1xf32>
    %567 = vector.multi_reduction <maximumf>, %566, %cst_155 [2] : vector<2x1x8xf32> to vector<2x1xf32>
    %568 = vector.shape_cast %567 : vector<2x1xf32> to vector<2x1x1xf32>
    %569 = vector.broadcast %568 : vector<2x1x1xf32> to vector<2x1x8xf32>
    %570 = arith.subf %566, %569 : vector<2x1x8xf32>
    %571 = math.exp %570 : vector<2x1x8xf32>
    %cst_156 = arith.constant dense<0.000000e+00> : vector<2x1xf32>
    %572 = vector.multi_reduction <add>, %571, %cst_156 [2] : vector<2x1x8xf32> to vector<2x1xf32>
    %573 = vector.shape_cast %572 : vector<2x1xf32> to vector<2x1x1xf32>
    %574 = vector.broadcast %573 : vector<2x1x1xf32> to vector<2x1x8xf32>
    %575 = arith.divf %571, %574 : vector<2x1x8xf32>
    %576 = vector.extract_strided_slice %549 {offsets = [0, 0, 8], sizes = [2, 8, 8], strides = [1, 1, 1]} : vector<2x8x32xf32> to vector<2x8x8xf32>
    "tpu.trace_start"() <{level = 10 : i32, message = "bqk,bkd->bqd"}> : () -> ()
    %cst_157 = arith.constant dense<0.000000e+00> : vector<2x1x8xf32>
    %577 = tpu.matmul %575, %576, %cst_157 {dimension_numbers = #tpu.dot_dimension_numbers<[2], [1], [1], [2], [0, 0, 0, 1, 1, 2], [0], [0]>} : vector<2x1x8xf32>, vector<2x8x8xf32>, vector<2x1x8xf32> -> vector<2x1x8xf32>
    "tpu.trace_stop"() : () -> ()
    %578 = vector.extract_strided_slice %547 {offsets = [0, 0, 16], sizes = [2, 1, 8], strides = [1, 1, 1]} : vector<2x1x32xf32> to vector<2x1x8xf32>
    %579 = vector.extract_strided_slice %548 {offsets = [0, 0, 16], sizes = [2, 8, 8], strides = [1, 1, 1]} : vector<2x8x32xf32> to vector<2x8x8xf32>
    "tpu.trace_start"() <{level = 10 : i32, message = "bqd,bkd->bqk"}> : () -> ()
    %cst_158 = arith.constant dense<0.000000e+00> : vector<2x1x8xf32>
    %580 = tpu.matmul %578, %579, %cst_158 {dimension_numbers = #tpu.dot_dimension_numbers<[2], [2], [1], [1], [0, 0, 0, 1, 1, 1], [0], [0]>} : vector<2x1x8xf32>, vector<2x8x8xf32>, vector<2x1x8xf32> -> vector<2x1x8xf32>
    "tpu.trace_stop"() : () -> ()
    %cst_159 = arith.constant dense<0xFF800000> : vector<2x1xf32>
    %581 = vector.multi_reduction <maximumf>, %580, %cst_159 [2] : vector<2x1x8xf32> to vector<2x1xf32>
    %582 = vector.shape_cast %581 : vector<2x1xf32> to vector<2x1x1xf32>
    %583 = vector.broadcast %582 : vector<2x1x1xf32> to vector<2x1x8xf32>
    %584 = arith.subf %580, %583 : vector<2x1x8xf32>
    %585 = math.exp %584 : vector<2x1x8xf32>
    %cst_160 = arith.constant dense<0.000000e+00> : vector<2x1xf32>
    %586 = vector.multi_reduction <add>, %585, %cst_160 [2] : vector<2x1x8xf32> to vector<2x1xf32>
    %587 = vector.shape_cast %586 : vector<2x1xf32> to vector<2x1x1xf32>
    %588 = vector.broadcast %587 : vector<2x1x1xf32> to vector<2x1x8xf32>
    %589 = arith.divf %585, %588 : vector<2x1x8xf32>
    %590 = vector.extract_strided_slice %549 {offsets = [0, 0, 16], sizes = [2, 8, 8], strides = [1, 1, 1]} : vector<2x8x32xf32> to vector<2x8x8xf32>
    "tpu.trace_start"() <{level = 10 : i32, message = "bqk,bkd->bqd"}> : () -> ()
    %cst_161 = arith.constant dense<0.000000e+00> : vector<2x1x8xf32>
    %591 = tpu.matmul %589, %590, %cst_161 {dimension_numbers = #tpu.dot_dimension_numbers<[2], [1], [1], [2], [0, 0, 0, 1, 1, 2], [0], [0]>} : vector<2x1x8xf32>, vector<2x8x8xf32>, vector<2x1x8xf32> -> vector<2x1x8xf32>
    "tpu.trace_stop"() : () -> ()
    %592 = vector.extract_strided_slice %547 {offsets = [0, 0, 24], sizes = [2, 1, 8], strides = [1, 1, 1]} : vector<2x1x32xf32> to vector<2x1x8xf32>
    %593 = vector.extract_strided_slice %548 {offsets = [0, 0, 24], sizes = [2, 8, 8], strides = [1, 1, 1]} : vector<2x8x32xf32> to vector<2x8x8xf32>
    "tpu.trace_start"() <{level = 10 : i32, message = "bqd,bkd->bqk"}> : () -> ()
    %cst_162 = arith.constant dense<0.000000e+00> : vector<2x1x8xf32>
    %594 = tpu.matmul %592, %593, %cst_162 {dimension_numbers = #tpu.dot_dimension_numbers<[2], [2], [1], [1], [0, 0, 0, 1, 1, 1], [0], [0]>} : vector<2x1x8xf32>, vector<2x8x8xf32>, vector<2x1x8xf32> -> vector<2x1x8xf32>
    "tpu.trace_stop"() : () -> ()
    %cst_163 = arith.constant dense<0xFF800000> : vector<2x1xf32>
    %595 = vector.multi_reduction <maximumf>, %594, %cst_163 [2] : vector<2x1x8xf32> to vector<2x1xf32>
    %596 = vector.shape_cast %595 : vector<2x1xf32> to vector<2x1x1xf32>
    %597 = vector.broadcast %596 : vector<2x1x1xf32> to vector<2x1x8xf32>
    %598 = arith.subf %594, %597 : vector<2x1x8xf32>
    %599 = math.exp %598 : vector<2x1x8xf32>
    %cst_164 = arith.constant dense<0.000000e+00> : vector<2x1xf32>
    %600 = vector.multi_reduction <add>, %599, %cst_164 [2] : vector<2x1x8xf32> to vector<2x1xf32>
    %601 = vector.shape_cast %600 : vector<2x1xf32> to vector<2x1x1xf32>
    %602 = vector.broadcast %601 : vector<2x1x1xf32> to vector<2x1x8xf32>
    %603 = arith.divf %599, %602 : vector<2x1x8xf32>
    %604 = vector.extract_strided_slice %549 {offsets = [0, 0, 24], sizes = [2, 8, 8], strides = [1, 1, 1]} : vector<2x8x32xf32> to vector<2x8x8xf32>
    "tpu.trace_start"() <{level = 10 : i32, message = "bqk,bkd->bqd"}> : () -> ()
    %cst_165 = arith.constant dense<0.000000e+00> : vector<2x1x8xf32>
    %605 = tpu.matmul %603, %604, %cst_165 {dimension_numbers = #tpu.dot_dimension_numbers<[2], [1], [1], [2], [0, 0, 0, 1, 1, 2], [0], [0]>} : vector<2x1x8xf32>, vector<2x8x8xf32>, vector<2x1x8xf32> -> vector<2x1x8xf32>
    "tpu.trace_stop"() : () -> ()
    %606 = tpu.concatenate %563, %577, %591, %605 in 2 : vector<2x1x8xf32>, vector<2x1x8xf32>, vector<2x1x8xf32>, vector<2x1x8xf32> -> vector<2x1x32xf32>
    %607 = vector.shape_cast %606 : vector<2x1x32xf32> to vector<2x32xf32>
    %cst_166 = arith.constant dense<0.000000e+00> : vector<2x32xf32>
    %608 = tpu.matmul %607, %486, %cst_166 {dimension_numbers = #tpu.dot_dimension_numbers<[1], [0], [0], [1], [0, 0, 1, 1], [], []>} : vector<2x32xf32>, vector<32x32xf32>, vector<2x32xf32> -> vector<2x32xf32>
    %609 = vector.broadcast %491 : vector<1x32xf32> to vector<2x32xf32>
    %610 = arith.addf %608, %609 : vector<2x32xf32>
    %cst_167 = arith.constant dense<0.000000e+00> : vector<2xf32>
    %611 = vector.multi_reduction <add>, %610, %cst_167 [1] : vector<2x32xf32> to vector<2xf32>
    %612 = vector.shape_cast %611 : vector<2xf32> to vector<2x1xf32>
    %cst_168 = arith.constant 3.200000e+01 : f32
    %613 = vector.broadcast %cst_168 : f32 to vector<2x1xf32>
    %614 = arith.divf %612, %613 : vector<2x1xf32>
    %615 = vector.broadcast %614 : vector<2x1xf32> to vector<2x32xf32>
    %616 = arith.subf %610, %615 : vector<2x32xf32>
    %617 = arith.mulf %616, %616 : vector<2x32xf32>
    %cst_169 = arith.constant dense<0.000000e+00> : vector<2xf32>
    %618 = vector.multi_reduction <add>, %617, %cst_169 [1] : vector<2x32xf32> to vector<2xf32>
    %619 = vector.shape_cast %618 : vector<2xf32> to vector<2x1xf32>
    %cst_170 = arith.constant 3.200000e+01 : f32
    %620 = vector.broadcast %cst_170 : f32 to vector<2x1xf32>
    %621 = arith.divf %619, %620 : vector<2x1xf32>
    %622 = vector.broadcast %614 : vector<2x1xf32> to vector<2x32xf32>
    %623 = arith.subf %610, %622 : vector<2x32xf32>
    %cst_171 = arith.constant 9.99999974E-6 : f32
    %624 = vector.broadcast %cst_171 : f32 to vector<2x1xf32>
    %625 = arith.addf %621, %624 : vector<2x1xf32>
    %626 = math.rsqrt %625 : vector<2x1xf32>
    %627 = vector.broadcast %626 : vector<2x1xf32> to vector<2x32xf32>
    %628 = arith.mulf %623, %627 : vector<2x32xf32>
    %629 = vector.broadcast %492 : vector<1x32xf32> to vector<2x32xf32>
    %630 = arith.mulf %628, %629 : vector<2x32xf32>
    %631 = vector.broadcast %493 : vector<1x32xf32> to vector<2x32xf32>
    %632 = arith.addf %630, %631 : vector<2x32xf32>
    %633 = arith.addf %516, %632 : vector<2x32xf32>
    %cst_172 = arith.constant dense<0.000000e+00> : vector<2x32xf32>
    %634 = tpu.matmul %633, %487, %cst_172 {dimension_numbers = #tpu.dot_dimension_numbers<[1], [0], [0], [1], [0, 0, 1, 1], [], []>} : vector<2x32xf32>, vector<32x32xf32>, vector<2x32xf32> -> vector<2x32xf32>
    %635 = vector.broadcast %494 : vector<1x32xf32> to vector<2x32xf32>
    %636 = arith.addf %634, %635 : vector<2x32xf32>
    %cst_173 = arith.constant 5.000000e-01 : f32
    %637 = vector.broadcast %cst_173 : f32 to vector<2x32xf32>
    %638 = arith.mulf %637, %636 : vector<2x32xf32>
    %cst_174 = arith.constant 0.707106769 : f32
    %639 = vector.broadcast %cst_174 : f32 to vector<2x32xf32>
    %640 = arith.mulf %636, %639 : vector<2x32xf32>
    %641 = math.erf %640 : vector<2x32xf32>
    %cst_175 = arith.constant 1.000000e+00 : f32
    %642 = vector.broadcast %cst_175 : f32 to vector<2x32xf32>
    %643 = arith.addf %642, %641 : vector<2x32xf32>
    %644 = arith.mulf %638, %643 : vector<2x32xf32>
    %645 = arith.addf %633, %644 : vector<2x32xf32>
    %c0_176 = arith.constant 0 : index
    %c0_177 = arith.constant 0 : index
    %646 = vector.load %arg14[%c0_176, %c0_177] : memref<32x3xf32, #tpu.memory_space<vmem>>, vector<32x3xf32>
    %c0_178 = arith.constant 0 : index
    %c0_179 = arith.constant 0 : index
    %647 = vector.load %arg15[%c0_178, %c0_179] : memref<1x3xf32, #tpu.memory_space<vmem>>, vector<1x3xf32>
    %648 = vector.extract_strided_slice %646 {offsets = [0, 0], sizes = [32, 1], strides = [1, 1]} : vector<32x3xf32> to vector<32x1xf32>
    %cst_180 = arith.constant dense<0.000000e+00> : vector<2x1xf32>
    %649 = tpu.matmul %645, %648, %cst_180 {dimension_numbers = #tpu.dot_dimension_numbers<[1], [0], [0], [1], [0, 0, 1, 1], [], []>} : vector<2x32xf32>, vector<32x1xf32>, vector<2x1xf32> -> vector<2x1xf32>
    %650 = vector.extract_strided_slice %647 {offsets = [0, 0], sizes = [1, 1], strides = [1, 1]} : vector<1x3xf32> to vector<1x1xf32>
    %651 = vector.broadcast %650 : vector<1x1xf32> to vector<2x1xf32>
    %652 = arith.addf %649, %651 : vector<2x1xf32>
    %653 = arith.negf %652 : vector<2x1xf32>
    %654 = math.exp %653 : vector<2x1xf32>
    %cst_181 = arith.constant 1.000000e+00 : f32
    %655 = vector.broadcast %cst_181 : f32 to vector<2x1xf32>
    %656 = arith.addf %655, %654 : vector<2x1xf32>
    %657 = arith.divf %655, %656 : vector<2x1xf32>
    %c0_182 = arith.constant 0 : index
    %c0_183 = arith.constant 0 : index
    %658 = vector.load %arg16[%c0_182, %c0_183] : memref<2x1xf32, #tpu.memory_space<vmem>>, vector<2x1xf32>
    tpu.vector_store %arg16[%c0_182, %c0_183], %657 {strides = array<i32>} : memref<2x1xf32, #tpu.memory_space<vmem>>, vector<2x1xf32>,
    %659 = vector.extract_strided_slice %646 {offsets = [0, 1], sizes = [32, 1], strides = [1, 1]} : vector<32x3xf32> to vector<32x1xf32>
    %cst_184 = arith.constant dense<0.000000e+00> : vector<16x1xf32>
    %660 = tpu.matmul %483, %659, %cst_184 {dimension_numbers = #tpu.dot_dimension_numbers<[1], [0], [0], [1], [0, 0, 1, 1], [], []>} : vector<16x32xf32>, vector<32x1xf32>, vector<16x1xf32> -> vector<16x1xf32>
    %661 = vector.extract_strided_slice %647 {offsets = [0, 1], sizes = [1, 1], strides = [1, 1]} : vector<1x3xf32> to vector<1x1xf32>
    %662 = vector.broadcast %661 : vector<1x1xf32> to vector<16x1xf32>
    %663 = arith.addf %660, %662 : vector<16x1xf32>
    %664 = arith.negf %663 : vector<16x1xf32>
    %665 = math.exp %664 : vector<16x1xf32>
    %cst_185 = arith.constant 1.000000e+00 : f32
    %666 = vector.broadcast %cst_185 : f32 to vector<16x1xf32>
    %667 = arith.addf %666, %665 : vector<16x1xf32>
    %668 = arith.divf %666, %667 : vector<16x1xf32>
    %c0_186 = arith.constant 0 : index
    %c0_187 = arith.constant 0 : index
    %669 = vector.load %arg17[%c0_186, %c0_187] : memref<16x1xf32, #tpu.memory_space<vmem>>, vector<16x1xf32>
    tpu.vector_store %arg17[%c0_186, %c0_187], %668 {strides = array<i32>} : memref<16x1xf32, #tpu.memory_space<vmem>>, vector<16x1xf32>,
    %670 = vector.extract_strided_slice %646 {offsets = [0, 2], sizes = [32, 1], strides = [1, 1]} : vector<32x3xf32> to vector<32x1xf32>
    %cst_188 = arith.constant dense<0.000000e+00> : vector<16x1xf32>
    %671 = tpu.matmul %45, %670, %cst_188 {dimension_numbers = #tpu.dot_dimension_numbers<[1], [0], [0], [1], [0, 0, 1, 1], [], []>} : vector<16x32xf32>, vector<32x1xf32>, vector<16x1xf32> -> vector<16x1xf32>
    %672 = vector.extract_strided_slice %647 {offsets = [0, 2], sizes = [1, 1], strides = [1, 1]} : vector<1x3xf32> to vector<1x1xf32>
    %673 = vector.broadcast %672 : vector<1x1xf32> to vector<16x1xf32>
    %674 = arith.addf %671, %673 : vector<16x1xf32>
    %675 = arith.negf %674 : vector<16x1xf32>
    %676 = math.exp %675 : vector<16x1xf32>
    %cst_189 = arith.constant 1.000000e+00 : f32
    %677 = vector.broadcast %cst_189 : f32 to vector<16x1xf32>
    %678 = arith.addf %677, %676 : vector<16x1xf32>
    %679 = arith.divf %677, %678 : vector<16x1xf32>
    %c0_190 = arith.constant 0 : index
    %c0_191 = arith.constant 0 : index
    %680 = vector.load %arg18[%c0_190, %c0_191] : memref<16x1xf32, #tpu.memory_space<vmem>>, vector<16x1xf32>
    tpu.vector_store %arg18[%c0_190, %c0_191], %679 {strides = array<i32>} : memref<16x1xf32, #tpu.memory_space<vmem>>, vector<16x1xf32>,
    return
  }
  func.func @transform_0(%arg0: i32) -> (i32, i32) {
    %c0_i32 = arith.constant 0 : i32
    %c0_i32_0 = arith.constant 0 : i32
    return %arg0, %c0_i32 : i32, i32
  }
  func.func @transform_1(%arg0: i32) -> (i32, i32) {
    %c0_i32 = arith.constant 0 : i32
    %c0_i32_0 = arith.constant 0 : i32
    return %arg0, %c0_i32 : i32, i32
  }
  func.func @transform_2(%arg0: i32) -> (i32, i32) {
    %c0_i32 = arith.constant 0 : i32
    %c0_i32_0 = arith.constant 0 : i32
    return %arg0, %c0_i32 : i32, i32
  }
  func.func @transform_3(%arg0: i32) -> (i32, i32) {
    %c0_i32 = arith.constant 0 : i32
    %c0_i32_0 = arith.constant 0 : i32
    %c0_i32_1 = arith.constant 0 : i32
    return %c0_i32, %c0_i32_0 : i32, i32
  }
  func.func @transform_4(%arg0: i32) -> (i32, i32) {
    %c0_i32 = arith.constant 0 : i32
    %c0_i32_0 = arith.constant 0 : i32
    %c0_i32_1 = arith.constant 0 : i32
    return %c0_i32, %c0_i32_0 : i32, i32
  }
  func.func @transform_5(%arg0: i32) -> (i32, i32) {
    %c0_i32 = arith.constant 0 : i32
    %c0_i32_0 = arith.constant 0 : i32
    %c0_i32_1 = arith.constant 0 : i32
    return %c0_i32, %c0_i32_0 : i32, i32
  }
  func.func @transform_6(%arg0: i32) -> (i32, i32) {
    %c0_i32 = arith.constant 0 : i32
    %c0_i32_0 = arith.constant 0 : i32
    %c0_i32_1 = arith.constant 0 : i32
    return %c0_i32, %c0_i32_0 : i32, i32
  }
  func.func @transform_7(%arg0: i32) -> (i32, i32) {
    %c0_i32 = arith.constant 0 : i32
    %c0_i32_0 = arith.constant 0 : i32
    %c0_i32_1 = arith.constant 0 : i32
    return %c0_i32, %c0_i32_0 : i32, i32
  }
  func.func @transform_8(%arg0: i32) -> (i32, i32) {
    %c0_i32 = arith.constant 0 : i32
    %c0_i32_0 = arith.constant 0 : i32
    %c0_i32_1 = arith.constant 0 : i32
    return %c0_i32, %c0_i32_0 : i32, i32
  }
  func.func @transform_9(%arg0: i32) -> (i32, i32) {
    %c0_i32 = arith.constant 0 : i32
    %c0_i32_0 = arith.constant 0 : i32
    %c0_i32_1 = arith.constant 0 : i32
    return %c0_i32, %c0_i32_0 : i32, i32
  }
  func.func @transform_10(%arg0: i32) -> (i32, i32) {
    %c0_i32 = arith.constant 0 : i32
    %c0_i32_0 = arith.constant 0 : i32
    %c0_i32_1 = arith.constant 0 : i32
    return %c0_i32, %c0_i32_0 : i32, i32
  }
  func.func @transform_11(%arg0: i32) -> (i32, i32) {
    %c0_i32 = arith.constant 0 : i32
    %c0_i32_0 = arith.constant 0 : i32
    %c0_i32_1 = arith.constant 0 : i32
    return %c0_i32, %c0_i32_0 : i32, i32
  }
  func.func @transform_12(%arg0: i32) -> (i32, i32) {
    %c0_i32 = arith.constant 0 : i32
    %c0_i32_0 = arith.constant 0 : i32
    %c0_i32_1 = arith.constant 0 : i32
    return %c0_i32, %c0_i32_0 : i32, i32
  }
  func.func @transform_13(%arg0: i32) -> (i32, i32) {
    %c0_i32 = arith.constant 0 : i32
    %c0_i32_0 = arith.constant 0 : i32
    %c0_i32_1 = arith.constant 0 : i32
    return %c0_i32, %c0_i32_0 : i32, i32
  }
  func.func @transform_14(%arg0: i32) -> (i32, i32) {
    %c0_i32 = arith.constant 0 : i32
    %c0_i32_0 = arith.constant 0 : i32
    %c0_i32_1 = arith.constant 0 : i32
    return %c0_i32, %c0_i32_0 : i32, i32
  }
  func.func @transform_15(%arg0: i32) -> (i32, i32) {
    %c0_i32 = arith.constant 0 : i32
    %c0_i32_0 = arith.constant 0 : i32
    return %arg0, %c0_i32 : i32, i32
  }
  func.func @transform_16(%arg0: i32) -> (i32, i32) {
    %c0_i32 = arith.constant 0 : i32
    %c0_i32_0 = arith.constant 0 : i32
    return %arg0, %c0_i32 : i32, i32
  }
  func.func @transform_17(%arg0: i32) -> (i32, i32) {
    %c0_i32 = arith.constant 0 : i32
    %c0_i32_0 = arith.constant 0 : i32
    return %arg0, %c0_i32 : i32, i32
  }
}

</mosaic_0001>

<bundles_post_ra>
// kernel: model_forward.1
= control target key start
LH: loop header
LB: loop body
LE: loop exit
PB: predicated region body
PF: predicated region fallthrough
CT: control target
= control target key end

     0   :  { %vm214_vm0 = vcmask 1045504   ;;  %vm207_vm1 = vcmask 48128   ;;  %vm407_vm2 = vcmask 261120   ;;  %vm118_vm3 = vcmask 1043456   ;;  %s8955_s20 = smov 88   ;;  %s8956_s21 = smov 120   ;;  %s10217_s5 = inlined_call_operand.vmem [shape: f32[6,32], index: 5, kind: input, shape index: {}]   ;;  %s10218_s1 = inlined_call_operand.vmem [shape: f32[16,6], index: 1, kind: input, shape index: {}]   ;;  %s10219_s6 = inlined_call_operand.vmem [shape: f32[1,32], index: 6, kind: input, shape index: {}]   ;;  %s10220_s9 = inlined_call_operand.vmem [shape: f32[128,96], index: 9, kind: input, shape index: {}]   ;;  %s10221_s3 = inlined_call_operand.vmem [shape: f32[4,32], index: 3, kind: input, shape index: {}]   ;;  %s10222_s0 = inlined_call_operand.vmem [shape: f32[2,4], index: 0, kind: input, shape index: {}]   ;;  %s10223_s7 = inlined_call_operand.vmem [shape: f32[6,32], index: 7, kind: input, shape index: {}]   ;;  %s10224_s2 = inlined_call_operand.vmem [shape: f32[16,6], index: 2, kind: input, shape index: {}]   ;;  %s10225_s10 = inlined_call_operand.vmem [shape: f32[4,96], index: 10, kind: input, shape index: {}]   ;;  %s10226_s11 = inlined_call_operand.vmem [shape: f32[256,32], index: 11, kind: input, shape index: {}]   ;;  %s10227_s12 = inlined_call_operand.vmem [shape: f32[24,32], index: 12, kind: input, shape index: {}]   ;;  %s10228_s4 = inlined_call_operand.vmem [shape: f32[1,32], index: 4, kind: input, shape index: {}]   ;;  %s10229_s13 = inlined_call_operand.vmem [shape: f32[32,3], index: 13, kind: input, shape index: {}]   ;;  %s10230_s14 = inlined_call_operand.vmem [shape: f32[1,3], index: 14, kind: input, shape index: {}]   ;;  %s10231_s8 = inlined_call_operand.vmem [shape: f32[1,32], index: 8, kind: input, shape index: {}]   ;;  %s10232_s16 = inlined_call_operand.vmem [shape: f32[16,1], index: 16, kind: output, shape index: {1}]   ;;  %s10233_s15 = inlined_call_operand.vmem [shape: f32[2,1], index: 15, kind: output, shape index: {0}]   ;;  %s10234_s17 = inlined_call_operand.vmem [shape: f32[16,1], index: 17, kind: output, shape index: {2}]  }
   0x1   :  { %10238 = sst [smem:[#allocation2_spill]] %s10217_s5  ;;  %v7679_v3 = vld [vmem:[%s10219_s6] ss:$0 sm:$0xff]  ;;  %v54_v31 = vld [vmem:[%s10220_s9 + $0x8] sm:$0xff]  ;;  %v55_v32 = vld [vmem:[%s10220_s9 + $0x10] sm:$0xff]  ;;  %vm114_vm4 = vcmask 31744   ;;  %v435_v52 = vlaneseq }
   0x2   :  { %10239 = sst [smem:[#allocation3_spill]] %s10218_s1  ;;  %s10240_s26 = sld [smem:[#allocation2_spill]]  ;;  %v53_v30 = vld [vmem:[%s10220_s9] sm:$0xff]  ;;  %v56_v34 = vld [vmem:[%s10220_s9 + $0x18] sm:$0xff]  ;;  %v8951_v46 = vmov 0.0   ;;  %vm8952_vm5 = vmmov 0  }
   0x3   :  { %s10241_s29 = sld [smem:[#allocation3_spill]]  ;;  %v8569_v33 = vpack.c.bf16 %v54_v31, %v53_v30  ;;  %v8573_v35 = vpack.c.bf16 %v56_v34, %v55_v32  ;;  %8047 = vmatprep.subr.mxu0 %v8951_v46  ;;  %v106_v47 = vld [vmem:[%s10221_s3] sm:$0xf]  ;;  %8049 = vmatprep.mubr.msk.f32.mxu0 %vm8952_vm5, %v8951_v46  ;;  %v304_v51 = vld [vmem:[%s10224_s2 + $0x8] sm:$0xff]  ;;  %v9129_v53 = vshrl.u32 %v435_v52, 7  ;;  %vm535_vm6 = vcmask 64512  }
   0x4   :  { %v105_v48 = vld [vmem:[%s10222_s0] sm:$0x3]  ;;  %8048 = vmatpush3.msk.msra.mxu0 %vm118_vm3, %v106_v47  ;;  %s8954_s1 = smov 64   ;;  %s8957_s22 = smov 56   ;;  %vm1880_vm7 = vcmask 195584   ;;  %vm1877_vm8 = vcmask 130048  }
   0x5   :  { %v305_v49 = vld [vmem:[%s10223_s7] sm:$0x3f]  ;;  %8050 = vmatmul.mubr.msk.f32.vlgmr.msra.gmra.mrb[0].mxu0 %vm114_vm4, %v105_v48  ;;  %v9137_v55 = vsub.s32 0, %v9129_v53  ;;  %s8958_s23 = smov 80   ;;  %s8959_s24 = smov 112   ;;  %vm2105_vm9 = vcmask 254976  }
   0x6   :  { %v303_v50 = vld [vmem:[%s10224_s2] sm:$0xff]  ;;  %8057 = vmatprep.subr.msk.mxu0 %vm214_vm0, %v305_v49  ;;  %s8953_s2 = smov 96   ;;  %s8960_s25 = smov 48   ;;  %vm2506_vm10 = vcmask 57344   ;;  %vm3716_vm11 = vcmask 1041409   ;;  %vm7551_vm12 = vcmask 7168  }
   0x7   :  { %8058 = vmatpush3.msk.msra.mxu0 %vm214_vm0, %v305_v49  ;;  %8059 = vmatprep.mubr.msk.f32.mxu0 %vm207_vm1, %v303_v50  ;;  %v9134_v54 = vld [vmem:[%s10225_s10] sm:$0xf]  ;;  %s8962_s27 = smov 104   ;;  %s10236_s28 = smov 40   ;;  %vm7437_vm13 = vcmask 1024  }
   0x8   :  { %v199_v0 = vld [vmem:[%s10240_s26] sm:$0x3f]  ;;  %8073 = vmatprep.subr.mxu0 %v8951_v46  ;;  %v450_v56 = vrot.slane %v9134_v54, %v9137_v55  ;;  %s8961_s26 = smov 72   ;;  %s8965_s5 = smov 16  }
   0x9   :  { %v197_v1 = vld [vmem:[%s10241_s29] sm:$0xff]  ;;  %v198_v2 = vld [vmem:[%s10241_s29 + $0x8] sm:$0xff]  ;;  %8052 = vmatprep.subr.msk.mxu1 %vm214_vm0, %v199_v0  ;;  %8060 = vmatmul.mubr.msk.f32.vlgmr.msra.gmra.mrb[2].mxu0 %vm207_vm1, %v304_v51  ;;  %s8964_s29 = smov 8   ;;  %s8966_s30 = smov 24  }
   0xa   :  { %8054 = vmatprep.mubr.msk.f32.mxu1 %vm207_vm1, %v197_v1  ;;  %8053 = vmatpush3.msk.msra.mxu1 %vm214_vm0, %v199_v0 }
   0xb   :  { %8055 = vmatmul.mubr.msk.f32.vlgmr.msra.gmra.mrb[0].mxu1 %vm207_vm1, %v198_v2  ;;  %8570 = vmatprep.subr.bf16.mxu1 %v8569_v33 }
   0xc   :  { %8572 = vmatpush3.bf16.msra.mxu1 %v8569_v33  ;;  %8075 = vmatprep.mubr.msk.f32.mxu0 %vm8952_vm5, %v8951_v46 }
   0xd   :  { %8574 = vmatprep.subr.bf16.mxu1 %v8573_v35 }
  0x10   :  { %8576 = vmatpush3.bf16.msra.mxu1 %v8573_v35 }
  0x11   :  { %8083 = vmatprep.subr.mxu1 %v8951_v46 }
  0xd8   :  { %v9149_v61 = vpop.f32.mrb[0].mxu0 }
  0xd9   :  { %v8051_v62 = vpop.f32.mrb[1].mxu0 }
  0xdc   :  { %v9151_v63 = vpop.f32.mrb[2].mxu0 }
  0xdd   :  { %v9153_v0 = vpop.f32.mrb[3].mxu0 }
  0xde   :  { %v8056_v4 = vpop.f32.mrb[0].mxu1 }
  0xdf   :  { %v290_v5 = vadd.f32 %v8056_v4, %v7679_v3  ;;  %v284_v6 = vpop.f32.mrb[1].mxu1 }
  0xe0   :  { %v285_v7 = vadd.f32 %v7679_v3, %v284_v6 }
  0xe1   :  { %v296_v8 = vmul.f32 0.70710677, %v290_v5  ;;  %v294_v15 = vmul.f32 0.5, %v290_v5 }
  0xe2   :  { %v295_v9 = vmul.f32 0.70710677, %v285_v7  ;;  %v293_v12 = vmul.f32 0.5, %v285_v7 }
  0xe3   :  { %8751 = verf.f32 %v296_v8 }
  0xe4   :  { %8753 = verf.f32 %v295_v9 }
  0xed   :  { %v8752_v10 = vpop.eup %8751 }
  0xee   :  { %v8754_v11 = vpop.eup %8753  ;;  %v300_v14 = vadd.f32 1.0, %v8752_v10 }
  0xef   :  { %v299_v13 = vadd.f32 1.0, %v8754_v11 }
  0xf0   :  { %v302_v18 = vmul.f32 %v300_v14, %v294_v15 }
  0xf1   :  { %v301_v16 = vmul.f32 %v299_v13, %v293_v12 }
  0xf2   :  { %v411_v19 = vsel %vm407_vm2, %v302_v18, 0.0 }
  0xf3   :  { %v408_v17 = vsel %vm407_vm2, %v301_v16, 0.0 }
  0xf4   :  { %409 = vadd.xlane.f32.xlu0 %v408_v17 }
  0xf8   :  { %412 = vadd.xlane.f32.xlu0 %v411_v19 }
 0x181   :  { %v410_v20 = vpop.xlane.xlu0 %409 }
 0x182   :  { %v415_v21 = vmul.f32 0.03125, %v410_v20 }
 0x184   :  { %v417_v22 = vsub.f32 %v301_v16, %v415_v21 }
 0x185   :  { %v413_v23 = vpop.xlane.xlu0 %412 }
 0x186   :  { %v416_v24 = vmul.f32 0.03125, %v413_v23  ;;  %v419_v25 = vmul.f32 %v417_v22, %v417_v22 }
 0x188   :  { %v418_v26 = vsub.f32 %v302_v18, %v416_v24  ;;  %v421_v27 = vsel %vm407_vm2, %v419_v25, 0.0 }
 0x189   :  { %422 = vadd.xlane.f32.xlu1 %v421_v27 }
 0x18a   :  { %v420_v28 = vmul.f32 %v418_v26, %v418_v26 }
 0x18c   :  { %v424_v29 = vsel %vm407_vm2, %v420_v28, 0.0 }
 0x18d   :  { %425 = vadd.xlane.f32.xlu1 %v424_v29 }
 0x216   :  { %v423_v36 = vpop.xlane.xlu1 %422 }
 0x217   :  { %v427_v37 = vmul.f32 0.03125, %v423_v36 }
 0x219   :  { %v429_v38 = vadd.f32 1e-05, %v427_v37 }
 0x21a   :  { %v426_v39 = vpop.xlane.xlu1 %425 }
 0x21b   :  { %8755 = vrsqrt.f32 %v429_v38  ;;  %v428_v40 = vmul.f32 0.03125, %v426_v39 }
 0x21d   :  { %v430_v41 = vadd.f32 1e-05, %v428_v40 }
 0x21f   :  { %8757 = vrsqrt.f32 %v430_v41 }
 0x225   :  { %v8756_v42 = vpop.eup %8755 }
 0x226   :  { %v9093_v43 = vmul.f32 %v8756_v42, %v417_v22 }
 0x228   :  { %8070 = vmatprep.mubr.msk.f32.mxu1 %vm407_vm2, %v9093_v43 }
 0x229   :  { %v8758_v44 = vpop.eup %8757 }
 0x22a   :  { %v9097_v45 = vmul.f32 %v8758_v44, %v418_v26 }
 0x22c   :  { %8071 = vmatmul.mubr.msk.f32.vlgmr.msra.gmra.mrb[2].mxu1 %vm407_vm2, %v9097_v45 }
 0x22d   :  { %8085 = vmatprep.mubr.msk.f32.mxu1 %vm8952_vm5, %v8951_v46 }
 0x2ff   :  { %v8072_v57 = vpop.f32.mrb[2].mxu1 }
 0x300   :  { %v9141_v58 = vadd.f32 %v8072_v57, %v450_v56  ;;  %v523_v59 = vpop.f32.mrb[3].mxu1 }
 0x301   :  { %v9143_v60 = vadd.f32 %v523_v59, %v450_v56 }
 0x302   :  { %611 = vrot.lane.b32.xlu1 %v9141_v58, %s8953_s2 }
 0x303   :  { %533 = vrot.lane.b32.xlu0 %v9143_v60, %s8953_s2 }
 0x374   :  { %v612_v2 = vpop.permute.xlu1 %611 }
 0x375   :  { %v534_v1 = vpop.permute.xlu0 %533 }
 0x376   :  { %8074 = vmatpush3.xpose.msk.msra.mxu0 %vm535_vm6, %v534_v1 }
 0x377   :  { %8078 = vmatprep.subr.mxu0 %v8951_v46 }
 0x379   :  { %8076 = vmatmul.mubr.msk.f32.vlgmr.msra.gmra.mrb[4].mxu0 %vm535_vm6, %v9143_v60 }
 0x37a   :  { %8079 = vmatpush3.xpose.msk.msra.mxu0 %vm535_vm6, %v612_v2  ;;  %8080 = vmatprep.mubr.msk.f32.mxu0 %vm8952_vm5, %v8951_v46 }
 0x37b   :  { %8088 = vmatprep.subr.mxu0 %v8951_v46 }
 0x37d   :  { %8081 = vmatmul.mubr.msk.f32.vlgmr.msra.gmra.mrb[6].mxu0 %vm535_vm6, %v9141_v58 }
 0x37e   :  { %8090 = vmatprep.mubr.msk.f32.mxu0 %vm8952_vm5, %v8951_v46 }
 0x44c   :  { %v606_v3 = vpop.f32.mrb[4].mxu0 }
 0x44d   :  { %v8077_v4 = vpop.f32.mrb[5].mxu0  ;;  %v687_v5 = vsel %vm535_vm6, %v606_v3, -inf }
 0x44e   :  { %688 = vmax.xlane.f32.xlu1 %v687_v5 }
 0x450   :  { %v683_v6 = vpop.f32.mrb[6].mxu0 }
 0x451   :  { %v8082_v7 = vpop.f32.mrb[7].mxu0  ;;  %v690_v8 = vsel %vm535_vm6, %v683_v6, -inf }
 0x452   :  { %691 = vmax.xlane.f32.xlu0 %v690_v8 }
 0x45f   :  { %785 = vrot.lane.b32.xlu1 %v9141_v58, %s8954_s1 }
 0x463   :  { %863 = vrot.lane.b32.xlu1 %v9143_v60, %s8955_s20 }
 0x467   :  { %941 = vrot.lane.b32.xlu1 %v9141_v58, %s8955_s20 }
 0x468   :  { %709 = vrot.lane.b32.xlu0 %v9143_v60, %s8954_s1 }
 0x4db   :  { %v689_v9 = vpop.xlane.xlu1 %688 }
 0x4dc   :  { %v693_v10 = vsub.f32 %v606_v3, %v689_v9 }
 0x4de   :  { %v695_v11 = vmul.f32 1.442695, %v693_v10 }
 0x4df   :  { %v786_v12 = vpop.permute.xlu1 %785  ;;  %v692_v13 = vpop.xlane.xlu0 %691 }
 0x4e0   :  { %8759 = vpow2.f32 %v695_v11  ;;  %v694_v14 = vsub.f32 %v683_v6, %v692_v13  ;;  %8089 = vmatpush3.msra.mxu0 %v786_v12 }
 0x4e1   :  { %8098 = vmatprep.subr.mxu0 %v8951_v46 }
 0x4e2   :  { %v697_v15 = vmul.f32 1.442695, %v694_v14 }
 0x4e3   :  { %v710_v16 = vpop.permute.xlu0 %709  ;;  %v864_v21 = vpop.permute.xlu1 %863 }
 0x4e4   :  { %8761 = vpow2.f32 %v697_v15  ;;  %8084 = vmatpush3.msra.mxu1 %v710_v16 }
 0x4e5   :  { %8093 = vmatprep.subr.mxu1 %v8951_v46 }
 0x4e7   :  { %v942_v22 = vpop.permute.xlu1 %941 }
 0x4ea   :  { %v8760_v17 = vpop.eup %8759 }
 0x4eb   :  { %v699_v18 = vsel %vm535_vm6, %v8760_v17, 0.0 }
 0x4ec   :  { %700 = vadd.xlane.f32.xlu0 %v699_v18 }
 0x4ee   :  { %v8762_v19 = vpop.eup %8761 }
 0x4ef   :  { %v702_v20 = vsel %vm535_vm6, %v8762_v19, 0.0 }
 0x4f0   :  { %703 = vadd.xlane.f32.xlu1 %v702_v20 }
 0x501   :  { %939 = vrot.lane.b32.xlu1 %v9141_v58, %s8956_s21 }
 0x502   :  { %861 = vrot.lane.b32.xlu0 %v9143_v60, %s8956_s21 }
 0x579   :  { %v701_v23 = vpop.xlane.xlu0 %700 }
 0x57a   :  { %8763 = vrcp.f32 %v701_v23 }
 0x57d   :  { %v704_v24 = vpop.xlane.xlu1 %703  ;;  %v862_v29 = vpop.permute.xlu0 %861 }
 0x57e   :  { %8765 = vrcp.f32 %v704_v24 }
 0x581   :  { %v940_v30 = vpop.permute.xlu1 %939 }
 0x584   :  { %v8764_v25 = vpop.eup %8763 }
 0x585   :  { %v706_v26 = vmul.f32 %v8764_v25, %v8760_v17 }
 0x587   :  { %8086 = vmatmul.mubr.msk.f32.vlgmr.msra.gmra.mrb[4].mxu1 %vm535_vm6, %v706_v26 }
 0x588   :  { %v8766_v27 = vpop.eup %8765  ;;  %8094 = vmatpush3.xpose.msk.msra.mxu1 %vm535_vm6, %v864_v21  ;;  %8095 = vmatprep.mubr.msk.f32.mxu1 %vm8952_vm5, %v8951_v46 }
 0x589   :  { %v708_v28 = vmul.f32 %v8766_v27, %v8762_v19  ;;  %8103 = vmatprep.subr.mxu1 %v8951_v46 }
 0x58b   :  { %8091 = vmatmul.mubr.msk.f32.vlgmr.msra.gmra.mrb[8].mxu0 %vm535_vm6, %v708_v28  ;;  %8096 = vmatmul.mubr.msk.f32.vlgmr.msra.gmra.mrb[6].mxu1 %vm535_vm6, %v862_v29 }
 0x58c   :  { %8099 = vmatpush3.xpose.msk.msra.mxu0 %vm535_vm6, %v942_v22  ;;  %8100 = vmatprep.mubr.msk.f32.mxu0 %vm8952_vm5, %v8951_v46 }
 0x58d   :  { %8108 = vmatprep.subr.mxu0 %v8951_v46  ;;  %8105 = vmatprep.mubr.msk.f32.mxu1 %vm8952_vm5, %v8951_v46 }
 0x58f   :  { %8101 = vmatmul.mubr.msk.f32.vlgmr.msra.gmra.mrb[10].mxu0 %vm535_vm6, %v940_v30 }
 0x590   :  { %8110 = vmatprep.mubr.msk.f32.mxu0 %vm8952_vm5, %v8951_v46 }
 0x65a   :  { %v9201_v31 = vpop.f32.mrb[4].mxu1 }
 0x65b   :  { %v8087_v32 = vpop.f32.mrb[5].mxu1 }
 0x65e   :  { %v9203_v33 = vpop.f32.mrb[8].mxu0  ;;  %v935_v34 = vpop.f32.mrb[6].mxu1 }
 0x65f   :  { %v8092_v35 = vpop.f32.mrb[9].mxu0  ;;  %v8097_v36 = vpop.f32.mrb[7].mxu1  ;;  %v1017_v37 = vsel %vm535_vm6, %v935_v34, -inf }
 0x660   :  { %1018 = vmax.xlane.f32.xlu0 %v1017_v37 }
 0x662   :  { %v1013_v38 = vpop.f32.mrb[10].mxu0 }
 0x663   :  { %v8102_v39 = vpop.f32.mrb[11].mxu0  ;;  %v1020_v40 = vsel %vm535_vm6, %v1013_v38, -inf }
 0x664   :  { %1021 = vmax.xlane.f32.xlu1 %v1020_v40 }
 0x675   :  { %1115 = vrot.lane.b32.xlu1 %v9141_v58, %s8957_s22 }
 0x676   :  { %1039 = vrot.lane.b32.xlu0 %v9143_v60, %s8957_s22 }
 0x679   :  { %1193 = vrot.lane.b32.xlu1 %v9143_v60, %s8958_s23 }
 0x67d   :  { %1271 = vrot.lane.b32.xlu1 %v9141_v58, %s8958_s23 }
 0x681   :  { %1269 = vrot.lane.b32.xlu1 %v9141_v58, %s8959_s24 }
 0x6ed   :  { %v1019_v41 = vpop.xlane.xlu0 %1018 }
 0x6ee   :  { %v1023_v42 = vsub.f32 %v935_v34, %v1019_v41 }
 0x6f0   :  { %v1025_v44 = vmul.f32 1.442695, %v1023_v42 }
 0x6f1   :  { %v1040_v47 = vpop.permute.xlu0 %1039  ;;  %v1022_v48 = vpop.xlane.xlu1 %1021 }
 0x6f2   :  { %8767 = vpow2.f32 %v1025_v44  ;;  %v1024_v49 = vsub.f32 %v1013_v38, %v1022_v48  ;;  %8104 = vmatpush3.msra.mxu1 %v1040_v47 }
 0x6f3   :  { %8113 = vmatprep.subr.mxu1 %v8951_v46 }
 0x6f4   :  { %v1027_v50 = vmul.f32 1.442695, %v1024_v49 }
 0x6f5   :  { %v1116_v51 = vpop.permute.xlu1 %1115 }
 0x6f6   :  { %8769 = vpow2.f32 %v1027_v50  ;;  %8109 = vmatpush3.msra.mxu0 %v1116_v51 }
 0x6f7   :  { %8118 = vmatprep.subr.mxu0 %v8951_v46 }
 0x6f9   :  { %v1194_v2 = vpop.permute.xlu1 %1193 }
 0x6fc   :  { %v8768_v52 = vpop.eup %8767 }
 0x6fd   :  { %v1029_v56 = vsel %vm535_vm6, %v8768_v52, 0.0  ;;  %v1272_v6 = vpop.permute.xlu1 %1271 }
 0x6fe   :  { %1030 = vadd.xlane.f32.xlu0 %v1029_v56 }
 0x700   :  { %v8770_v57 = vpop.eup %8769 }
 0x701   :  { %v1032_v59 = vsel %vm535_vm6, %v8770_v57, 0.0  ;;  %v1270_v9 = vpop.permute.xlu1 %1269 }
 0x702   :  { %1033 = vadd.xlane.f32.xlu0 %v1032_v59 }
 0x718   :  { %1191 = vrot.lane.b32.xlu0 %v9143_v60, %s8959_s24 }
 0x78b   :  { %v1031_v62 = vpop.xlane.xlu0 %1030 }
 0x78c   :  { %8771 = vrcp.f32 %v1031_v62 }
 0x78f   :  { %v1034_v1 = vpop.xlane.xlu0 %1033 }
 0x790   :  { %8773 = vrcp.f32 %v1034_v1 }
 0x793   :  { %v1192_v8 = vpop.permute.xlu0 %1191 }
 0x796   :  { %v8772_v3 = vpop.eup %8771 }
 0x797   :  { %v1036_v4 = vmul.f32 %v8772_v3, %v8768_v52 }
 0x799   :  { %8106 = vmatmul.mubr.msk.f32.vlgmr.msra.gmra.mrb[8].mxu1 %vm535_vm6, %v1036_v4 }
 0x79a   :  { %v8774_v5 = vpop.eup %8773  ;;  %8114 = vmatpush3.xpose.msk.msra.mxu1 %vm535_vm6, %v1194_v2  ;;  %8115 = vmatprep.mubr.msk.f32.mxu1 %vm8952_vm5, %v8951_v46 }
 0x79b   :  { %v1038_v7 = vmul.f32 %v8774_v5, %v8770_v57  ;;  %8123 = vmatprep.subr.mxu1 %v8951_v46 }
 0x79d   :  { %8111 = vmatmul.mubr.msk.f32.vlgmr.msra.gmra.mrb[12].mxu0 %vm535_vm6, %v1038_v7  ;;  %8116 = vmatmul.mubr.msk.f32.vlgmr.msra.gmra.mrb[10].mxu1 %vm535_vm6, %v1192_v8 }
 0x79e   :  { %8119 = vmatpush3.xpose.msk.msra.mxu0 %vm535_vm6, %v1272_v6  ;;  %8120 = vmatprep.mubr.msk.f32.mxu0 %vm8952_vm5, %v8951_v46 }
 0x79f   :  { %8128 = vmatprep.subr.mxu0 %v8951_v46  ;;  %8125 = vmatprep.mubr.msk.f32.mxu1 %vm8952_vm5, %v8951_v46 }
 0x7a1   :  { %8121 = vmatmul.mubr.msk.f32.vlgmr.msra.gmra.mrb[14].mxu0 %vm535_vm6, %v1270_v9 }
 0x7a2   :  { %8130 = vmatprep.mubr.msk.f32.mxu0 %vm8952_vm5, %v8951_v46 }
 0x86c   :  { %v9239_v10 = vpop.f32.mrb[8].mxu1 }
 0x86d   :  { %v8107_v11 = vpop.f32.mrb[9].mxu1 }
 0x870   :  { %v9241_v12 = vpop.f32.mrb[12].mxu0  ;;  %v1265_v13 = vpop.f32.mrb[10].mxu1 }
 0x871   :  { %v8112_v14 = vpop.f32.mrb[13].mxu0  ;;  %v8117_v15 = vpop.f32.mrb[11].mxu1  ;;  %v1347_v16 = vsel %vm535_vm6, %v1265_v13, -inf }
 0x872   :  { %1348 = vmax.xlane.f32.xlu0 %v1347_v16 }
 0x874   :  { %v1343_v17 = vpop.f32.mrb[14].mxu0 }
 0x875   :  { %v8122_v18 = vpop.f32.mrb[15].mxu0  ;;  %v1350_v19 = vsel %vm535_vm6, %v1343_v17, -inf }
 0x876   :  { %1351 = vmax.xlane.f32.xlu1 %v1350_v19  ;;  %v71_v18 = vld [vmem:[%s10226_s11 + $0x8] sm:$0xff] }
 0x887   :  { %1445 = vrot.lane.b32.xlu1 %v9141_v58, %s8960_s25 }
 0x888   :  { %1369 = vrot.lane.b32.xlu0 %v9143_v60, %s8960_s25 }
 0x88b   :  { %1523 = vrot.lane.b32.xlu1 %v9143_v60, %s8961_s26 }
 0x88f   :  { %1601 = vrot.lane.b32.xlu1 %v9141_v58, %s8961_s26 }
 0x893   :  { %1599 = vrot.lane.b32.xlu1 %v9141_v58, %s8962_s27 }
 0x8ff   :  { %v1349_v20 = vpop.xlane.xlu0 %1348 }
 0x900   :  { %v1353_v21 = vsub.f32 %v1265_v13, %v1349_v20  ;;  %v72_v20 = vld [vmem:[%s10226_s11 + $0x10] sm:$0xff] }
 0x902   :  { %v1355_v22 = vmul.f32 1.442695, %v1353_v21  ;;  %v73_v21 = vld [vmem:[%s10226_s11 + $0x18] sm:$0xff] }
 0x903   :  { %v1370_v23 = vpop.permute.xlu0 %1369  ;;  %v1352_v24 = vpop.xlane.xlu1 %1351 }
 0x904   :  { %8775 = vpow2.f32 %v1355_v22  ;;  %v1354_v25 = vsub.f32 %v1343_v17, %v1352_v24  ;;  %8124 = vmatpush3.msra.mxu1 %v1370_v23  ;;  %v8581_v22 = vpack.c.bf16 %v73_v21, %v72_v20 }
 0x905   :  { %8133 = vmatprep.subr.mxu1 %v8951_v46 }
 0x906   :  { %v1357_v26 = vmul.f32 1.442695, %v1354_v25 }
 0x907   :  { %v1446_v27 = vpop.permute.xlu1 %1445 }
 0x908   :  { %8777 = vpow2.f32 %v1357_v26  ;;  %8129 = vmatpush3.msra.mxu0 %v1446_v27 }
 0x909   :  { %8138 = vmatprep.subr.mxu0 %v8951_v46 }
 0x90b   :  { %v1524_v36 = vpop.permute.xlu1 %1523 }
 0x90e   :  { %v8776_v28 = vpop.eup %8775 }
 0x90f   :  { %v1359_v29 = vsel %vm535_vm6, %v8776_v28, 0.0  ;;  %v1602_v40 = vpop.permute.xlu1 %1601 }
 0x910   :  { %1360 = vadd.xlane.f32.xlu0 %v1359_v29 }
 0x912   :  { %v8778_v30 = vpop.eup %8777 }
 0x913   :  { %v1362_v32 = vsel %vm535_vm6, %v8778_v30, 0.0  ;;  %v1600_v44 = vpop.permute.xlu1 %1599 }
 0x914   :  { %1363 = vadd.xlane.f32.xlu0 %v1362_v32 }
 0x92a   :  { %1521 = vrot.lane.b32.xlu0 %v9143_v60, %s8962_s27 }
 0x99d   :  { %v1361_v34 = vpop.xlane.xlu0 %1360 }
 0x99e   :  { %8779 = vrcp.f32 %v1361_v34 }
 0x9a1   :  { %v1364_v35 = vpop.xlane.xlu0 %1363 }
 0x9a2   :  { %8781 = vrcp.f32 %v1364_v35 }
 0x9a5   :  { %v1522_v42 = vpop.permute.xlu0 %1521 }
 0x9a8   :  { %v8780_v37 = vpop.eup %8779 }
 0x9a9   :  { %v1366_v38 = vmul.f32 %v8780_v37, %v8776_v28 }
 0x9ab   :  { %8126 = vmatmul.mubr.msk.f32.vlgmr.msra.gmra.mrb[12].mxu1 %vm535_vm6, %v1366_v38 }
 0x9ac   :  { %v8782_v39 = vpop.eup %8781  ;;  %8134 = vmatpush3.xpose.msk.msra.mxu1 %vm535_vm6, %v1524_v36  ;;  %8135 = vmatprep.mubr.msk.f32.mxu1 %vm8952_vm5, %v8951_v46 }
 0x9ad   :  { %v1368_v41 = vmul.f32 %v8782_v39, %v8778_v30  ;;  %8143 = vmatprep.subr.mxu1 %v8951_v46 }
 0x9af   :  { %8131 = vmatmul.mubr.msk.f32.vlgmr.msra.gmra.mrb[16].mxu0 %vm535_vm6, %v1368_v41  ;;  %8136 = vmatmul.mubr.msk.f32.vlgmr.msra.gmra.mrb[14].mxu1 %vm535_vm6, %v1522_v42  ;;  %v9325_v41 = vld [vmem:[%s10227_s12] sm:$0xff] }
 0x9b0   :  { %8139 = vmatpush3.xpose.msk.msra.mxu0 %vm535_vm6, %v1602_v40  ;;  %8140 = vmatprep.mubr.msk.f32.mxu0 %vm8952_vm5, %v8951_v46 }
 0x9b1   :  { %8148 = vmatprep.subr.mxu0 %v8951_v46  ;;  %8145 = vmatprep.mubr.msk.f32.mxu1 %vm8952_vm5, %v8951_v46 }
 0x9b3   :  { %8141 = vmatmul.mubr.msk.f32.vlgmr.msra.gmra.mrb[18].mxu0 %vm535_vm6, %v1600_v44 }
 0x9b4   :  { %8150 = vmatprep.mubr.msk.f32.mxu0 %vm8952_vm5, %v8951_v46 }
 0xa7e   :  { %v1441_v47 = vpop.f32.mrb[12].mxu1 }
 0xa7f   :  { %v8127_v48 = vpop.f32.mrb[13].mxu1 }
 0xa82   :  { %v1517_v49 = vpop.f32.mrb[16].mxu0  ;;  %v1595_v50 = vpop.f32.mrb[14].mxu1 }
 0xa83   :  { %v8132_v51 = vpop.f32.mrb[17].mxu0  ;;  %v8137_v52 = vpop.f32.mrb[15].mxu1  ;;  %v1677_v56 = vsel %vm535_vm6, %v1595_v50, -inf }
 0xa84   :  { %1678 = vmax.xlane.f32.xlu0 %v1677_v56  ;;  %v7676_v51 = vld [vmem:[%s10228_s4] ss:$0 sm:$0xff] }
 0xa85   :  { %v189_v52 = vadd.f32 %v7676_v51, %v9149_v61 }
 0xa86   :  { %v1673_v57 = vpop.f32.mrb[18].mxu0 }
 0xa87   :  { %v8142_v59 = vpop.f32.mrb[19].mxu0  ;;  %v1680_v62 = vsel %vm535_vm6, %v1673_v57, -inf  ;;  %v193_v56 = vmul.f32 0.70710677, %v189_v52 }
 0xa88   :  { %1681 = vmax.xlane.f32.xlu1 %v1680_v62 }
 0xa99   :  { %1775 = vrot.lane.b32.xlu1 %v9141_v58, %s10236_s28 }
 0xa9d   :  { %1853 = vrot.lane.b32.xlu1 %v9239_v10, %s8964_s29 }
 0xaa1   :  { %1855 = vrot.lane.b32.xlu1 %v9241_v12, %s8964_s29 }
 0xaa5   :  { %1863 = vrot.lane.b32.xlu1 %v1517_v49, %s8965_s5 }
 0xb11   :  { %v1679_v1 = vpop.xlane.xlu0 %1678 }
 0xb12   :  { %v1683_v2 = vsub.f32 %v1595_v50, %v1679_v1 }
 0xb14   :  { %v1685_v3 = vmul.f32 1.442695, %v1683_v2 }
 0xb15   :  { %v1682_v4 = vpop.xlane.xlu1 %1681 }
 0xb16   :  { %8783 = vpow2.f32 %v1685_v3  ;;  %v1684_v5 = vsub.f32 %v1673_v57, %v1682_v4 }
 0xb18   :  { %v1687_v6 = vmul.f32 1.442695, %v1684_v5 }
 0xb19   :  { %v1776_v7 = vpop.permute.xlu1 %1775 }
 0xb1a   :  { %8785 = vpow2.f32 %v1687_v6  ;;  %8149 = vmatpush3.msra.mxu0 %v1776_v7  ;;  %v192_v6 = vmul.f32 0.5, %v189_v52 }
 0xb1d   :  { %v1854_v27 = vpop.permute.xlu1 %1853 }
 0xb1e   :  { %v1875_v30 = vsel %vm535_vm6, %v9201_v31, %v1854_v27  ;;  %v9320_v31 = vsub.s32 2, %v9129_v53 }
 0xb20   :  { %v8784_v58 = vpop.eup %8783 }
 0xb21   :  { %v1689_v8 = vsel %vm535_vm6, %v8784_v58, 0.0  ;;  %v1856_v28 = vpop.permute.xlu1 %1855 }
 0xb22   :  { %1690 = vadd.xlane.f32.xlu0 %v1689_v8  ;;  %v1876_v37 = vsel %vm535_vm6, %v9203_v33, %v1856_v28  ;;  %v1886_v33 = vrot.slane %v9325_v41, %v9320_v31 }
 0xb24   :  { %v8786_v9 = vpop.eup %8785 }
 0xb25   :  { %v1692_v10 = vsel %vm535_vm6, %v8786_v9, 0.0  ;;  %v1864_v32 = vpop.permute.xlu1 %1863 }
 0xb26   :  { %1693 = vadd.xlane.f32.xlu0 %v1692_v10  ;;  %v1879_v38 = vsel %vm1877_vm8, %v1876_v37, %v1864_v32 }
 0xb3c   :  { %1699 = vrot.lane.b32.xlu0 %v9143_v60, %s10236_s28  ;;  %v70_v60 = vld [vmem:[%s10226_s11] sm:$0xff] }
 0xb3d   :  { %v8577_v19 = vpack.c.bf16 %v71_v18, %v70_v60 }
 0xb40   :  { %1861 = vrot.lane.b32.xlu0 %v1441_v47, %s8965_s5 }
 0xbaf   :  { %v1691_v11 = vpop.xlane.xlu0 %1690 }
 0xbb0   :  { %8787 = vrcp.f32 %v1691_v11  ;;  %v74_v11 = vld [vmem:[%s10226_s11 + $0x20] sm:$0xff] }
 0xbb3   :  { %v1694_v12 = vpop.xlane.xlu0 %1693 }
 0xbb4   :  { %8789 = vrcp.f32 %v1694_v12  ;;  %v75_v12 = vld [vmem:[%s10226_s11 + $0x28] sm:$0xff] }
 0xbb5   :  { %8791 = verf.f32 %v193_v56 }
 0xbb7   :  { %v1700_v13 = vpop.permute.xlu0 %1699 }
 0xbb8   :  { %8144 = vmatpush3.msra.mxu1 %v1700_v13  ;;  %v8585_v13 = vpack.c.bf16 %v75_v12, %v74_v11 }
 0xbb9   :  { %8578 = vmatprep.subr.bf16.mxu1 %v8577_v19 }
 0xbba   :  { %v8788_v14 = vpop.eup %8787  ;;  %8586 = vmatprep.subr.bf16.mxu0 %v8585_v13 }
 0xbbb   :  { %v1696_v15 = vmul.f32 %v8788_v14, %v8784_v58  ;;  %v1862_v29 = vpop.permute.xlu0 %1861  ;;  %v76_v14 = vld [vmem:[%s10226_s11 + $0x30] sm:$0xff] }
 0xbbc   :  { %v1878_v34 = vsel %vm1877_vm8, %v1875_v30, %v1862_v29 }
 0xbbd   :  { %8146 = vmatmul.mubr.msk.f32.vlgmr.msra.gmra.mrb[16].mxu1 %vm535_vm6, %v1696_v15  ;;  %v77_v15 = vld [vmem:[%s10226_s11 + $0x38] sm:$0xff] }
 0xbbe   :  { %v8790_v16 = vpop.eup %8789  ;;  %8580 = vmatpush3.bf16.msra.mxu1 %v8577_v19 }
 0xbbf   :  { %v1698_v17 = vmul.f32 %v8790_v16, %v8786_v9  ;;  %8582 = vmatprep.subr.bf16.mxu1 %v8581_v22  ;;  %v8792_v4 = vpop.eup %8791  ;;  %v8589_v16 = vpack.c.bf16 %v77_v15, %v76_v14  ;;  %v57_v14 = vld [vmem:[%s10220_s9 + $0x20] sm:$0xff]  ;;  %v59_v15 = vld [vmem:[%s10220_s9 + $0x30] sm:$0xff] }
 0xbc0   :  { %v195_v8 = vadd.f32 1.0, %v8792_v4 }
 0xbc1   :  { %8151 = vmatmul.mubr.msk.f32.vlgmr.msra.gmra.mrb[20].mxu0 %vm535_vm6, %v1698_v17 }
 0xbc2   :  { %8584 = vmatpush3.bf16.msra.mxu1 %v8581_v22  ;;  %v9337_v10 = vmul.f32 %v195_v8, %v192_v6  ;;  %8588 = vmatpush3.bf16.msra.mxu0 %v8585_v13  ;;  %v9354_v22 = vsub.s32 3, %v9129_v53 }
 0xbc3   :  { %8590 = vmatprep.subr.bf16.mxu0 %v8589_v16 }
 0xbc4   :  { %v2106_v61 = vsel %vm2105_vm9, %v9337_v10, 0.0 }
 0xbc6   :  { %8592 = vmatpush3.bf16.msra.mxu0 %v8589_v16  ;;  %v8967_v16 = vmov 0.0|0.0  }
 0xbc7   :  { %8593 = vmatprep.subr.bf16.mxu1 %v8967_v16 }
 0xc90   :  { %v1771_v23 = vpop.f32.mrb[16].mxu1 }
 0xc91   :  { %1869 = vrot.lane.b32.xlu0 %v1771_v23, %s8966_s30  ;;  %v8147_v24 = vpop.f32.mrb[17].mxu1  ;;  %v438_v23 = vrot.slane %v9325_v41, %v9137_v55 }
 0xc92   :  { %v9359_v24 = vsub.s32 1, %v9129_v53 }
 0xc93   :  { %v439_v28 = vmul.f32 %v438_v23, %v9093_v43 }
 0xc94   :  { %v1847_v25 = vpop.f32.mrb[20].mxu0  ;;  %v444_v29 = vrot.slane %v9325_v41, %v9359_v24 }
 0xc95   :  { %1871 = vrot.lane.b32.xlu1 %v1847_v25, %s8966_s30  ;;  %v8152_v26 = vpop.f32.mrb[21].mxu0  ;;  %v9362_v25 = vsub.s32 4, %v9129_v53 }
 0xc96   :  { %v1997_v26 = vrot.slane %v9325_v41, %v9354_v22 }
 0xc97   :  { %v2003_v32 = vrot.slane %v9325_v41, %v9362_v25 }
 0xd03   :  { %v1870_v35 = vpop.permute.xlu0 %1869 }
 0xd04   :  { %v1881_v36 = vsel %vm1880_vm7, %v1878_v34, %v1870_v35 }
 0xd05   :  { %8161 = vmatprep.mubr.msk.f32.mxu1 %vm407_vm2, %v1881_v36  ;;  %v440_v36 = vmul.f32 %v438_v23, %v9097_v45 }
 0xd07   :  { %v1872_v39 = vpop.permute.xlu1 %1871 }
 0xd08   :  { %v1882_v40 = vsel %vm1880_vm7, %v1879_v38, %v1872_v39  ;;  %v445_v38 = vadd.f32 %v444_v29, %v439_v28 }
 0xd09   :  { %8162 = vmatmul.mubr.msk.f32.vlgmr.msra.gmra.mrb[18].mxu1 %vm407_vm2, %v1882_v40 }
 0xd0a   :  { %8183 = vmatprep.mubr.msk.f32.mxu1 %vm8952_vm5, %v8951_v46 }
 0xddc   :  { %v8163_v42 = vpop.f32.mrb[18].mxu1 }
 0xddd   :  { %v1965_v44 = vadd.f32 %v8163_v42, %v1886_v33  ;;  %v1959_v47 = vpop.f32.mrb[19].mxu1  ;;  %v446_v42 = vadd.f32 %v444_v29, %v440_v36 }
 0xdde   :  { %v1960_v48 = vadd.f32 %v1959_v47, %v1886_v33  ;;  %v9375_v47 = vsub.s32 5, %v9129_v53 }
 0xddf   :  { %v1971_v49 = vsel %vm407_vm2, %v1965_v44, 0.0 }
 0xde0   :  { %1972 = vadd.xlane.f32.xlu1 %v1971_v49  ;;  %v1968_v50 = vsel %vm407_vm2, %v1960_v48, 0.0 }
 0xde1   :  { %1969 = vadd.xlane.f32.xlu0 %v1968_v50 }
 0xe6d   :  { %v1973_v57 = vpop.xlane.xlu1 %1972 }
 0xe6e   :  { %v1975_v59 = vmul.f32 0.03125, %v1973_v57  ;;  %v1970_v62 = vpop.xlane.xlu0 %1969 }
 0xe6f   :  { %v1974_v1 = vmul.f32 0.03125, %v1970_v62 }
 0xe70   :  { %v1977_v2 = vsub.f32 %v1965_v44, %v1975_v59 }
 0xe71   :  { %v1976_v3 = vsub.f32 %v1960_v48, %v1974_v1  ;;  %v2011_v48 = vrot.slane %v9325_v41, %v9375_v47 }
 0xe72   :  { %v1979_v58 = vmul.f32 %v1977_v2, %v1977_v2 }
 0xe73   :  { %v1978_v5 = vmul.f32 %v1976_v3, %v1976_v3 }
 0xe74   :  { %v1983_v9 = vsel %vm407_vm2, %v1979_v58, 0.0 }
 0xe75   :  { %v1980_v7 = vsel %vm407_vm2, %v1978_v5, 0.0 }
 0xe76   :  { %1981 = vadd.xlane.f32.xlu0 %v1980_v7 }
 0xe7a   :  { %1984 = vadd.xlane.f32.xlu0 %v1983_v9 }
 0xe7e   :  { %2107 = vadd.xlane.f32.xlu0 %v2106_v61 }
 0xf03   :  { %v1982_v17 = vpop.xlane.xlu0 %1981 }
 0xf04   :  { %v1986_v60 = vmul.f32 0.03125, %v1982_v17 }
 0xf06   :  { %v1988_v18 = vadd.f32 1e-05, %v1986_v60  ;;  %v60_v60 = vld [vmem:[%s10220_s9 + $0x38] sm:$0xff] }
 0xf07   :  { %v1985_v19 = vpop.xlane.xlu0 %1984 }
 0xf08   :  { %8793 = vrsqrt.f32 %v1988_v18  ;;  %v1987_v20 = vmul.f32 0.03125, %v1985_v19  ;;  %v8597_v18 = vpack.c.bf16 %v60_v60, %v59_v15 }
 0xf0a   :  { %v1989_v21 = vadd.f32 1e-05, %v1987_v20  ;;  %v8716_v20 = vpack.i.bf16 %v60_v60, %v59_v15 }
 0xf0b   :  { %v2108_v57 = vpop.xlane.xlu0 %2107 }
 0xf0c   :  { %8795 = vrsqrt.f32 %v1989_v21  ;;  %v2109_v62 = vmul.f32 0.03125, %v2108_v57 }
 0xf0e   :  { %v2110_v7 = vsub.f32 %v9337_v10, %v2109_v62  ;;  %v58_v10 = vld [vmem:[%s10220_s9 + $0x28] sm:$0xff] }
 0xf0f   :  { %v8594_v17 = vpack.c.bf16 %v58_v10, %v57_v14  ;;  %v8711_v19 = vpack.i.bf16 %v58_v10, %v57_v14 }
 0xf10   :  { %v2111_v12 = vmul.f32 %v2110_v7, %v2110_v7 }
 0xf11   :  { %8595 = vmatpush3.bf16.msra.mxu1 %v8594_v17 }
 0xf12   :  { %v8794_v27 = vpop.eup %8793  ;;  %v2112_v13 = vsel %vm2105_vm9, %v2111_v12, 0.0  ;;  %8596 = vmatprep.subr.bf16.mxu1 %v8967_v16 }
 0xf13   :  { %v1992_v30 = vmul.f32 %v8794_v27, %v1976_v3 }
 0xf15   :  { %v1998_v34 = vmul.f32 %v1997_v26, %v1992_v30  ;;  %8598 = vmatpush3.bf16.msra.mxu1 %v8597_v18 }
 0xf16   :  { %v8796_v35 = vpop.eup %8795  ;;  %8197 = vmatprep.subr.mxu1 %v8951_v46 }
 0xf17   :  { %v1993_v37 = vmul.f32 %v8796_v35, %v1977_v2  ;;  %v2004_v39 = vadd.f32 %v2003_v32, %v1998_v34 }
 0xf19   :  { %v1999_v40 = vmul.f32 %v1997_v26, %v1993_v37  ;;  %v2006_v33 = vadd.f32 %v2004_v39, %v445_v38 }
 0xf1b   :  { %v2005_v44 = vadd.f32 %v2003_v32, %v1999_v40  ;;  %8172 = vmatprep.mubr.msk.f32.mxu0 %vm407_vm2, %v2006_v33 }
 0xf1d   :  { %v2007_v43 = vadd.f32 %v2005_v44, %v446_v42 }
 0xf1f   :  { %8173 = vmatmul.mubr.msk.f32.vlgmr.msra.gmra.mrb[22].mxu0 %vm407_vm2, %v2007_v43 }
 0xff2   :  { %v8174_v49 = vpop.f32.mrb[22].mxu0 }
 0xff3   :  { %v2090_v45 = vadd.f32 %v8174_v49, %v2011_v48  ;;  %v2084_v50 = vpop.f32.mrb[23].mxu0 }
 0xff4   :  { %v2085_v51 = vadd.f32 %v2084_v50, %v2011_v48 }
 0xff5   :  { %v2096_v52 = vmul.f32 0.70710677, %v2090_v45  ;;  %v2094_v2 = vmul.f32 0.5, %v2090_v45 }
 0xff6   :  { %v2095_v56 = vmul.f32 0.70710677, %v2085_v51  ;;  %v2093_v4 = vmul.f32 0.5, %v2085_v51 }
 0xff7   :  { %8797 = verf.f32 %v2096_v52 }
 0xff8   :  { %8799 = verf.f32 %v2095_v56 }
0x1001   :  { %v8798_v59 = vpop.eup %8797 }
0x1002   :  { %v8800_v1 = vpop.eup %8799  ;;  %v2100_v3 = vadd.f32 1.0, %v8798_v59 }
0x1003   :  { %v2099_v5 = vadd.f32 1.0, %v8800_v1 }
0x1004   :  { %v2102_v6 = vmul.f32 %v2100_v3, %v2094_v2 }
0x1005   :  { %v2101_v58 = vmul.f32 %v2099_v5, %v2093_v4 }
0x1006   :  { %v2104_v8 = vadd.f32 %v2102_v6, %v2007_v43 }
0x1007   :  { %v2103_v9 = vadd.f32 %v2101_v58, %v2006_v33  ;;  %v2158_v33 = vrot.slane %v9134_v54, %v9359_v24 }
0x1008   :  { %v2132_v61 = vsel %vm407_vm2, %v2104_v8, 0.0 }
0x1009   :  { %2133 = vadd.xlane.f32.xlu0 %v2132_v61  ;;  %v2129_v11 = vsel %vm407_vm2, %v2103_v9, 0.0 }
0x100a   :  { %2130 = vadd.xlane.f32.xlu1 %v2129_v11 }
0x100e   :  { %2113 = vadd.xlane.f32.xlu1 %v2112_v13 }
0x1096   :  { %v2134_v21 = vpop.xlane.xlu0 %2133 }
0x1097   :  { %v2136_v23 = vmul.f32 0.03125, %v2134_v21  ;;  %v2131_v26 = vpop.xlane.xlu1 %2130 }
0x1098   :  { %v2135_v27 = vmul.f32 0.03125, %v2131_v26 }
0x1099   :  { %v2138_v28 = vsub.f32 %v2104_v8, %v2136_v23 }
0x109a   :  { %v2137_v29 = vsub.f32 %v2103_v9, %v2135_v27 }
0x109b   :  { %v2114_v30 = vpop.xlane.xlu1 %2113  ;;  %v2140_v32 = vmul.f32 %v2138_v28, %v2138_v28 }
0x109c   :  { %v2115_v34 = vmul.f32 0.03125, %v2114_v30  ;;  %v2139_v35 = vmul.f32 %v2137_v29, %v2137_v29 }
0x109d   :  { %v2144_v36 = vsel %vm407_vm2, %v2140_v32, 0.0 }
0x109e   :  { %v2116_v37 = vadd.f32 1e-05, %v2115_v34  ;;  %2145 = vadd.xlane.f32.xlu1 %v2144_v36  ;;  %v2141_v38 = vsel %vm407_vm2, %v2139_v35, 0.0 }
0x109f   :  { %2142 = vadd.xlane.f32.xlu0 %v2141_v38 }
0x10a0   :  { %8801 = vrsqrt.f32 %v2116_v37 }
0x10aa   :  { %v8802_v39 = vpop.eup %8801 }
0x10ab   :  { %v9400_v40 = vmul.f32 %v8802_v39, %v2110_v7  ;;  %v8968_v7 = vmov 1966171168  }
0x10ac   :  { %v2335_v58 = vunpack.c.l.s4 %v8968_v7 }
0x10ad   :  { %8184 = vmatmul.mubr.msk.f32.vlgmr.msra.gmra.mrb[20].mxu1 %vm407_vm2, %v9400_v40 }
0x10ae   :  { %8199 = vmatprep.mubr.msk.f32.mxu1 %vm8952_vm5, %v8951_v46  ;;  %v2336_v8 = vunpack.c.0.s8 %v2335_v58 }
0x10af   :  { %8717 = vrot.lane.b32.xlu1 %v8716_v20, %s8953_s2 }
0x10b0   :  { %v9423_v61 = vsub.s32 %v2336_v8, %v9129_v53 }
0x10b3   :  { %2249 = vrot.lane.b32.xlu1 %v2158_v33, %s8953_s2 }
0x10b5   :  { %8712 = vrot.lane.b32.xlu0 %v8711_v19, %s8953_s2 }
0x112b   :  { %v2146_v42 = vpop.xlane.xlu1 %2145 }
0x112c   :  { %v2148_v44 = vmul.f32 0.03125, %v2146_v42  ;;  %v2143_v43 = vpop.xlane.xlu0 %2142 }
0x112d   :  { %v2147_v48 = vmul.f32 0.03125, %v2143_v43 }
0x112e   :  { %v2150_v49 = vadd.f32 1e-05, %v2148_v44 }
0x112f   :  { %v2149_v45 = vadd.f32 1e-05, %v2147_v48  ;;  %v8718_v50 = vpop.permute.xlu1 %8717 }
0x1130   :  { %8803 = vrsqrt.f32 %v2150_v49  ;;  %v8713_v51 = vpop.permute.xlu0 %8712  ;;  %v8720_v52 = vunpack.i.h.bf16 %v8718_v50  ;;  %v8719_v56 = vunpack.i.l.bf16 %v8718_v50 }
0x1131   :  { %8805 = vrsqrt.f32 %v2149_v45  ;;  %v8715_v57 = vunpack.i.h.bf16 %v8713_v51  ;;  %v8714_v59 = vunpack.i.l.bf16 %v8713_v51 }
0x1132   :  { %v8603_v1 = vpack.c.bf16 %v8720_v52, %v8719_v56 }
0x1133   :  { %v8599_v62 = vpack.c.bf16 %v8715_v57, %v8714_v59  ;;  %v2250_v12 = vpop.permute.xlu1 %2249 }
0x1135   :  { %8600 = vmatprep.subr.bf16.mxu0 %v8599_v62 }
0x1136   :  { %8602 = vmatpush3.bf16.msra.mxu0 %v8599_v62 }
0x1137   :  { %8604 = vmatprep.subr.bf16.mxu0 %v8603_v1 }
0x113a   :  { %v8804_v54 = vpop.eup %8803  ;;  %8606 = vmatpush3.bf16.msra.mxu0 %v8603_v1 }
0x113b   :  { %v8806_v2 = vpop.eup %8805  ;;  %8202 = vmatprep.subr.mxu0 %v8951_v46  ;;  %v9414_v4 = vmul.f32 %v8804_v54, %v2138_v28 }
0x113c   :  { %v9412_v3 = vmul.f32 %v8806_v2, %v2137_v29 }
0x113e   :  { %8194 = vmatprep.mubr.msk.f32.mxu0 %vm407_vm2, %v9412_v3 }
0x113f   :  { %8195 = vmatmul.mubr.msk.f32.vlgmr.msra.gmra.mrb[24].mxu0 %vm407_vm2, %v9414_v4 }
0x1140   :  { %8204 = vmatprep.mubr.msk.f32.mxu0 %vm8952_vm5, %v8951_v46 }
0x1180   :  { %v2228_v5 = vpop.f32.mrb[20].mxu1 }
0x1181   :  { %v8185_v6 = vpop.f32.mrb[21].mxu1  ;;  %v2229_v9 = vadd.f32 %v2228_v5, %v2158_v33 }
0x1183   :  { %v2340_v11 = vrot.slane %v2229_v9, %v9423_v61 }
0x1185   :  { %v2341_v13 = vcombine.high %v2340_v11, %v2340_v11  ;;  %v2348_v18 = vrot.slane %v2340_v11, %v9423_v61 }
0x1187   :  { %v2355_v60 = vrot.slane %v2341_v13, %v9423_v61  ;;  %v9464_v43 = vrot.slane %v2348_v18, %v9137_v55 }
0x1189   :  { %v9455_v28 = vrot.slane %v2355_v60, %v9137_v55 }
0x1212   :  { %v8196_v14 = vpop.f32.mrb[24].mxu0 }
0x1213   :  { %v9426_v10 = vadd.f32 %v8196_v14, %v2250_v12  ;;  %v2324_v15 = vpop.f32.mrb[25].mxu0 }
0x1214   :  { %v9428_v17 = vadd.f32 %v2324_v15, %v2250_v12 }
0x1215   :  { %8203 = vmatpush3.xpose.msk.msra.mxu0 %vm535_vm6, %v9426_v10 }
0x1216   :  { %8198 = vmatpush3.xpose.msk.msra.mxu1 %vm535_vm6, %v9428_v17  ;;  %8212 = vmatprep.subr.mxu0 %v8951_v46 }
0x1217   :  { %8207 = vmatprep.subr.mxu1 %v8951_v46 }
0x1218   :  { %8205 = vmatmul.mubr.msk.f32.vlgmr.msra.gmra.mrb[26].mxu0 %vm535_vm6, %v2355_v60 }
0x1219   :  { %8200 = vmatmul.mubr.msk.f32.vlgmr.msra.gmra.mrb[22].mxu1 %vm535_vm6, %v2348_v18  ;;  %8214 = vmatprep.mubr.msk.f32.mxu0 %vm8952_vm5, %v8951_v46 }
0x121a   :  { %8209 = vmatprep.mubr.msk.f32.mxu1 %vm8952_vm5, %v8951_v46 }
0x12eb   :  { %v2502_v19 = vpop.f32.mrb[26].mxu0 }
0x12ec   :  { %v2427_v20 = vpop.f32.mrb[22].mxu1  ;;  %v8206_v21 = vpop.f32.mrb[27].mxu0  ;;  %v2510_v23 = vsel %vm2506_vm10, %v2502_v19, -inf }
0x12ed   :  { %2511 = vmax.xlane.f32.xlu1 %v2510_v23  ;;  %v8201_v26 = vpop.f32.mrb[23].mxu1  ;;  %v2507_v27 = vsel %vm2506_vm10, %v2427_v20, -inf }
0x12ee   :  { %2508 = vmax.xlane.f32.xlu0 %v2507_v27 }
0x12fe   :  { %2605 = vrot.lane.b32.xlu1 %v9426_v10, %s8953_s2 }
0x1302   :  { %2769 = vrot.lane.b32.xlu1 %v9426_v10, %s8956_s21 }
0x1304   :  { %2529 = vrot.lane.b32.xlu0 %v9428_v17, %s8953_s2 }
0x1306   :  { %2687 = vrot.lane.b32.xlu1 %v9428_v17, %s8956_s21 }
0x130a   :  { %2767 = vrot.lane.b32.xlu1 %v9455_v28, %s8956_s21 }
0x137a   :  { %v2512_v29 = vpop.xlane.xlu1 %2511 }
0x137b   :  { %v2514_v30 = vsub.f32 %v2502_v19, %v2512_v29  ;;  %v2509_v32 = vpop.xlane.xlu0 %2508 }
0x137c   :  { %v2513_v34 = vsub.f32 %v2427_v20, %v2509_v32 }
0x137d   :  { %v2517_v35 = vmul.f32 1.442695, %v2514_v30 }
0x137e   :  { %v2515_v36 = vmul.f32 1.442695, %v2513_v34  ;;  %v2606_v37 = vpop.permute.xlu1 %2605 }
0x137f   :  { %8807 = vpow2.f32 %v2517_v35  ;;  %8213 = vmatpush3.msra.mxu0 %v2606_v37  ;;  %v2530_v38 = vpop.permute.xlu0 %2529 }
0x1380   :  { %8208 = vmatpush3.msra.mxu1 %v2530_v38  ;;  %8222 = vmatprep.subr.mxu0 %v8951_v46  ;;  %8809 = vpow2.f32 %v2515_v36 }
0x1381   :  { %8217 = vmatprep.subr.mxu1 %v8951_v46 }
0x1382   :  { %v2770_v45 = vpop.permute.xlu1 %2769 }
0x1386   :  { %v2688_v51 = vpop.permute.xlu1 %2687 }
0x1389   :  { %v8808_v39 = vpop.eup %8807 }
0x138a   :  { %v2522_v33 = vsel %vm2506_vm10, %v8808_v39, 0.0  ;;  %v8810_v42 = vpop.eup %8809  ;;  %v2768_v59 = vpop.permute.xlu1 %2767 }
0x138b   :  { %2523 = vadd.xlane.f32.xlu0 %v2522_v33  ;;  %v2519_v44 = vsel %vm2506_vm10, %v8810_v42, 0.0 }
0x138f   :  { %2520 = vadd.xlane.f32.xlu0 %v2519_v44 }
0x13a5   :  { %2685 = vrot.lane.b32.xlu0 %v9464_v43, %s8956_s21 }
0x1418   :  { %v2524_v48 = vpop.xlane.xlu0 %2523 }
0x1419   :  { %8811 = vrcp.f32 %v2524_v48 }
0x141c   :  { %v2521_v49 = vpop.xlane.xlu0 %2520 }
0x141d   :  { %8813 = vrcp.f32 %v2521_v49 }
0x1420   :  { %v2686_v62 = vpop.permute.xlu0 %2685 }
0x1423   :  { %v8812_v50 = vpop.eup %8811 }
0x1424   :  { %v2528_v52 = vmul.f32 %v8812_v50, %v8808_v39 }
0x1426   :  { %8215 = vmatmul.mubr.msk.f32.vlgmr.msra.gmra.mrb[28].mxu0 %vm535_vm6, %v2528_v52 }
0x1427   :  { %v8814_v56 = vpop.eup %8813  ;;  %8223 = vmatpush3.xpose.msk.msra.mxu0 %vm535_vm6, %v2770_v45  ;;  %8224 = vmatprep.mubr.msk.f32.mxu0 %vm8952_vm5, %v8951_v46 }
0x1428   :  { %v2526_v57 = vmul.f32 %v8814_v56, %v8810_v42  ;;  %8232 = vmatprep.subr.mxu0 %v8951_v46 }
0x142a   :  { %8210 = vmatmul.mubr.msk.f32.vlgmr.msra.gmra.mrb[24].mxu1 %vm535_vm6, %v2526_v57  ;;  %8225 = vmatmul.mubr.msk.f32.vlgmr.msra.gmra.mrb[30].mxu0 %vm535_vm6, %v2768_v59 }
0x142b   :  { %8218 = vmatpush3.xpose.msk.msra.mxu1 %vm535_vm6, %v2688_v51  ;;  %8219 = vmatprep.mubr.msk.f32.mxu1 %vm8952_vm5, %v8951_v46 }
0x142c   :  { %8227 = vmatprep.subr.mxu1 %v8951_v46  ;;  %8234 = vmatprep.mubr.msk.f32.mxu0 %vm8952_vm5, %v8951_v46 }
0x142e   :  { %8220 = vmatmul.mubr.msk.f32.vlgmr.msra.gmra.mrb[26].mxu1 %vm535_vm6, %v2686_v62 }
0x142f   :  { %8229 = vmatprep.mubr.msk.f32.mxu1 %vm8952_vm5, %v8951_v46 }
0x14f9   :  { %v9484_v1 = vpop.f32.mrb[28].mxu0 }
0x14fa   :  { %v8216_v54 = vpop.f32.mrb[29].mxu0 }
0x14fd   :  { %v9486_v2 = vpop.f32.mrb[24].mxu1  ;;  %v2841_v5 = vpop.f32.mrb[30].mxu0 }
0x14fe   :  { %v8211_v6 = vpop.f32.mrb[25].mxu1  ;;  %v8226_v7 = vpop.f32.mrb[31].mxu0  ;;  %v2848_v58 = vsel %vm2506_vm10, %v2841_v5, -inf }
0x14ff   :  { %2849 = vmax.xlane.f32.xlu1 %v2848_v58 }
0x1501   :  { %v2759_v8 = vpop.f32.mrb[26].mxu1 }
0x1502   :  { %v8221_v9 = vpop.f32.mrb[27].mxu1  ;;  %v2845_v11 = vsel %vm2506_vm10, %v2759_v8, -inf }
0x1503   :  { %2846 = vmax.xlane.f32.xlu0 %v2845_v11 }
0x1510   :  { %2943 = vrot.lane.b32.xlu1 %v9426_v10, %s8955_s20 }
0x1514   :  { %3099 = vrot.lane.b32.xlu1 %v9426_v10, %s8959_s24 }
0x1518   :  { %3021 = vrot.lane.b32.xlu1 %v9428_v17, %s8959_s24 }
0x1519   :  { %2867 = vrot.lane.b32.xlu0 %v9428_v17, %s8955_s20 }
0x151c   :  { %3097 = vrot.lane.b32.xlu1 %v9455_v28, %s8959_s24 }
0x158c   :  { %v2850_v12 = vpop.xlane.xlu1 %2849 }
0x158d   :  { %v2852_v13 = vsub.f32 %v2841_v5, %v2850_v12 }
0x158f   :  { %v2855_v14 = vmul.f32 1.442695, %v2852_v13 }
0x1590   :  { %v2944_v15 = vpop.permute.xlu1 %2943  ;;  %v2847_v60 = vpop.xlane.xlu0 %2846 }
0x1591   :  { %8815 = vpow2.f32 %v2855_v14  ;;  %v2851_v18 = vsub.f32 %v2759_v8, %v2847_v60  ;;  %8233 = vmatpush3.msra.mxu0 %v2944_v15 }
0x1592   :  { %8242 = vmatprep.subr.mxu0 %v8951_v46 }
0x1593   :  { %v2853_v19 = vmul.f32 1.442695, %v2851_v18 }
0x1594   :  { %v2868_v20 = vpop.permute.xlu0 %2867  ;;  %v3100_v32 = vpop.permute.xlu1 %3099 }
0x1595   :  { %8817 = vpow2.f32 %v2853_v19  ;;  %8228 = vmatpush3.msra.mxu1 %v2868_v20 }
0x1596   :  { %8237 = vmatprep.subr.mxu1 %v8951_v46 }
0x1598   :  { %v3022_v35 = vpop.permute.xlu1 %3021 }
0x159b   :  { %v8816_v21 = vpop.eup %8815 }
0x159c   :  { %v2860_v23 = vsel %vm2506_vm10, %v8816_v21, 0.0  ;;  %v3098_v39 = vpop.permute.xlu1 %3097 }
0x159d   :  { %2861 = vadd.xlane.f32.xlu0 %v2860_v23 }
0x159f   :  { %v8818_v26 = vpop.eup %8817 }
0x15a0   :  { %v2857_v27 = vsel %vm2506_vm10, %v8818_v26, 0.0 }
0x15a1   :  { %2858 = vadd.xlane.f32.xlu0 %v2857_v27 }
0x15b7   :  { %3019 = vrot.lane.b32.xlu0 %v9464_v43, %s8959_s24 }
0x162a   :  { %v2862_v29 = vpop.xlane.xlu0 %2861 }
0x162b   :  { %8819 = vrcp.f32 %v2862_v29 }
0x162e   :  { %v2859_v30 = vpop.xlane.xlu0 %2858 }
0x162f   :  { %8821 = vrcp.f32 %v2859_v30 }
0x1632   :  { %v3020_v33 = vpop.permute.xlu0 %3019 }
0x1635   :  { %v8820_v34 = vpop.eup %8819 }
0x1636   :  { %v2866_v36 = vmul.f32 %v8820_v34, %v8816_v21 }
0x1638   :  { %8235 = vmatmul.mubr.msk.f32.vlgmr.msra.gmra.mrb[32].mxu0 %vm535_vm6, %v2866_v36 }
0x1639   :  { %v8822_v37 = vpop.eup %8821  ;;  %8243 = vmatpush3.xpose.msk.msra.mxu0 %vm535_vm6, %v3100_v32  ;;  %8244 = vmatprep.mubr.msk.f32.mxu0 %vm8952_vm5, %v8951_v46 }
0x163a   :  { %v2864_v38 = vmul.f32 %v8822_v37, %v8818_v26  ;;  %8252 = vmatprep.subr.mxu0 %v8951_v46 }
0x163c   :  { %8230 = vmatmul.mubr.msk.f32.vlgmr.msra.gmra.mrb[28].mxu1 %vm535_vm6, %v2864_v38  ;;  %8245 = vmatmul.mubr.msk.f32.vlgmr.msra.gmra.mrb[34].mxu0 %vm535_vm6, %v3098_v39 }
0x163d   :  { %8238 = vmatpush3.xpose.msk.msra.mxu1 %vm535_vm6, %v3022_v35  ;;  %8239 = vmatprep.mubr.msk.f32.mxu1 %vm8952_vm5, %v8951_v46 }
0x163e   :  { %8247 = vmatprep.subr.mxu1 %v8951_v46  ;;  %8254 = vmatprep.mubr.msk.f32.mxu0 %vm8952_vm5, %v8951_v46 }
0x1640   :  { %8240 = vmatmul.mubr.msk.f32.vlgmr.msra.gmra.mrb[30].mxu1 %vm535_vm6, %v3020_v33 }
0x1641   :  { %8249 = vmatprep.mubr.msk.f32.mxu1 %vm8952_vm5, %v8951_v46 }
0x170b   :  { %v9522_v42 = vpop.f32.mrb[32].mxu0 }
0x170c   :  { %v8236_v44 = vpop.f32.mrb[33].mxu0 }
0x170f   :  { %v9524_v48 = vpop.f32.mrb[28].mxu1  ;;  %v3171_v49 = vpop.f32.mrb[34].mxu0 }
0x1710   :  { %v8231_v45 = vpop.f32.mrb[29].mxu1  ;;  %v8246_v50 = vpop.f32.mrb[35].mxu0  ;;  %v3178_v51 = vsel %vm2506_vm10, %v3171_v49, -inf }
0x1711   :  { %3179 = vmax.xlane.f32.xlu1 %v3178_v51 }
0x1713   :  { %v3093_v52 = vpop.f32.mrb[30].mxu1 }
0x1714   :  { %v8241_v56 = vpop.f32.mrb[31].mxu1  ;;  %v3175_v57 = vsel %vm2506_vm10, %v3093_v52, -inf }
0x1715   :  { %3176 = vmax.xlane.f32.xlu0 %v3175_v57 }
0x1722   :  { %3273 = vrot.lane.b32.xlu1 %v9426_v10, %s8958_s23 }
0x1726   :  { %3429 = vrot.lane.b32.xlu1 %v9426_v10, %s8962_s27 }
0x172a   :  { %3351 = vrot.lane.b32.xlu1 %v9428_v17, %s8962_s27 }
0x172b   :  { %3197 = vrot.lane.b32.xlu0 %v9428_v17, %s8958_s23 }
0x172e   :  { %3427 = vrot.lane.b32.xlu1 %v9455_v28, %s8962_s27 }
0x179e   :  { %v3180_v59 = vpop.xlane.xlu1 %3179 }
0x179f   :  { %v3182_v62 = vsub.f32 %v3171_v49, %v3180_v59 }
0x17a1   :  { %v3185_v54 = vmul.f32 1.442695, %v3182_v62 }
0x17a2   :  { %v3274_v5 = vpop.permute.xlu1 %3273  ;;  %v3177_v6 = vpop.xlane.xlu0 %3176 }
0x17a3   :  { %8823 = vpow2.f32 %v3185_v54  ;;  %v3181_v7 = vsub.f32 %v3093_v52, %v3177_v6  ;;  %8253 = vmatpush3.msra.mxu0 %v3274_v5 }
0x17a4   :  { %8262 = vmatprep.subr.mxu0 %v8951_v46 }
0x17a5   :  { %v3183_v58 = vmul.f32 1.442695, %v3181_v7  ;;  %v79_v7 = vld [vmem:[%s10226_s11 + $0x48] sm:$0xff] }
0x17a6   :  { %v3198_v8 = vpop.permute.xlu0 %3197  ;;  %v3430_v15 = vpop.permute.xlu1 %3429 }
0x17a7   :  { %8825 = vpow2.f32 %v3183_v58  ;;  %8248 = vmatpush3.msra.mxu1 %v3198_v8  ;;  %v80_v8 = vld [vmem:[%s10226_s11 + $0x50] sm:$0xff] }
0x17a8   :  { %8257 = vmatprep.subr.mxu1 %v8951_v46 }
0x17aa   :  { %v3352_v18 = vpop.permute.xlu1 %3351 }
0x17ad   :  { %v8824_v9 = vpop.eup %8823 }
0x17ae   :  { %v3190_v11 = vsel %vm2506_vm10, %v8824_v9, 0.0 }
0x17af   :  { %3191 = vadd.xlane.f32.xlu0 %v3190_v11 }
0x17b1   :  { %v8826_v28 = vpop.eup %8825 }
0x17b2   :  { %v3187_v12 = vsel %vm2506_vm10, %v8826_v28, 0.0 }
0x17b3   :  { %3188 = vadd.xlane.f32.xlu0 %v3187_v12  ;;  %v62_v12 = vld [vmem:[%s10220_s9 + $0x48] sm:$0xff] }
0x17c9   :  { %3349 = vrot.lane.b32.xlu0 %v9464_v43, %s8962_s27  ;;  %v3428_v43 = vpop.permute.xlu1 %3427 }
0x183c   :  { %v3192_v13 = vpop.xlane.xlu0 %3191 }
0x183d   :  { %8827 = vrcp.f32 %v3192_v13 }
0x1840   :  { %v3189_v14 = vpop.xlane.xlu0 %3188 }
0x1841   :  { %8829 = vrcp.f32 %v3189_v14 }
0x1844   :  { %v3350_v23 = vpop.permute.xlu0 %3349 }
0x1847   :  { %v8828_v60 = vpop.eup %8827 }
0x1848   :  { %v3196_v19 = vmul.f32 %v8828_v60, %v8824_v9  ;;  %v81_v9 = vld [vmem:[%s10226_s11 + $0x58] sm:$0xff] }
0x1849   :  { %v8611_v11 = vpack.c.bf16 %v81_v9, %v80_v8  ;;  %v85_v8 = vld [vmem:[%s10226_s11 + $0x78] sm:$0xff] }
0x184a   :  { %8255 = vmatmul.mubr.msk.f32.vlgmr.msra.gmra.mrb[36].mxu0 %vm535_vm6, %v3196_v19 }
0x184b   :  { %v8830_v20 = vpop.eup %8829  ;;  %8263 = vmatpush3.xpose.msk.msra.mxu0 %vm535_vm6, %v3430_v15  ;;  %8264 = vmatprep.mubr.msk.f32.mxu0 %vm8952_vm5, %v8951_v46 }
0x184c   :  { %v3194_v21 = vmul.f32 %v8830_v20, %v8826_v28  ;;  %8272 = vmatprep.subr.mxu0 %v8951_v46  ;;  %v61_v28 = vld [vmem:[%s10220_s9 + $0x40] sm:$0xff] }
0x184d   :  { %v8619_v13 = vpack.c.bf16 %v62_v12, %v61_v28 }
0x184e   :  { %8250 = vmatmul.mubr.msk.f32.vlgmr.msra.gmra.mrb[32].mxu1 %vm535_vm6, %v3194_v21  ;;  %8265 = vmatmul.mubr.msk.f32.vlgmr.msra.gmra.mrb[38].mxu0 %vm535_vm6, %v3428_v43 }
0x184f   :  { %8258 = vmatpush3.xpose.msk.msra.mxu1 %vm535_vm6, %v3352_v18  ;;  %8259 = vmatprep.mubr.msk.f32.mxu1 %vm8952_vm5, %v8951_v46 }
0x1850   :  { %8267 = vmatprep.subr.mxu1 %v8951_v46  ;;  %8274 = vmatprep.mubr.msk.f32.mxu0 %vm8952_vm5, %v8951_v46 }
0x1852   :  { %8260 = vmatmul.mubr.msk.f32.vlgmr.msra.gmra.mrb[34].mxu1 %vm535_vm6, %v3350_v23 }
0x1853   :  { %8269 = vmatprep.mubr.msk.f32.mxu1 %vm8952_vm5, %v8951_v46 }
0x191d   :  { %v3345_v26 = vpop.f32.mrb[36].mxu0 }
0x191e   :  { %v8256_v27 = vpop.f32.mrb[37].mxu0 }
0x1921   :  { %v3269_v29 = vpop.f32.mrb[32].mxu1  ;;  %v3501_v30 = vpop.f32.mrb[38].mxu0 }
0x1922   :  { %v8251_v32 = vpop.f32.mrb[33].mxu1  ;;  %v8266_v34 = vpop.f32.mrb[39].mxu0  ;;  %v3508_v35 = vsel %vm2506_vm10, %v3501_v30, -inf }
0x1923   :  { %3509 = vmax.xlane.f32.xlu1 %v3508_v35  ;;  %v64_v32 = vld [vmem:[%s10220_s9 + $0x58] sm:$0xff] }
0x1925   :  { %v3423_v36 = vpop.f32.mrb[34].mxu1 }
0x1926   :  { %v8261_v37 = vpop.f32.mrb[35].mxu1  ;;  %v3505_v38 = vsel %vm2506_vm10, %v3423_v36, -inf }
0x1927   :  { %3506 = vmax.xlane.f32.xlu0 %v3505_v38 }
0x1934   :  { %3603 = vrot.lane.b32.xlu1 %v9426_v10, %s8961_s26 }
0x1938   :  { %3683 = vrot.lane.b32.xlu1 %v9522_v42, %s8964_s29 }
0x193c   :  { %3691 = vrot.lane.b32.xlu1 %v3345_v26, %s8965_s5 }
0x1940   :  { %3681 = vrot.lane.b32.xlu1 %v9524_v48, %s8964_s29 }
0x1944   :  { %3689 = vrot.lane.b32.xlu1 %v3269_v29, %s8965_s5 }
0x19b0   :  { %v3510_v39 = vpop.xlane.xlu1 %3509 }
0x19b1   :  { %v3512_v33 = vsub.f32 %v3501_v30, %v3510_v39  ;;  %v63_v30 = vld [vmem:[%s10220_s9 + $0x50] sm:$0xff] }
0x19b2   :  { %v8623_v38 = vpack.c.bf16 %v64_v32, %v63_v30 }
0x19b3   :  { %v3515_v44 = vmul.f32 1.442695, %v3512_v33 }
0x19b4   :  { %v3604_v49 = vpop.permute.xlu1 %3603  ;;  %v3507_v45 = vpop.xlane.xlu0 %3506 }
0x19b5   :  { %8831 = vpow2.f32 %v3515_v44  ;;  %v3511_v50 = vsub.f32 %v3423_v36, %v3507_v45  ;;  %8273 = vmatpush3.msra.mxu0 %v3604_v49 }
0x19b6   :  { %8613 = vmatprep.subr.bf16.mxu0 %v8967_v16 }
0x19b7   :  { %v3513_v10 = vmul.f32 1.442695, %v3511_v50 }
0x19b8   :  { %v3684_v19 = vpop.permute.xlu1 %3683 }
0x19b9   :  { %8833 = vpow2.f32 %v3513_v10  ;;  %v3704_v43 = vsel %vm535_vm6, %v9484_v1, %v3684_v19  ;;  %v9637_v10 = vld [vmem:[%s10225_s10] sm:$0xf] }
0x19bc   :  { %v3692_v20 = vpop.permute.xlu1 %3691 }
0x19bd   :  { %v3706_v23 = vsel %vm1877_vm8, %v3704_v43, %v3692_v20 }
0x19bf   :  { %v8832_v42 = vpop.eup %8831 }
0x19c0   :  { %v3520_v51 = vsel %vm2506_vm10, %v8832_v42, 0.0  ;;  %v3682_v21 = vpop.permute.xlu1 %3681 }
0x19c1   :  { %3521 = vadd.xlane.f32.xlu0 %v3520_v51  ;;  %v3703_v34 = vsel %vm535_vm6, %v9486_v2, %v3682_v21  ;;  %v9629_v2 = vld [vmem:[%s10227_s12 + $0x8] sm:$0xff]  ;;  %v8950_v21 = vld [vmem:[%s10227_s12] sm:$0xff] }
0x19c2   :  { %v3712_v33 = vrot.slane %v9629_v2, %v9137_v55 }
0x19c3   :  { %v8834_v52 = vpop.eup %8833 }
0x19c4   :  { %v3517_v48 = vsel %vm2506_vm10, %v8834_v52, 0.0  ;;  %v3690_v27 = vpop.permute.xlu1 %3689 }
0x19c5   :  { %3518 = vadd.xlane.f32.xlu0 %v3517_v48  ;;  %v3705_v1 = vsel %vm1877_vm8, %v3703_v34, %v3690_v27 }
0x19db   :  { %3527 = vrot.lane.b32.xlu0 %v9428_v17, %s8961_s26  ;;  %v78_v17 = vld [vmem:[%s10226_s11 + $0x40] sm:$0xff] }
0x19dc   :  { %v8608_v58 = vpack.c.bf16 %v79_v7, %v78_v17  ;;  %v83_v17 = vld [vmem:[%s10226_s11 + $0x68] sm:$0xff] }
0x1a4e   :  { %v3522_v56 = vpop.xlane.xlu0 %3521 }
0x1a4f   :  { %8835 = vrcp.f32 %v3522_v56 }
0x1a52   :  { %v3519_v57 = vpop.xlane.xlu0 %3518 }
0x1a53   :  { %8837 = vrcp.f32 %v3519_v57 }
0x1a56   :  { %v3528_v59 = vpop.permute.xlu0 %3527 }
0x1a57   :  { %8268 = vmatpush3.msra.mxu1 %v3528_v59 }
0x1a58   :  { %8607 = vmatprep.subr.bf16.mxu1 %v8967_v16 }
0x1a59   :  { %v8836_v62 = vpop.eup %8835 }
0x1a5a   :  { %v3526_v54 = vmul.f32 %v8836_v62, %v8832_v42  ;;  %v3912_v42 = vrot.slane %v9637_v10, %v9320_v31 }
0x1a5c   :  { %8275 = vmatmul.mubr.msk.f32.vlgmr.msra.gmra.mrb[40].mxu0 %vm535_vm6, %v3526_v54 }
0x1a5d   :  { %v8838_v5 = vpop.eup %8837  ;;  %8296 = vmatprep.mubr.msk.f32.mxu0 %vm8952_vm5, %v8951_v46 }
0x1a5e   :  { %v3524_v6 = vmul.f32 %v8838_v5, %v8834_v52 }
0x1a60   :  { %8270 = vmatmul.mubr.msk.f32.vlgmr.msra.gmra.mrb[36].mxu1 %vm535_vm6, %v3524_v6  ;;  %v82_v6 = vld [vmem:[%s10226_s11 + $0x60] sm:$0xff] }
0x1a61   :  { %8285 = vmatprep.mubr.msk.f32.mxu1 %vm8952_vm5, %v8951_v46  ;;  %8609 = vmatpush3.bf16.msra.mxu1 %v8608_v58  ;;  %v8614_v7 = vpack.c.bf16 %v83_v17, %v82_v6  ;;  %v84_v58 = vld [vmem:[%s10226_s11 + $0x70] sm:$0xff] }
0x1a62   :  { %8610 = vmatprep.subr.bf16.mxu1 %v8967_v16  ;;  %v8617_v9 = vpack.c.bf16 %v85_v8, %v84_v58 }
0x1a63   :  { %8615 = vmatpush3.bf16.msra.mxu0 %v8614_v7 }
0x1a64   :  { %8616 = vmatprep.subr.bf16.mxu0 %v8967_v16 }
0x1a65   :  { %8612 = vmatpush3.bf16.msra.mxu1 %v8611_v11 }
0x1a66   :  { %8620 = vmatprep.subr.bf16.mxu1 %v8619_v13 }
0x1a67   :  { %8618 = vmatpush3.bf16.msra.mxu0 %v8617_v9 }
0x1a68   :  { %8310 = vmatprep.subr.mxu0 %v8951_v46 }
0x1b2f   :  { %v3675_v14 = vpop.f32.mrb[40].mxu0 }
0x1b30   :  { %3699 = vrot.lane.b32.xlu0 %v3675_v14, %s8966_s30  ;;  %v8276_v15 = vpop.f32.mrb[41].mxu0 }
0x1b31   :  { %v9670_v15 = vsub.s32 7, %v9129_v53 }
0x1b33   :  { %v3599_v60 = vpop.f32.mrb[36].mxu1  ;;  %v2127_v43 = vrot.slane %v8950_v21, %v9670_v15 }
0x1b34   :  { %3697 = vrot.lane.b32.xlu0 %v3599_v60, %s8966_s30  ;;  %v8271_v18 = vpop.f32.mrb[37].mxu1  ;;  %v3806_v60 = vrot.slane %v9629_v2, %v9359_v24 }
0x1ba2   :  { %v3700_v26 = vpop.permute.xlu0 %3699 }
0x1ba3   :  { %v3708_v29 = vsel %vm1880_vm7, %v3706_v23, %v3700_v26  ;;  %v3811_v23 = vrot.slane %v9629_v2, %v9320_v31 }
0x1ba4   :  { %v3715_v35 = vrot.slane %v3708_v29, 7 }
0x1ba6   :  { %v3698_v36 = vpop.permute.xlu0 %3697 }
0x1ba7   :  { %v3707_v37 = vsel %vm1880_vm7, %v3705_v1, %v3698_v36 }
0x1ba8   :  { %v3717_v39 = vsel %vm3716_vm11, %v3715_v35, %v3707_v37 }
0x1ba9   :  { %8286 = vmatmul.mubr.msk.f32.vlgmr.msra.gmra.mrb[38].mxu1 %vm407_vm2, %v3717_v39 }
0x1baa   :  { %8622 = vmatpush3.bf16.msra.mxu1 %v8619_v13  ;;  %8307 = vmatprep.mubr.msk.f32.mxu1 %vm407_vm2, %v9412_v3  ;;  %v9665_v13 = vsub.s32 6, %v9129_v53 }
0x1bab   :  { %8624 = vmatprep.subr.bf16.mxu1 %v8623_v38 }
0x1bac   :  { %v2122_v14 = vrot.slane %v9325_v41, %v9665_v13 }
0x1bae   :  { %8626 = vmatpush3.bf16.msra.mxu1 %v8623_v38  ;;  %v2123_v19 = vmul.f32 %v2122_v14, %v9400_v40 }
0x1baf   :  { %8320 = vmatprep.subr.mxu1 %v8951_v46 }
0x1bb0   :  { %v2128_v26 = vadd.f32 %v2127_v43, %v2123_v19 }
0x1bb1   :  { %8308 = vmatmul.mubr.msk.f32.vlgmr.msra.gmra.mrb[40].mxu1 %vm407_vm2, %v9414_v4 }
0x1bb2   :  { %8322 = vmatprep.mubr.msk.f32.mxu1 %vm8952_vm5, %v8951_v46 }
0x1c7c   :  { %v3786_v44 = vpop.f32.mrb[38].mxu1 }
0x1c7d   :  { %v3787_v49 = vadd.f32 %v3786_v44, %v3712_v33  ;;  %v8287_v45 = vpop.f32.mrb[39].mxu1 }
0x1c7f   :  { %v3790_v50 = vsel %vm2105_vm9, %v3787_v49, 0.0 }
0x1c80   :  { %3791 = vadd.xlane.f32.xlu1 %v3790_v50 }
0x1c84   :  { %v8309_v51 = vpop.f32.mrb[40].mxu1 }
0x1c85   :  { %v3979_v52 = vpop.f32.mrb[41].mxu1  ;;  %v9643_v56 = vadd.f32 %v8309_v51, %v3912_v42 }
0x1c86   :  { %v9641_v48 = vadd.f32 %v3979_v52, %v3912_v42 }
0x1c91   :  { %4066 = vrot.lane.b32.xlu1 %v9643_v56, %s8953_s2 }
0x1d0d   :  { %v3792_v57 = vpop.xlane.xlu1 %3791 }
0x1d0e   :  { %v3793_v59 = vmul.f32 0.03125, %v3792_v57 }
0x1d10   :  { %v3794_v62 = vsub.f32 %v3787_v49, %v3793_v59 }
0x1d11   :  { %v4067_v40 = vpop.permute.xlu1 %4066 }
0x1d12   :  { %v3795_v54 = vmul.f32 %v3794_v62, %v3794_v62 }
0x1d14   :  { %v3796_v5 = vsel %vm2105_vm9, %v3795_v54, 0.0 }
0x1d15   :  { %3797 = vadd.xlane.f32.xlu0 %v3796_v5 }
0x1d2b   :  { %3989 = vrot.lane.b32.xlu0 %v9641_v48, %s8953_s2 }
0x1da2   :  { %v3798_v11 = vpop.xlane.xlu0 %3797 }
0x1da3   :  { %v3799_v28 = vmul.f32 0.03125, %v3798_v11 }
0x1da5   :  { %v3800_v12 = vadd.f32 1e-05, %v3799_v28 }
0x1da6   :  { %v3990_v29 = vpop.permute.xlu0 %3989 }
0x1da7   :  { %8839 = vrsqrt.f32 %v3800_v12 }
0x1db1   :  { %v8840_v18 = vpop.eup %8839 }
0x1db2   :  { %v3802_v20 = vmul.f32 %v8840_v18, %v3794_v62 }
0x1db4   :  { %v3807_v41 = vmul.f32 %v3806_v60, %v3802_v20 }
0x1db6   :  { %v3812_v53 = vadd.f32 %v3811_v23, %v3807_v41 }
0x1db8   :  { %v9681_v27 = vadd.f32 %v3812_v53, %v2128_v26 }
0x1dba   :  { %8297 = vmatmul.mubr.msk.f32.vlgmr.msra.gmra.mrb[42].mxu0 %vm407_vm2, %v9681_v27 }
0x1dbb   :  { %8311 = vmatpush3.xpose.msk.msra.mxu0 %vm535_vm6, %v3990_v29  ;;  %8312 = vmatprep.mubr.msk.f32.mxu0 %vm8952_vm5, %v8951_v46 }
0x1dbc   :  { %8315 = vmatprep.subr.mxu0 %v8951_v46 }
0x1dbe   :  { %8313 = vmatmul.mubr.msk.f32.vlgmr.msra.gmra.mrb[44].mxu0 %vm535_vm6, %v9641_v48 }
0x1dbf   :  { %8316 = vmatpush3.xpose.msk.msra.mxu0 %vm535_vm6, %v4067_v40  ;;  %8317 = vmatprep.mubr.msk.f32.mxu0 %vm8952_vm5, %v8951_v46 }
0x1dc0   :  { %8325 = vmatprep.subr.mxu0 %v8951_v46 }
0x1dc2   :  { %8318 = vmatmul.mubr.msk.f32.vlgmr.msra.gmra.mrb[46].mxu0 %vm535_vm6, %v9643_v56 }
0x1dc3   :  { %8327 = vmatprep.mubr.msk.f32.mxu0 %vm8952_vm5, %v8951_v46 }
0x1e8d   :  { %v9699_v30 = vpop.f32.mrb[42].mxu0 }
0x1e8e   :  { %v8298_v32 = vpop.f32.mrb[43].mxu0 }
0x1e91   :  { %v4061_v34 = vpop.f32.mrb[44].mxu0 }
0x1e92   :  { %v8314_v1 = vpop.f32.mrb[45].mxu0  ;;  %v4142_v35 = vsel %vm535_vm6, %v4061_v34, -inf }
0x1e93   :  { %4143 = vmax.xlane.f32.xlu1 %v4142_v35 }
0x1e95   :  { %v4138_v36 = vpop.f32.mrb[46].mxu0 }
0x1e96   :  { %v8319_v37 = vpop.f32.mrb[47].mxu0  ;;  %v4145_v38 = vsel %vm535_vm6, %v4138_v36, -inf }
0x1e97   :  { %4146 = vmax.xlane.f32.xlu0 %v4145_v38 }
0x1ea4   :  { %4164 = vrot.lane.b32.xlu1 %v9641_v48, %s8954_s1 }
0x1ea8   :  { %4318 = vrot.lane.b32.xlu1 %v9641_v48, %s8955_s20 }
0x1eac   :  { %4396 = vrot.lane.b32.xlu1 %v9643_v56, %s8955_s20 }
0x1ead   :  { %4240 = vrot.lane.b32.xlu0 %v9643_v56, %s8954_s1  ;;  %s10242_s1 = smov 40  }
0x1eb0   :  { %4316 = vrot.lane.b32.xlu1 %v9641_v48, %s8956_s21 }
0x1f20   :  { %v4144_v39 = vpop.xlane.xlu1 %4143 }
0x1f21   :  { %v4148_v33 = vsub.f32 %v4061_v34, %v4144_v39 }
0x1f23   :  { %v4150_v44 = vmul.f32 1.442695, %v4148_v33 }
0x1f24   :  { %v4165_v49 = vpop.permute.xlu1 %4164  ;;  %v4147_v45 = vpop.xlane.xlu0 %4146 }
0x1f25   :  { %8841 = vpow2.f32 %v4150_v44  ;;  %v4149_v50 = vsub.f32 %v4138_v36, %v4147_v45  ;;  %8321 = vmatpush3.msra.mxu1 %v4165_v49 }
0x1f26   :  { %8330 = vmatprep.subr.mxu1 %v8951_v46 }
0x1f27   :  { %v4152_v42 = vmul.f32 1.442695, %v4149_v50 }
0x1f28   :  { %v4241_v51 = vpop.permute.xlu0 %4240  ;;  %v4319_v6 = vpop.permute.xlu1 %4318 }
0x1f29   :  { %8843 = vpow2.f32 %v4152_v42  ;;  %8326 = vmatpush3.msra.mxu0 %v4241_v51 }
0x1f2a   :  { %8335 = vmatprep.subr.mxu0 %v8951_v46 }
0x1f2c   :  { %v4397_v7 = vpop.permute.xlu1 %4396 }
0x1f2f   :  { %v8842_v52 = vpop.eup %8841 }
0x1f30   :  { %v4154_v57 = vsel %vm535_vm6, %v8842_v52, 0.0  ;;  %v4317_v11 = vpop.permute.xlu1 %4316 }
0x1f31   :  { %4155 = vadd.xlane.f32.xlu0 %v4154_v57 }
0x1f33   :  { %v8844_v59 = vpop.eup %8843 }
0x1f34   :  { %v4157_v62 = vsel %vm535_vm6, %v8844_v59, 0.0 }
0x1f35   :  { %4158 = vadd.xlane.f32.xlu0 %v4157_v62 }
0x1f4b   :  { %4394 = vrot.lane.b32.xlu0 %v9643_v56, %s8956_s21 }
0x1fbe   :  { %v4156_v54 = vpop.xlane.xlu0 %4155 }
0x1fbf   :  { %8845 = vrcp.f32 %v4156_v54 }
0x1fc2   :  { %v4159_v5 = vpop.xlane.xlu0 %4158 }
0x1fc3   :  { %8847 = vrcp.f32 %v4159_v5 }
0x1fc6   :  { %v4395_v28 = vpop.permute.xlu0 %4394 }
0x1fc9   :  { %v8846_v17 = vpop.eup %8845 }
0x1fca   :  { %v4161_v58 = vmul.f32 %v8846_v17, %v8842_v52 }
0x1fcc   :  { %8323 = vmatmul.mubr.msk.f32.vlgmr.msra.gmra.mrb[42].mxu1 %vm535_vm6, %v4161_v58 }
0x1fcd   :  { %v8848_v8 = vpop.eup %8847  ;;  %8331 = vmatpush3.xpose.msk.msra.mxu1 %vm535_vm6, %v4319_v6  ;;  %8332 = vmatprep.mubr.msk.f32.mxu1 %vm8952_vm5, %v8951_v46 }
0x1fce   :  { %v4163_v9 = vmul.f32 %v8848_v8, %v8844_v59  ;;  %8340 = vmatprep.subr.mxu1 %v8951_v46 }
0x1fd0   :  { %8328 = vmatmul.mubr.msk.f32.vlgmr.msra.gmra.mrb[48].mxu0 %vm535_vm6, %v4163_v9  ;;  %8333 = vmatmul.mubr.msk.f32.vlgmr.msra.gmra.mrb[44].mxu1 %vm535_vm6, %v4317_v11 }
0x1fd1   :  { %8336 = vmatpush3.xpose.msk.msra.mxu0 %vm535_vm6, %v4397_v7  ;;  %8337 = vmatprep.mubr.msk.f32.mxu0 %vm8952_vm5, %v8951_v46 }
0x1fd2   :  { %8345 = vmatprep.subr.mxu0 %v8951_v46  ;;  %8342 = vmatprep.mubr.msk.f32.mxu1 %vm8952_vm5, %v8951_v46 }
0x1fd4   :  { %8338 = vmatmul.mubr.msk.f32.vlgmr.msra.gmra.mrb[50].mxu0 %vm535_vm6, %v4395_v28 }
0x1fd5   :  { %8347 = vmatprep.mubr.msk.f32.mxu0 %vm8952_vm5, %v8951_v46 }
0x209f   :  { %v9735_v12 = vpop.f32.mrb[42].mxu1 }
0x20a0   :  { %v8324_v14 = vpop.f32.mrb[43].mxu1 }
0x20a3   :  { %v9737_v60 = vpop.f32.mrb[48].mxu0  ;;  %v4390_v18 = vpop.f32.mrb[44].mxu1 }
0x20a4   :  { %v8329_v19 = vpop.f32.mrb[49].mxu0  ;;  %v8334_v20 = vpop.f32.mrb[45].mxu1  ;;  %v4472_v21 = vsel %vm535_vm6, %v4390_v18, -inf }
0x20a5   :  { %4473 = vmax.xlane.f32.xlu1 %v4472_v21 }
0x20a7   :  { %v4468_v43 = vpop.f32.mrb[50].mxu0 }
0x20a8   :  { %v8339_v23 = vpop.f32.mrb[51].mxu0  ;;  %v4475_v41 = vsel %vm535_vm6, %v4468_v43, -inf }
0x20a9   :  { %4476 = vmax.xlane.f32.xlu0 %v4475_v41 }
0x20b6   :  { %4494 = vrot.lane.b32.xlu1 %v9641_v48, %s8957_s22 }
0x20ba   :  { %4648 = vrot.lane.b32.xlu1 %v9641_v48, %s8958_s23 }
0x20be   :  { %4726 = vrot.lane.b32.xlu1 %v9643_v56, %s8958_s23 }
0x20bf   :  { %4570 = vrot.lane.b32.xlu0 %v9643_v56, %s8957_s22 }
0x20c2   :  { %4646 = vrot.lane.b32.xlu1 %v9641_v48, %s8959_s24 }
0x2132   :  { %v4474_v26 = vpop.xlane.xlu1 %4473 }
0x2133   :  { %v4478_v53 = vsub.f32 %v4390_v18, %v4474_v26 }
0x2135   :  { %v4480_v29 = vmul.f32 1.442695, %v4478_v53 }
0x2136   :  { %v4495_v40 = vpop.permute.xlu1 %4494  ;;  %v4477_v32 = vpop.xlane.xlu0 %4476 }
0x2137   :  { %8849 = vpow2.f32 %v4480_v29  ;;  %v4479_v34 = vsub.f32 %v4468_v43, %v4477_v32  ;;  %8341 = vmatpush3.msra.mxu1 %v4495_v40 }
0x2138   :  { %8350 = vmatprep.subr.mxu1 %v8951_v46 }
0x2139   :  { %v4482_v1 = vmul.f32 1.442695, %v4479_v34 }
0x213a   :  { %v4571_v35 = vpop.permute.xlu0 %4570  ;;  %v4649_v49 = vpop.permute.xlu1 %4648 }
0x213b   :  { %8851 = vpow2.f32 %v4482_v1  ;;  %8346 = vmatpush3.msra.mxu0 %v4571_v35 }
0x213c   :  { %8355 = vmatprep.subr.mxu0 %v8951_v46 }
0x213e   :  { %v4727_v50 = vpop.permute.xlu1 %4726 }
0x2141   :  { %v8850_v36 = vpop.eup %8849 }
0x2142   :  { %v4484_v37 = vsel %vm535_vm6, %v8850_v36, 0.0  ;;  %v4647_v57 = vpop.permute.xlu1 %4646 }
0x2143   :  { %4485 = vadd.xlane.f32.xlu0 %v4484_v37 }
0x2145   :  { %v8852_v38 = vpop.eup %8851 }
0x2146   :  { %v4487_v39 = vsel %vm535_vm6, %v8852_v38, 0.0 }
0x2147   :  { %4488 = vadd.xlane.f32.xlu0 %v4487_v39 }
0x215d   :  { %4724 = vrot.lane.b32.xlu0 %v9643_v56, %s8959_s24 }
0x21d0   :  { %v4486_v33 = vpop.xlane.xlu0 %4485 }
0x21d1   :  { %8853 = vrcp.f32 %v4486_v33 }
0x21d4   :  { %v4489_v44 = vpop.xlane.xlu0 %4488 }
0x21d5   :  { %8855 = vrcp.f32 %v4489_v44 }
0x21d8   :  { %v4725_v59 = vpop.permute.xlu0 %4724 }
0x21db   :  { %v8854_v45 = vpop.eup %8853 }
0x21dc   :  { %v4491_v42 = vmul.f32 %v8854_v45, %v8850_v36 }
0x21de   :  { %8343 = vmatmul.mubr.msk.f32.vlgmr.msra.gmra.mrb[46].mxu1 %vm535_vm6, %v4491_v42 }
0x21df   :  { %v8856_v51 = vpop.eup %8855  ;;  %8351 = vmatpush3.xpose.msk.msra.mxu1 %vm535_vm6, %v4649_v49  ;;  %8352 = vmatprep.mubr.msk.f32.mxu1 %vm8952_vm5, %v8951_v46 }
0x21e0   :  { %v4493_v52 = vmul.f32 %v8856_v51, %v8852_v38  ;;  %8360 = vmatprep.subr.mxu1 %v8951_v46 }
0x21e2   :  { %8348 = vmatmul.mubr.msk.f32.vlgmr.msra.gmra.mrb[52].mxu0 %vm535_vm6, %v4493_v52  ;;  %8353 = vmatmul.mubr.msk.f32.vlgmr.msra.gmra.mrb[48].mxu1 %vm535_vm6, %v4647_v57 }
0x21e3   :  { %8356 = vmatpush3.xpose.msk.msra.mxu0 %vm535_vm6, %v4727_v50  ;;  %8357 = vmatprep.mubr.msk.f32.mxu0 %vm8952_vm5, %v8951_v46 }
0x21e4   :  { %8365 = vmatprep.subr.mxu0 %v8951_v46  ;;  %8362 = vmatprep.mubr.msk.f32.mxu1 %vm8952_vm5, %v8951_v46 }
0x21e6   :  { %8358 = vmatmul.mubr.msk.f32.vlgmr.msra.gmra.mrb[54].mxu0 %vm535_vm6, %v4725_v59 }
0x21e7   :  { %8367 = vmatprep.mubr.msk.f32.mxu0 %vm8952_vm5, %v8951_v46 }
0x22b1   :  { %v9773_v62 = vpop.f32.mrb[46].mxu1 }
0x22b2   :  { %v8344_v54 = vpop.f32.mrb[47].mxu1 }
0x22b5   :  { %v9775_v5 = vpop.f32.mrb[52].mxu0  ;;  %v4720_v6 = vpop.f32.mrb[48].mxu1 }
0x22b6   :  { %v8349_v17 = vpop.f32.mrb[53].mxu0  ;;  %v8354_v7 = vpop.f32.mrb[49].mxu1  ;;  %v4802_v58 = vsel %vm535_vm6, %v4720_v6, -inf }
0x22b7   :  { %4803 = vmax.xlane.f32.xlu1 %v4802_v58 }
0x22b9   :  { %v4798_v8 = vpop.f32.mrb[54].mxu0 }
0x22ba   :  { %v8359_v9 = vpop.f32.mrb[55].mxu0  ;;  %v4805_v11 = vsel %vm535_vm6, %v4798_v8, -inf }
0x22bb   :  { %4806 = vmax.xlane.f32.xlu0 %v4805_v11 }
0x22c8   :  { %4824 = vrot.lane.b32.xlu1 %v9641_v48, %s8960_s25 }
0x22cc   :  { %4978 = vrot.lane.b32.xlu1 %v9641_v48, %s8961_s26 }
0x22d0   :  { %5056 = vrot.lane.b32.xlu1 %v9643_v56, %s8961_s26 }
0x22d1   :  { %4900 = vrot.lane.b32.xlu0 %v9643_v56, %s8960_s25 }
0x22d4   :  { %4976 = vrot.lane.b32.xlu1 %v9641_v48, %s8962_s27 }
0x2344   :  { %v4804_v28 = vpop.xlane.xlu1 %4803 }
0x2345   :  { %v4808_v14 = vsub.f32 %v4720_v6, %v4804_v28 }
0x2347   :  { %v4810_v18 = vmul.f32 1.442695, %v4808_v14 }
0x2348   :  { %v4825_v19 = vpop.permute.xlu1 %4824  ;;  %v4807_v20 = vpop.xlane.xlu0 %4806 }
0x2349   :  { %8857 = vpow2.f32 %v4810_v18  ;;  %v4809_v21 = vsub.f32 %v4798_v8, %v4807_v20  ;;  %8361 = vmatpush3.msra.mxu1 %v4825_v19 }
0x234a   :  { %8370 = vmatprep.subr.mxu1 %v8951_v46 }
0x234b   :  { %v4812_v43 = vmul.f32 1.442695, %v4809_v21 }
0x234c   :  { %v4901_v23 = vpop.permute.xlu0 %4900  ;;  %v4979_v34 = vpop.permute.xlu1 %4978 }
0x234d   :  { %8859 = vpow2.f32 %v4812_v43  ;;  %8366 = vmatpush3.msra.mxu0 %v4901_v23 }
0x234e   :  { %8375 = vmatprep.subr.mxu0 %v8951_v46 }
0x2350   :  { %v5057_v35 = vpop.permute.xlu1 %5056 }
0x2353   :  { %v8858_v41 = vpop.eup %8857 }
0x2354   :  { %v4814_v26 = vsel %vm535_vm6, %v8858_v41, 0.0  ;;  %v4977_v39 = vpop.permute.xlu1 %4976 }
0x2355   :  { %4815 = vadd.xlane.f32.xlu0 %v4814_v26 }
0x2357   :  { %v8860_v53 = vpop.eup %8859 }
0x2358   :  { %v4817_v29 = vsel %vm535_vm6, %v8860_v53, 0.0 }
0x2359   :  { %4818 = vadd.xlane.f32.xlu0 %v4817_v29  ;;  %v89_v29 = vld [vmem:[%s10226_s11 + $0x98] sm:$0xff] }
0x236f   :  { %5054 = vrot.lane.b32.xlu0 %v9643_v56, %s8962_s27 }
0x23e2   :  { %v4816_v40 = vpop.xlane.xlu0 %4815 }
0x23e3   :  { %8861 = vrcp.f32 %v4816_v40 }
0x23e6   :  { %v4819_v32 = vpop.xlane.xlu0 %4818 }
0x23e7   :  { %8863 = vrcp.f32 %v4819_v32 }
0x23ea   :  { %v5055_v33 = vpop.permute.xlu0 %5054 }
0x23ed   :  { %v8862_v1 = vpop.eup %8861 }
0x23ee   :  { %v4821_v36 = vmul.f32 %v8862_v1, %v8858_v41  ;;  %v87_v41 = vld [vmem:[%s10226_s11 + $0x88] sm:$0xff] }
0x23f0   :  { %8363 = vmatmul.mubr.msk.f32.vlgmr.msra.gmra.mrb[50].mxu1 %vm535_vm6, %v4821_v36 }
0x23f1   :  { %v8864_v37 = vpop.eup %8863  ;;  %8371 = vmatpush3.xpose.msk.msra.mxu1 %vm535_vm6, %v4979_v34  ;;  %8372 = vmatprep.mubr.msk.f32.mxu1 %vm8952_vm5, %v8951_v46 }
0x23f2   :  { %v4823_v38 = vmul.f32 %v8864_v37, %v8860_v53  ;;  %8380 = vmatprep.subr.mxu1 %v8951_v46  ;;  %v88_v53 = vld [vmem:[%s10226_s11 + $0x90] sm:$0xff] }
0x23f3   :  { %v8631_v40 = vpack.c.bf16 %v89_v29, %v88_v53  ;;  %v92_v29 = vld [vmem:[%s10226_s11 + $0xb0] sm:$0xff] }
0x23f4   :  { %8368 = vmatmul.mubr.msk.f32.vlgmr.msra.gmra.mrb[56].mxu0 %vm535_vm6, %v4823_v38  ;;  %8373 = vmatmul.mubr.msk.f32.vlgmr.msra.gmra.mrb[52].mxu1 %vm535_vm6, %v4977_v39 }
0x23f5   :  { %8376 = vmatpush3.xpose.msk.msra.mxu0 %vm535_vm6, %v5057_v35  ;;  %8377 = vmatprep.mubr.msk.f32.mxu0 %vm8952_vm5, %v8951_v46 }
0x23f6   :  { %8385 = vmatprep.subr.mxu0 %v8951_v46  ;;  %8382 = vmatprep.mubr.msk.f32.mxu1 %vm8952_vm5, %v8951_v46 }
0x23f8   :  { %8378 = vmatmul.mubr.msk.f32.vlgmr.msra.gmra.mrb[58].mxu0 %vm535_vm6, %v5055_v33 }
0x23f9   :  { %8387 = vmatprep.mubr.msk.f32.mxu0 %vm8952_vm5, %v8951_v46 }
0x24c3   :  { %v4896_v44 = vpop.f32.mrb[50].mxu1 }
0x24c4   :  { %v8364_v49 = vpop.f32.mrb[51].mxu1 }
0x24c7   :  { %v4972_v45 = vpop.f32.mrb[56].mxu0  ;;  %v5050_v50 = vpop.f32.mrb[52].mxu1 }
0x24c8   :  { %v8369_v42 = vpop.f32.mrb[57].mxu0  ;;  %v8374_v51 = vpop.f32.mrb[53].mxu1  ;;  %v5132_v52 = vsel %vm535_vm6, %v5050_v50, -inf }
0x24c9   :  { %5133 = vmax.xlane.f32.xlu1 %v5132_v52 }
0x24cb   :  { %v5128_v57 = vpop.f32.mrb[58].mxu0 }
0x24cc   :  { %v8379_v59 = vpop.f32.mrb[59].mxu0  ;;  %v5135_v54 = vsel %vm535_vm6, %v5128_v57, -inf }
0x24cd   :  { %5136 = vmax.xlane.f32.xlu0 %v5135_v54 }
0x24da   :  { %5154 = vrot.lane.b32.xlu1 %v9641_v48, %s10242_s1 }
0x24de   :  { %5308 = vrot.lane.b32.xlu1 %v9773_v62, %s8964_s29 }
0x24e2   :  { %5310 = vrot.lane.b32.xlu1 %v9775_v5, %s8964_s29 }
0x24e6   :  { %5316 = vrot.lane.b32.xlu1 %v4896_v44, %s8965_s5 }
0x2556   :  { %v5134_v6 = vpop.xlane.xlu1 %5133 }
0x2557   :  { %v5138_v17 = vsub.f32 %v5050_v50, %v5134_v6 }
0x2559   :  { %v5140_v7 = vmul.f32 1.442695, %v5138_v17 }
0x255a   :  { %v5155_v58 = vpop.permute.xlu1 %5154  ;;  %v5137_v8 = vpop.xlane.xlu0 %5136 }
0x255b   :  { %8865 = vpow2.f32 %v5140_v7  ;;  %v5139_v9 = vsub.f32 %v5128_v57, %v5137_v8  ;;  %8381 = vmatpush3.msra.mxu1 %v5155_v58 }
0x255d   :  { %v5142_v11 = vmul.f32 1.442695, %v5139_v9 }
0x255e   :  { %v5309_v36 = vpop.permute.xlu1 %5308 }
0x255f   :  { %8867 = vpow2.f32 %v5142_v11  ;;  %v5330_v39 = vsel %vm535_vm6, %v9735_v12, %v5309_v36  ;;  %v3817_v12 = vrot.slane %v9629_v2, %v9354_v22 }
0x2561   :  { %v3888_v57 = vadd.f32 %v9699_v30, %v3817_v12 }
0x2562   :  { %v5311_v37 = vpop.permute.xlu1 %5310 }
0x2563   :  { %v5331_v50 = vsel %vm535_vm6, %v9737_v60, %v5311_v37  ;;  %v3892_v59 = vmul.f32 0.70710677, %v3888_v57  ;;  %v5339_v60 = vrot.slane %v9629_v2, %v9665_v13  ;;  %v3891_v17 = vmul.f32 0.5, %v3888_v57 }
0x2565   :  { %v8866_v28 = vpop.eup %8865 }
0x2566   :  { %v5144_v48 = vsel %vm535_vm6, %v8866_v28, 0.0  ;;  %v5317_v38 = vpop.permute.xlu1 %5316 }
0x2567   :  { %5145 = vadd.xlane.f32.xlu0 %v5144_v48  ;;  %v5332_v33 = vsel %vm1877_vm8, %v5330_v39, %v5317_v38  ;;  %v3900_v39 = vrot.slane %v9629_v2, %v9362_v25 }
0x2569   :  { %v8868_v62 = vpop.eup %8867 }
0x256a   :  { %v5147_v14 = vsel %vm535_vm6, %v8868_v62, 0.0 }
0x256b   :  { %5148 = vadd.xlane.f32.xlu0 %v5147_v14 }
0x2581   :  { %5230 = vrot.lane.b32.xlu0 %v9643_v56, %s10242_s1  ;;  %v86_v56 = vld [vmem:[%s10226_s11 + $0x80] sm:$0xff] }
0x2582   :  { %v8627_v26 = vpack.c.bf16 %v87_v41, %v86_v56 }
0x2584   :  { %8628 = vmatprep.subr.bf16.mxu1 %v8627_v26 }
0x2585   :  { %5318 = vrot.lane.b32.xlu0 %v4972_v45, %s8965_s5 }
0x25f4   :  { %v5146_v5 = vpop.xlane.xlu0 %5145 }
0x25f5   :  { %8869 = vrcp.f32 %v5146_v5 }
0x25f8   :  { %v5149_v18 = vpop.xlane.xlu0 %5148 }
0x25f9   :  { %8871 = vrcp.f32 %v5149_v18 }
0x25fa   :  { %8873 = verf.f32 %v3892_v59  ;;  %v3902_v59 = vmul.f32 %v3900_v39, %v9414_v4 }
0x25fc   :  { %v5231_v19 = vpop.permute.xlu0 %5230 }
0x25fd   :  { %8386 = vmatpush3.msra.mxu0 %v5231_v19 }
0x25ff   :  { %v8870_v20 = vpop.eup %8869 }
0x2600   :  { %v5151_v21 = vmul.f32 %v8870_v20, %v8866_v28  ;;  %v5319_v44 = vpop.permute.xlu0 %5318 }
0x2601   :  { %v5333_v42 = vsel %vm1877_vm8, %v5331_v50, %v5319_v44  ;;  %v5450_v44 = vrot.slane %v9629_v2, %v9670_v15  ;;  %v3901_v50 = vmul.f32 %v3900_v39, %v9412_v3 }
0x2602   :  { %8383 = vmatmul.mubr.msk.f32.vlgmr.msra.gmra.mrb[54].mxu1 %vm535_vm6, %v5151_v21 }
0x2603   :  { %v8872_v43 = vpop.eup %8871  ;;  %8630 = vmatpush3.bf16.msra.mxu1 %v8627_v26  ;;  %v91_v26 = vld [vmem:[%s10226_s11 + $0xa8] sm:$0xff] }
0x2604   :  { %v5153_v23 = vmul.f32 %v8872_v43, %v8868_v62  ;;  %8632 = vmatprep.subr.bf16.mxu1 %v8631_v40  ;;  %v8874_v54 = vpop.eup %8873 }
0x2605   :  { %v3894_v6 = vadd.f32 1.0, %v8874_v54 }
0x2606   :  { %8388 = vmatmul.mubr.msk.f32.vlgmr.msra.gmra.mrb[60].mxu0 %vm535_vm6, %v5153_v23 }
0x2607   :  { %8634 = vmatpush3.bf16.msra.mxu1 %v8631_v40  ;;  %v3895_v7 = vmul.f32 %v3894_v6, %v3891_v17  ;;  %v93_v40 = vld [vmem:[%s10226_s11 + $0xb8] sm:$0xff] }
0x2608   :  { %8643 = vmatprep.subr.bf16.mxu1 %v8967_v16 }
0x2609   :  { %v9862_v30 = vadd.f32 %v3895_v7, %v9681_v27  ;;  %v90_v27 = vld [vmem:[%s10226_s11 + $0xa0] sm:$0xff] }
0x260a   :  { %v8635_v53 = vpack.c.bf16 %v91_v26, %v90_v27 }
0x260b   :  { %v5558_v62 = vsel %vm2105_vm9, %v9862_v30, 0.0 }
0x260c   :  { %8636 = vmatprep.subr.bf16.mxu0 %v8635_v53 }
0x260d   :  { %8638 = vmatpush3.bf16.msra.mxu0 %v8635_v53 }
0x26d5   :  { %v5226_v32 = vpop.f32.mrb[54].mxu1 }
0x26d6   :  { %5324 = vrot.lane.b32.xlu1 %v5226_v32, %s8966_s30  ;;  %v8384_v34 = vpop.f32.mrb[55].mxu1  ;;  %v8639_v32 = vpack.c.bf16 %v93_v40, %v92_v29 }
0x26d8   :  { %8640 = vmatprep.subr.bf16.mxu0 %v8639_v32 }
0x26d9   :  { %v5302_v1 = vpop.f32.mrb[60].mxu0  ;;  %8642 = vmatpush3.bf16.msra.mxu0 %v8639_v32  ;;  %v66_v32 = vld [vmem:[%s10220_s9 + $0x68] sm:$0xff] }
0x26da   :  { %5326 = vrot.lane.b32.xlu0 %v5302_v1, %s8966_s30  ;;  %v8389_v35 = vpop.f32.mrb[61].mxu0 }
0x2748   :  { %v5325_v49 = vpop.permute.xlu1 %5324 }
0x2749   :  { %v5334_v45 = vsel %vm1880_vm7, %v5332_v33, %v5325_v49  ;;  %v9885_v33 = vld [vmem:[%s10227_s12 + $0x10] sm:$0xff]  ;;  %s8969_s12 = smov 127  }
0x274a   :  { %8398 = vmatprep.mubr.msk.f32.mxu1 %vm407_vm2, %v5334_v45 }
0x274c   :  { %v5327_v51 = vpop.permute.xlu0 %5326 }
0x274d   :  { %v5335_v52 = vsel %vm1880_vm7, %v5333_v42, %v5327_v51  ;;  %v3906_v42 = vrot.slane %v9629_v2, %v9375_v47  ;;  %v5456_v51 = vrot.slane %v9885_v33, %v9137_v55  ;;  %v5464_v2 = vrot.slane %v9885_v33, %v9359_v24 }
0x274e   :  { %8399 = vmatmul.mubr.msk.f32.vlgmr.msra.gmra.mrb[56].mxu1 %vm407_vm2, %v5335_v52 }
0x274f   :  { %8420 = vmatprep.mubr.msk.f32.mxu1 %vm8952_vm5, %v8951_v46  ;;  %v3907_v54 = vadd.f32 %v3906_v42, %v3901_v50  ;;  %v3908_v7 = vadd.f32 %v3906_v42, %v3902_v59 }
0x2821   :  { %v8400_v58 = vpop.f32.mrb[56].mxu1 }
0x2822   :  { %v5418_v8 = vadd.f32 %v8400_v58, %v5339_v60  ;;  %v5412_v9 = vpop.f32.mrb[57].mxu1 }
0x2823   :  { %v5413_v11 = vadd.f32 %v5412_v9, %v5339_v60 }
0x2824   :  { %v5424_v28 = vsel %vm407_vm2, %v5418_v8, 0.0 }
0x2825   :  { %5425 = vadd.xlane.f32.xlu0 %v5424_v28  ;;  %v5421_v48 = vsel %vm407_vm2, %v5413_v11, 0.0 }
0x2826   :  { %5422 = vadd.xlane.f32.xlu1 %v5421_v48 }
0x282a   :  { %5559 = vadd.xlane.f32.xlu1 %v5558_v62 }
0x28b2   :  { %v5426_v14 = vpop.xlane.xlu0 %5425 }
0x28b3   :  { %v5428_v5 = vmul.f32 0.03125, %v5426_v14  ;;  %v5423_v18 = vpop.xlane.xlu1 %5422 }
0x28b4   :  { %v5427_v19 = vmul.f32 0.03125, %v5423_v18 }
0x28b5   :  { %v5430_v20 = vsub.f32 %v5418_v8, %v5428_v5 }
0x28b6   :  { %v5429_v21 = vsub.f32 %v5413_v11, %v5427_v19 }
0x28b7   :  { %v5432_v56 = vmul.f32 %v5430_v20, %v5430_v20  ;;  %v5560_v62 = vpop.xlane.xlu1 %5559 }
0x28b8   :  { %v5431_v43 = vmul.f32 %v5429_v21, %v5429_v21  ;;  %v5561_v5 = vmul.f32 0.03125, %v5560_v62 }
0x28b9   :  { %v5436_v41 = vsel %vm407_vm2, %v5432_v56, 0.0 }
0x28ba   :  { %v5433_v23 = vsel %vm407_vm2, %v5431_v43, 0.0  ;;  %v5562_v56 = vsub.f32 %v9862_v30, %v5561_v5  ;;  %v65_v30 = vld [vmem:[%s10220_s9 + $0x60] sm:$0xff] }
0x28bb   :  { %5434 = vadd.xlane.f32.xlu0 %v5433_v23 }
0x28bc   :  { %v5563_v29 = vmul.f32 %v5562_v56, %v5562_v56 }
0x28be   :  { %v5564_v40 = vsel %vm2105_vm9, %v5563_v29, 0.0 }
0x28bf   :  { %5437 = vadd.xlane.f32.xlu0 %v5436_v41 }
0x2948   :  { %v5435_v34 = vpop.xlane.xlu0 %5434 }
0x2949   :  { %v5439_v1 = vmul.f32 0.03125, %v5435_v34  ;;  %v67_v34 = vld [vmem:[%s10220_s9 + $0x70] sm:$0xff] }
0x294b   :  { %v5441_v35 = vadd.f32 1e-05, %v5439_v1  ;;  %v8644_v1 = vpack.c.bf16 %v66_v32, %v65_v30 }
0x294c   :  { %v5438_v36 = vpop.xlane.xlu0 %5437 }
0x294d   :  { %8875 = vrsqrt.f32 %v5441_v35  ;;  %v5440_v37 = vmul.f32 0.03125, %v5438_v36  ;;  %v68_v35 = vld [vmem:[%s10220_s9 + $0x78] sm:$0xff]  ;;  %8645 = vmatpush3.bf16.msra.mxu1 %v8644_v1 }
0x294e   :  { %v8647_v36 = vpack.c.bf16 %v68_v35, %v67_v34  ;;  %8646 = vmatprep.subr.bf16.mxu1 %v8967_v16 }
0x294f   :  { %v5442_v38 = vadd.f32 1e-05, %v5440_v37  ;;  %v8721_v37 = vpack.i.bf16 %v66_v32, %v65_v30 }
0x2951   :  { %8877 = vrsqrt.f32 %v5442_v38  ;;  %8648 = vmatpush3.bf16.msra.mxu1 %v8647_v36  ;;  %v8726_v38 = vpack.i.bf16 %v68_v35, %v67_v34 }
0x2952   :  { %8434 = vmatprep.subr.mxu1 %v8951_v46 }
0x2957   :  { %v8876_v49 = vpop.eup %8875 }
0x2958   :  { %v5445_v45 = vmul.f32 %v8876_v49, %v5429_v21 }
0x295a   :  { %v5451_v52 = vmul.f32 %v5450_v44, %v5445_v45 }
0x295b   :  { %v8878_v12 = vpop.eup %8877 }
0x295c   :  { %v5446_v57 = vmul.f32 %v8878_v12, %v5430_v20  ;;  %v5457_v6 = vadd.f32 %v5456_v51, %v5451_v52 }
0x295e   :  { %v5452_v60 = vmul.f32 %v5450_v44, %v5446_v57  ;;  %v5459_v17 = vadd.f32 %v5457_v6, %v3907_v54 }
0x2960   :  { %v5458_v58 = vadd.f32 %v5456_v51, %v5452_v60  ;;  %8409 = vmatprep.mubr.msk.f32.mxu0 %vm407_vm2, %v5459_v17 }
0x2962   :  { %v5460_v3 = vadd.f32 %v5458_v58, %v3908_v7  ;;  %v5610_v7 = vrot.slane %v9637_v10, %v9354_v22 }
0x2964   :  { %8410 = vmatmul.mubr.msk.f32.vlgmr.msra.gmra.mrb[62].mxu0 %vm407_vm2, %v5460_v3 }
0x2a37   :  { %v8411_v8 = vpop.f32.mrb[62].mxu0 }
0x2a38   :  { %v5543_v9 = vadd.f32 %v8411_v8, %v5464_v2  ;;  %v5537_v11 = vpop.f32.mrb[63].mxu0 }
0x2a39   :  { %v5538_v28 = vadd.f32 %v5537_v11, %v5464_v2 }
0x2a3a   :  { %v5549_v48 = vmul.f32 0.70710677, %v5543_v9  ;;  %v5547_v19 = vmul.f32 0.5, %v5543_v9 }
0x2a3b   :  { %v5548_v4 = vmul.f32 0.70710677, %v5538_v28  ;;  %v5546_v21 = vmul.f32 0.5, %v5538_v28 }
0x2a3c   :  { %8879 = verf.f32 %v5549_v48 }
0x2a3d   :  { %8881 = verf.f32 %v5548_v4 }
0x2a46   :  { %v8880_v14 = vpop.eup %8879 }
0x2a47   :  { %v8882_v18 = vpop.eup %8881  ;;  %v5553_v20 = vadd.f32 1.0, %v8880_v14 }
0x2a48   :  { %v5552_v43 = vadd.f32 1.0, %v8882_v18 }
0x2a49   :  { %v5555_v23 = vmul.f32 %v5553_v20, %v5547_v19 }
0x2a4a   :  { %v5554_v24 = vmul.f32 %v5552_v43, %v5546_v21 }
0x2a4b   :  { %v9900_v41 = vadd.f32 %v5555_v23, %v5460_v3 }
0x2a4c   :  { %v9902_v27 = vadd.f32 %v5554_v24, %v5459_v17 }
0x2a4d   :  { %v5584_v26 = vsel %vm407_vm2, %v9900_v41, 0.0 }
0x2a4e   :  { %5585 = vadd.xlane.f32.xlu1 %v5584_v26  ;;  %v5581_v53 = vsel %vm407_vm2, %v9902_v27, 0.0 }
0x2a4f   :  { %5582 = vadd.xlane.f32.xlu0 %v5581_v53 }
0x2a53   :  { %5565 = vadd.xlane.f32.xlu0 %v5564_v40 }
0x2adb   :  { %v5586_v39 = vpop.xlane.xlu1 %5585 }
0x2adc   :  { %v5588_v44 = vmul.f32 0.03125, %v5586_v39  ;;  %v5583_v49 = vpop.xlane.xlu0 %5582 }
0x2add   :  { %v5587_v45 = vmul.f32 0.03125, %v5583_v49 }
0x2ade   :  { %v5590_v50 = vsub.f32 %v9900_v41, %v5588_v44 }
0x2adf   :  { %v5589_v42 = vsub.f32 %v9902_v27, %v5587_v45 }
0x2ae0   :  { %v5566_v51 = vpop.xlane.xlu0 %5565  ;;  %v5592_v52 = vmul.f32 %v5590_v50, %v5590_v50 }
0x2ae1   :  { %v5567_v12 = vmul.f32 0.03125, %v5566_v51  ;;  %v5591_v57 = vmul.f32 %v5589_v42, %v5589_v42 }
0x2ae2   :  { %v5596_v59 = vsel %vm407_vm2, %v5592_v52, 0.0 }
0x2ae3   :  { %v5568_v54 = vadd.f32 1e-05, %v5567_v12  ;;  %5597 = vadd.xlane.f32.xlu0 %v5596_v59  ;;  %v5593_v6 = vsel %vm407_vm2, %v5591_v57, 0.0 }
0x2ae4   :  { %5594 = vadd.xlane.f32.xlu1 %v5593_v6 }
0x2ae5   :  { %8883 = vrsqrt.f32 %v5568_v54 }
0x2aef   :  { %v8884_v60 = vpop.eup %8883 }
0x2af0   :  { %v9927_v17 = vmul.f32 %v8884_v60, %v5562_v56 }
0x2af2   :  { %8421 = vmatmul.mubr.msk.f32.vlgmr.msra.gmra.mrb[58].mxu1 %vm407_vm2, %v9927_v17 }
0x2af3   :  { %8436 = vmatprep.mubr.msk.f32.mxu1 %vm8952_vm5, %v8951_v46 }
0x2af5   :  { %8722 = vrot.lane.b32.xlu1 %v8721_v37, %s8953_s2 }
0x2af9   :  { %8727 = vrot.lane.b32.xlu0 %v8726_v38, %s8953_s2  ;;  %5701 = vrot.lane.b32.xlu1 %v5610_v7, %s8953_s2 }
0x2b70   :  { %v5598_v58 = vpop.xlane.xlu0 %5597 }
0x2b71   :  { %v5600_v3 = vmul.f32 0.03125, %v5598_v58  ;;  %v5595_v2 = vpop.xlane.xlu1 %5594 }
0x2b72   :  { %v5599_v8 = vmul.f32 0.03125, %v5595_v2 }
0x2b73   :  { %v5602_v9 = vadd.f32 1e-05, %v5600_v3 }
0x2b74   :  { %v5601_v11 = vadd.f32 1e-05, %v5599_v8  ;;  %v8728_v28 = vpop.permute.xlu0 %8727 }
0x2b75   :  { %8885 = vrsqrt.f32 %v5602_v9  ;;  %v8723_v48 = vpop.permute.xlu1 %8722  ;;  %v8730_v4 = vunpack.i.h.bf16 %v8728_v28  ;;  %v8729_v62 = vunpack.i.l.bf16 %v8728_v28 }
0x2b76   :  { %8887 = vrsqrt.f32 %v5601_v11  ;;  %v8725_v14 = vunpack.i.h.bf16 %v8723_v48  ;;  %v8724_v5 = vunpack.i.l.bf16 %v8723_v48 }
0x2b77   :  { %v8653_v19 = vpack.c.bf16 %v8730_v4, %v8729_v62 }
0x2b78   :  { %v8649_v18 = vpack.c.bf16 %v8725_v14, %v8724_v5 }
0x2b79   :  { %v5702_v53 = vpop.permute.xlu1 %5701 }
0x2b7a   :  { %8650 = vmatprep.subr.bf16.mxu0 %v8649_v18 }
0x2b7b   :  { %8652 = vmatpush3.bf16.msra.mxu0 %v8649_v18 }
0x2b7c   :  { %8654 = vmatprep.subr.bf16.mxu0 %v8653_v19 }
0x2b7f   :  { %v8886_v10 = vpop.eup %8885  ;;  %8656 = vmatpush3.bf16.msra.mxu0 %v8653_v19 }
0x2b80   :  { %v8888_v20 = vpop.eup %8887  ;;  %8439 = vmatprep.subr.mxu0 %v8951_v46  ;;  %v5606_v43 = vmul.f32 %v8886_v10, %v5590_v50 }
0x2b81   :  { %v5605_v21 = vmul.f32 %v8888_v20, %v5589_v42 }
0x2b83   :  { %8431 = vmatprep.mubr.msk.f32.mxu0 %vm407_vm2, %v5605_v21 }
0x2b84   :  { %8432 = vmatmul.mubr.msk.f32.vlgmr.msra.gmra.mrb[64].mxu0 %vm407_vm2, %v5606_v43 }
0x2b85   :  { %8441 = vmatprep.mubr.msk.f32.mxu0 %vm8952_vm5, %v8951_v46 }
0x2bc5   :  { %v5680_v23 = vpop.f32.mrb[58].mxu1 }
0x2bc6   :  { %v8422_v56 = vpop.f32.mrb[59].mxu1  ;;  %v5681_v24 = vadd.f32 %v5680_v23, %v5610_v7 }
0x2bc8   :  { %v5792_v26 = vrot.slane %v5681_v24, %v9423_v61 }
0x2bca   :  { %v5793_v29 = vcombine.high %v5792_v26, %v5792_v26  ;;  %v5800_v35 = vrot.slane %v5792_v26, %v9423_v61 }
0x2bcc   :  { %v5807_v1 = vrot.slane %v5793_v29, %v9423_v61  ;;  %v9977_v7 = vrot.slane %v5800_v35, %v9137_v55 }
0x2bce   :  { %v9982_v58 = vrot.slane %v5807_v1, %v9137_v55 }
0x2c57   :  { %v8433_v40 = vpop.f32.mrb[64].mxu0 }
0x2c58   :  { %v9944_v30 = vadd.f32 %v8433_v40, %v5702_v53  ;;  %v5776_v32 = vpop.f32.mrb[65].mxu0 }
0x2c59   :  { %v9946_v34 = vadd.f32 %v5776_v32, %v5702_v53 }
0x2c5a   :  { %8440 = vmatpush3.xpose.msk.msra.mxu0 %vm535_vm6, %v9944_v30 }
0x2c5b   :  { %8435 = vmatpush3.xpose.msk.msra.mxu1 %vm535_vm6, %v9946_v34  ;;  %8449 = vmatprep.subr.mxu0 %v8951_v46 }
0x2c5c   :  { %8444 = vmatprep.subr.mxu1 %v8951_v46 }
0x2c5d   :  { %8442 = vmatmul.mubr.msk.f32.vlgmr.msra.gmra.mrb[66].mxu0 %vm535_vm6, %v5807_v1 }
0x2c5e   :  { %8437 = vmatmul.mubr.msk.f32.vlgmr.msra.gmra.mrb[60].mxu1 %vm535_vm6, %v5800_v35  ;;  %8451 = vmatprep.mubr.msk.f32.mxu0 %vm8952_vm5, %v8951_v46 }
0x2c5f   :  { %8446 = vmatprep.mubr.msk.f32.mxu1 %vm8952_vm5, %v8951_v46 }
0x2d30   :  { %v5954_v36 = vpop.f32.mrb[66].mxu0 }
0x2d31   :  { %v5879_v37 = vpop.f32.mrb[60].mxu1  ;;  %v8443_v38 = vpop.f32.mrb[67].mxu0  ;;  %v5961_v39 = vsel %vm2506_vm10, %v5954_v36, -inf }
0x2d32   :  { %5962 = vmax.xlane.f32.xlu1 %v5961_v39  ;;  %v8438_v44 = vpop.f32.mrb[61].mxu1  ;;  %v5958_v61 = vsel %vm2506_vm10, %v5879_v37, -inf }
0x2d33   :  { %5959 = vmax.xlane.f32.xlu0 %v5958_v61 }
0x2d43   :  { %5980 = vrot.lane.b32.xlu1 %v9946_v34, %s8953_s2 }
0x2d47   :  { %6220 = vrot.lane.b32.xlu1 %v9944_v30, %s8956_s21 }
0x2d49   :  { %6056 = vrot.lane.b32.xlu0 %v9944_v30, %s8953_s2 }
0x2d4b   :  { %6138 = vrot.lane.b32.xlu1 %v9946_v34, %s8956_s21 }
0x2dbf   :  { %v5963_v49 = vpop.xlane.xlu1 %5962 }
0x2dc0   :  { %v5965_v45 = vsub.f32 %v5954_v36, %v5963_v49  ;;  %v5960_v50 = vpop.xlane.xlu0 %5959 }
0x2dc1   :  { %v5964_v42 = vsub.f32 %v5879_v37, %v5960_v50 }
0x2dc2   :  { %v5968_v51 = vmul.f32 1.442695, %v5965_v45 }
0x2dc3   :  { %v5966_v52 = vmul.f32 1.442695, %v5964_v42  ;;  %v5981_v12 = vpop.permute.xlu1 %5980 }
0x2dc4   :  { %8889 = vpow2.f32 %v5968_v51  ;;  %8445 = vmatpush3.msra.mxu1 %v5981_v12  ;;  %v6057_v57 = vpop.permute.xlu0 %6056 }
0x2dc5   :  { %8891 = vpow2.f32 %v5966_v52  ;;  %8450 = vmatpush3.msra.mxu0 %v6057_v57  ;;  %8454 = vmatprep.subr.mxu1 %v8951_v46 }
0x2dc6   :  { %8459 = vmatprep.subr.mxu0 %v8951_v46 }
0x2dc7   :  { %v6221_v3 = vpop.permute.xlu1 %6220 }
0x2dcb   :  { %v6139_v2 = vpop.permute.xlu1 %6138 }
0x2dce   :  { %v8890_v59 = vpop.eup %8889 }
0x2dcf   :  { %v8892_v54 = vpop.eup %8891  ;;  %v5973_v6 = vsel %vm2506_vm10, %v8890_v59, 0.0 }
0x2dd0   :  { %5974 = vadd.xlane.f32.xlu0 %v5973_v6  ;;  %v5970_v60 = vsel %vm2506_vm10, %v8892_v54, 0.0 }
0x2dd1   :  { %5971 = vadd.xlane.f32.xlu1 %v5970_v60 }
0x2de2   :  { %6136 = vrot.lane.b32.xlu1 %v9977_v7, %s8956_s21 }
0x2de6   :  { %6218 = vrot.lane.b32.xlu0 %v9982_v58, %s8956_s21 }
0x2e5d   :  { %v5975_v8 = vpop.xlane.xlu0 %5974 }
0x2e5e   :  { %8893 = vrcp.f32 %v5975_v8  ;;  %v5972_v9 = vpop.xlane.xlu1 %5971 }
0x2e5f   :  { %8895 = vrcp.f32 %v5972_v9 }
0x2e61   :  { %v6219_v55 = vpop.permute.xlu0 %6218 }
0x2e62   :  { %v6137_v62 = vpop.permute.xlu1 %6136 }
0x2e68   :  { %v8894_v11 = vpop.eup %8893 }
0x2e69   :  { %v8896_v28 = vpop.eup %8895  ;;  %v5979_v48 = vmul.f32 %v8894_v11, %v8890_v59 }
0x2e6a   :  { %v5977_v4 = vmul.f32 %v8896_v28, %v8892_v54 }
0x2e6b   :  { %8452 = vmatmul.mubr.msk.f32.vlgmr.msra.gmra.mrb[68].mxu0 %vm535_vm6, %v5979_v48 }
0x2e6c   :  { %8460 = vmatpush3.xpose.msk.msra.mxu0 %vm535_vm6, %v6221_v3  ;;  %8447 = vmatmul.mubr.msk.f32.vlgmr.msra.gmra.mrb[62].mxu1 %vm535_vm6, %v5977_v4 }
0x2e6d   :  { %8455 = vmatpush3.xpose.msk.msra.mxu1 %vm535_vm6, %v6139_v2  ;;  %8461 = vmatprep.mubr.msk.f32.mxu0 %vm8952_vm5, %v8951_v46 }
0x2e6e   :  { %8456 = vmatprep.mubr.msk.f32.mxu1 %vm8952_vm5, %v8951_v46  ;;  %8469 = vmatprep.subr.mxu0 %v8951_v46 }
0x2e6f   :  { %8462 = vmatmul.mubr.msk.f32.vlgmr.msra.gmra.mrb[70].mxu0 %vm535_vm6, %v6219_v55  ;;  %8464 = vmatprep.subr.mxu1 %v8951_v46 }
0x2e70   :  { %8457 = vmatmul.mubr.msk.f32.vlgmr.msra.gmra.mrb[64].mxu1 %vm535_vm6, %v6137_v62  ;;  %8471 = vmatprep.mubr.msk.f32.mxu0 %vm8952_vm5, %v8951_v46 }
0x2e71   :  { %8466 = vmatprep.mubr.msk.f32.mxu1 %vm8952_vm5, %v8951_v46 }
0x2f3e   :  { %v10002_v14 = vpop.f32.mrb[68].mxu0 }
0x2f3f   :  { %v10004_v5 = vpop.f32.mrb[62].mxu1  ;;  %v8453_v18 = vpop.f32.mrb[69].mxu0 }
0x2f40   :  { %v8448_v19 = vpop.f32.mrb[63].mxu1 }
0x2f42   :  { %v6292_v10 = vpop.f32.mrb[70].mxu0 }
0x2f43   :  { %v6210_v20 = vpop.f32.mrb[64].mxu1  ;;  %v8463_v21 = vpop.f32.mrb[71].mxu0  ;;  %v6299_v43 = vsel %vm2506_vm10, %v6292_v10, -inf }
0x2f44   :  { %6300 = vmax.xlane.f32.xlu0 %v6299_v43  ;;  %v8458_v23 = vpop.f32.mrb[65].mxu1  ;;  %v6296_v56 = vsel %vm2506_vm10, %v6210_v20, -inf }
0x2f45   :  { %6297 = vmax.xlane.f32.xlu1 %v6296_v56 }
0x2f56   :  { %6318 = vrot.lane.b32.xlu1 %v9946_v34, %s8955_s20 }
0x2f5a   :  { %6394 = vrot.lane.b32.xlu0 %v9944_v30, %s8955_s20  ;;  %6550 = vrot.lane.b32.xlu1 %v9944_v30, %s8959_s24  ;;  %s8970_s20 = smov 126  }
0x2f5e   :  { %6472 = vrot.lane.b32.xlu1 %v9946_v34, %s8959_s24 }
0x2f62   :  { %6470 = vrot.lane.b32.xlu1 %v9977_v7, %s8959_s24 }
0x2fd1   :  { %v6301_v24 = vpop.xlane.xlu0 %6300 }
0x2fd2   :  { %v6303_v26 = vsub.f32 %v6292_v10, %v6301_v24  ;;  %v6298_v53 = vpop.xlane.xlu1 %6297 }
0x2fd3   :  { %v6302_v29 = vsub.f32 %v6210_v20, %v6298_v53 }
0x2fd4   :  { %v6306_v40 = vmul.f32 1.442695, %v6303_v26 }
0x2fd5   :  { %v6304_v32 = vmul.f32 1.442695, %v6302_v29  ;;  %v6395_v1 = vpop.permute.xlu0 %6394 }
0x2fd6   :  { %8897 = vpow2.f32 %v6306_v40  ;;  %8470 = vmatpush3.msra.mxu0 %v6395_v1  ;;  %v6319_v35 = vpop.permute.xlu1 %6318 }
0x2fd7   :  { %8465 = vmatpush3.msra.mxu1 %v6319_v35  ;;  %8479 = vmatprep.subr.mxu0 %v8951_v46  ;;  %8899 = vpow2.f32 %v6304_v32 }
0x2fd8   :  { %8474 = vmatprep.subr.mxu1 %v8951_v46 }
0x2fda   :  { %v6551_v49 = vpop.permute.xlu1 %6550 }
0x2fde   :  { %v6473_v51 = vpop.permute.xlu1 %6472 }
0x2fe0   :  { %v8898_v36 = vpop.eup %8897 }
0x2fe1   :  { %v6311_v37 = vsel %vm2506_vm10, %v8898_v36, 0.0  ;;  %v8900_v38 = vpop.eup %8899 }
0x2fe2   :  { %6312 = vadd.xlane.f32.xlu0 %v6311_v37  ;;  %v6308_v39 = vsel %vm2506_vm10, %v8900_v38, 0.0  ;;  %v6471_v57 = vpop.permute.xlu1 %6470 }
0x2fe6   :  { %6309 = vadd.xlane.f32.xlu0 %v6308_v39 }
0x2ffc   :  { %6548 = vrot.lane.b32.xlu0 %v9982_v58, %s8959_s24 }
0x306f   :  { %v6313_v44 = vpop.xlane.xlu0 %6312 }
0x3070   :  { %8901 = vrcp.f32 %v6313_v44 }
0x3073   :  { %v6310_v61 = vpop.xlane.xlu0 %6309 }
0x3074   :  { %8903 = vrcp.f32 %v6310_v61 }
0x3077   :  { %v6549_v12 = vpop.permute.xlu0 %6548 }
0x307a   :  { %v8902_v45 = vpop.eup %8901 }
0x307b   :  { %v6317_v50 = vmul.f32 %v8902_v45, %v8898_v36 }
0x307d   :  { %8472 = vmatmul.mubr.msk.f32.vlgmr.msra.gmra.mrb[72].mxu0 %vm535_vm6, %v6317_v50 }
0x307e   :  { %v8904_v42 = vpop.eup %8903  ;;  %8480 = vmatpush3.xpose.msk.msra.mxu0 %vm535_vm6, %v6551_v49  ;;  %8481 = vmatprep.mubr.msk.f32.mxu0 %vm8952_vm5, %v8951_v46 }
0x307f   :  { %v6315_v52 = vmul.f32 %v8904_v42, %v8900_v38  ;;  %8489 = vmatprep.subr.mxu0 %v8951_v46 }
0x3081   :  { %8467 = vmatmul.mubr.msk.f32.vlgmr.msra.gmra.mrb[66].mxu1 %vm535_vm6, %v6315_v52  ;;  %8482 = vmatmul.mubr.msk.f32.vlgmr.msra.gmra.mrb[74].mxu0 %vm535_vm6, %v6549_v12 }
0x3082   :  { %8475 = vmatpush3.xpose.msk.msra.mxu1 %vm535_vm6, %v6473_v51  ;;  %8476 = vmatprep.mubr.msk.f32.mxu1 %vm8952_vm5, %v8951_v46 }
0x3083   :  { %8484 = vmatprep.subr.mxu1 %v8951_v46  ;;  %8491 = vmatprep.mubr.msk.f32.mxu0 %vm8952_vm5, %v8951_v46 }
0x3085   :  { %8477 = vmatmul.mubr.msk.f32.vlgmr.msra.gmra.mrb[68].mxu1 %vm535_vm6, %v6471_v57 }
0x3086   :  { %8486 = vmatprep.mubr.msk.f32.mxu1 %vm8952_vm5, %v8951_v46 }
0x3150   :  { %v10040_v59 = vpop.f32.mrb[72].mxu0 }
0x3151   :  { %v8473_v54 = vpop.f32.mrb[73].mxu0 }
0x3154   :  { %v10042_v6 = vpop.f32.mrb[66].mxu1  ;;  %v6622_v60 = vpop.f32.mrb[74].mxu0 }
0x3155   :  { %v8468_v3 = vpop.f32.mrb[67].mxu1  ;;  %v8483_v2 = vpop.f32.mrb[75].mxu0  ;;  %v6629_v8 = vsel %vm2506_vm10, %v6622_v60, -inf }
0x3156   :  { %6630 = vmax.xlane.f32.xlu0 %v6629_v8 }
0x3158   :  { %v6544_v9 = vpop.f32.mrb[68].mxu1 }
0x3159   :  { %v8478_v11 = vpop.f32.mrb[69].mxu1  ;;  %v6626_v28 = vsel %vm2506_vm10, %v6544_v9, -inf }
0x315a   :  { %6627 = vmax.xlane.f32.xlu1 %v6626_v28 }
0x316b   :  { %6648 = vrot.lane.b32.xlu1 %v9946_v34, %s8958_s23 }
0x316c   :  { %6724 = vrot.lane.b32.xlu0 %v9944_v30, %s8958_s23 }
0x316f   :  { %6880 = vrot.lane.b32.xlu1 %v9944_v30, %s8962_s27 }
0x3173   :  { %6802 = vrot.lane.b32.xlu1 %v9946_v34, %s8962_s27 }
0x3177   :  { %6800 = vrot.lane.b32.xlu1 %v9977_v7, %s8962_s27 }
0x31e3   :  { %v6631_v48 = vpop.xlane.xlu0 %6630 }
0x31e4   :  { %v6633_v4 = vsub.f32 %v6622_v60, %v6631_v48 }
0x31e6   :  { %v6636_v55 = vmul.f32 1.442695, %v6633_v4 }
0x31e7   :  { %v6725_v62 = vpop.permute.xlu0 %6724  ;;  %v6628_v18 = vpop.xlane.xlu1 %6627 }
0x31e8   :  { %8905 = vpow2.f32 %v6636_v55  ;;  %v6632_v19 = vsub.f32 %v6544_v9, %v6628_v18  ;;  %8490 = vmatpush3.msra.mxu0 %v6725_v62  ;;  %v95_v62 = vld [vmem:[%s10226_s11 + $0xc8] sm:$0xff] }
0x31e9   :  { %8499 = vmatprep.subr.mxu0 %v8951_v46 }
0x31ea   :  { %v6634_v10 = vmul.f32 1.442695, %v6632_v19  ;;  %v96_v19 = vld [vmem:[%s10226_s11 + $0xd0] sm:$0xff] }
0x31eb   :  { %v6649_v20 = vpop.permute.xlu1 %6648 }
0x31ec   :  { %8907 = vpow2.f32 %v6634_v10  ;;  %8485 = vmatpush3.msra.mxu1 %v6649_v20  ;;  %v97_v10 = vld [vmem:[%s10226_s11 + $0xd8] sm:$0xff] }
0x31ed   :  { %8494 = vmatprep.subr.mxu1 %v8951_v46  ;;  %v8661_v20 = vpack.c.bf16 %v97_v10, %v96_v19  ;;  %v7256_v19 = vrot.slane %v9885_v33, %v9375_v47 }
0x31ef   :  { %v6881_v26 = vpop.permute.xlu1 %6880 }
0x31f2   :  { %v8906_v21 = vpop.eup %8905 }
0x31f3   :  { %v6641_v43 = vsel %vm2506_vm10, %v8906_v21, 0.0  ;;  %v6803_v32 = vpop.permute.xlu1 %6802 }
0x31f4   :  { %6642 = vadd.xlane.f32.xlu0 %v6641_v43 }
0x31f6   :  { %v8908_v7 = vpop.eup %8907 }
0x31f7   :  { %v6638_v23 = vsel %vm2506_vm10, %v8908_v7, 0.0  ;;  %v6801_v35 = vpop.permute.xlu1 %6800 }
0x31f8   :  { %6639 = vadd.xlane.f32.xlu0 %v6638_v23 }
0x320e   :  { %6878 = vrot.lane.b32.xlu0 %v9982_v58, %s8962_s27 }
0x3281   :  { %v6643_v56 = vpop.xlane.xlu0 %6642 }
0x3282   :  { %8909 = vrcp.f32 %v6643_v56 }
0x3285   :  { %v6640_v24 = vpop.xlane.xlu0 %6639 }
0x3286   :  { %8911 = vrcp.f32 %v6640_v24 }
0x3289   :  { %v6879_v58 = vpop.permute.xlu0 %6878 }
0x328c   :  { %v8910_v53 = vpop.eup %8909 }
0x328d   :  { %v6647_v29 = vmul.f32 %v8910_v53, %v8906_v21 }
0x328f   :  { %8492 = vmatmul.mubr.msk.f32.vlgmr.msra.gmra.mrb[76].mxu0 %vm535_vm6, %v6647_v29 }
0x3290   :  { %v8912_v40 = vpop.eup %8911  ;;  %8500 = vmatpush3.xpose.msk.msra.mxu0 %vm535_vm6, %v6881_v26  ;;  %8501 = vmatprep.mubr.msk.f32.mxu0 %vm8952_vm5, %v8951_v46 }
0x3291   :  { %v6645_v1 = vmul.f32 %v8912_v40, %v8908_v7  ;;  %8509 = vmatprep.subr.mxu0 %v8951_v46 }
0x3293   :  { %8487 = vmatmul.mubr.msk.f32.vlgmr.msra.gmra.mrb[70].mxu1 %vm535_vm6, %v6645_v1  ;;  %8502 = vmatmul.mubr.msk.f32.vlgmr.msra.gmra.mrb[78].mxu0 %vm535_vm6, %v6879_v58 }
0x3294   :  { %8495 = vmatpush3.xpose.msk.msra.mxu1 %vm535_vm6, %v6803_v32  ;;  %8496 = vmatprep.mubr.msk.f32.mxu1 %vm8952_vm5, %v8951_v46 }
0x3295   :  { %8504 = vmatprep.subr.mxu1 %v8951_v46  ;;  %8511 = vmatprep.mubr.msk.f32.mxu0 %vm8952_vm5, %v8951_v46 }
0x3297   :  { %8497 = vmatmul.mubr.msk.f32.vlgmr.msra.gmra.mrb[72].mxu1 %vm535_vm6, %v6801_v35 }
0x3298   :  { %8506 = vmatprep.mubr.msk.f32.mxu1 %vm8952_vm5, %v8951_v46 }
0x3362   :  { %v6796_v36 = vpop.f32.mrb[76].mxu0 }
0x3363   :  { %v8493_v37 = vpop.f32.mrb[77].mxu0 }
0x3366   :  { %v6720_v38 = vpop.f32.mrb[70].mxu1  ;;  %v6952_v39 = vpop.f32.mrb[78].mxu0 }
0x3367   :  { %v8488_v44 = vpop.f32.mrb[71].mxu1  ;;  %v8503_v61 = vpop.f32.mrb[79].mxu0  ;;  %v6959_v49 = vsel %vm2506_vm10, %v6952_v39, -inf }
0x3368   :  { %6960 = vmax.xlane.f32.xlu0 %v6959_v49 }
0x336a   :  { %v6874_v45 = vpop.f32.mrb[72].mxu1 }
0x336b   :  { %v8498_v50 = vpop.f32.mrb[73].mxu1  ;;  %v6956_v42 = vsel %vm2506_vm10, %v6874_v45, -inf }
0x336c   :  { %6957 = vmax.xlane.f32.xlu1 %v6956_v42  ;;  %v7348_v50 = vld [vmem:[%s10229_s13 + $0x8] sm:$0xff]  ;;  %v10145_v42 = vld [vmem:[%s10229_s13 + $0x18] sm:$0xff] }
0x337d   :  { %6978 = vrot.lane.b32.xlu1 %v9946_v34, %s8961_s26 }
0x3381   :  { %7134 = vrot.lane.b32.xlu1 %v10040_v59, %s8964_s29 }
0x3385   :  { %7142 = vrot.lane.b32.xlu1 %v6796_v36, %s8965_s5 }
0x33f5   :  { %v6961_v51 = vpop.xlane.xlu0 %6960 }
0x33f6   :  { %v6963_v52 = vsub.f32 %v6952_v39, %v6961_v51 }
0x33f8   :  { %v6966_v12 = vmul.f32 1.442695, %v6963_v52 }
0x33f9   :  { %v6958_v57 = vpop.xlane.xlu1 %6957 }
0x33fa   :  { %8913 = vpow2.f32 %v6966_v12  ;;  %v6962_v54 = vsub.f32 %v6874_v45, %v6958_v57  ;;  %v7347_v45 = vld [vmem:[%s10229_s13] sm:$0xff] }
0x33fc   :  { %v6964_v60 = vmul.f32 1.442695, %v6962_v54 }
0x33fd   :  { %v6979_v3 = vpop.permute.xlu1 %6978 }
0x33fe   :  { %8915 = vpow2.f32 %v6964_v60  ;;  %8505 = vmatpush3.msra.mxu1 %v6979_v3  ;;  %v98_v3 = vld [vmem:[%s10226_s11 + $0xe0] sm:$0xff] }
0x33ff   :  { %8657 = vmatprep.subr.bf16.mxu1 %v8967_v16 }
0x3401   :  { %v7135_v56 = vpop.permute.xlu1 %7134 }
0x3402   :  { %v7155_v53 = vsel %vm535_vm6, %v10002_v14, %v7135_v56  ;;  %v7163_v14 = vrot.slane %v9885_v33, %v9362_v25  ;;  %v8731_v25 = vpack.i.bf16 %v7348_v50, %v7347_v45 }
0x3404   :  { %v8914_v2 = vpop.eup %8913 }
0x3405   :  { %v6971_v34 = vsel %vm2506_vm10, %v8914_v2, 0.0  ;;  %v7143_v26 = vpop.permute.xlu1 %7142 }
0x3406   :  { %6972 = vadd.xlane.f32.xlu0 %v6971_v34  ;;  %v7157_v29 = vsel %vm1877_vm8, %v7155_v53, %v7143_v26 }
0x3408   :  { %v8916_v8 = vpop.eup %8915 }
0x3409   :  { %v6968_v59 = vsel %vm2506_vm10, %v8916_v8, 0.0 }
0x340a   :  { %6969 = vadd.xlane.f32.xlu0 %v6968_v59  ;;  %v100_v59 = vld [vmem:[%s10226_s11 + $0xf0] sm:$0xff] }
0x3420   :  { %7054 = vrot.lane.b32.xlu0 %v9944_v30, %s8961_s26 }
0x3424   :  { %7132 = vrot.lane.b32.xlu0 %v10042_v6, %s8964_s29  ;;  %v94_v6 = vld [vmem:[%s10226_s11 + $0xc0] sm:$0xff] }
0x3425   :  { %v8658_v18 = vpack.c.bf16 %v95_v62, %v94_v6 }
0x3428   :  { %7140 = vrot.lane.b32.xlu0 %v6720_v38, %s8965_s5 }
0x3493   :  { %v6973_v9 = vpop.xlane.xlu0 %6972 }
0x3494   :  { %8917 = vrcp.f32 %v6973_v9  ;;  %v101_v9 = vld [vmem:[%s10226_s11 + $0xf8] sm:$0xff] }
0x3497   :  { %v6970_v11 = vpop.xlane.xlu0 %6969 }
0x3498   :  { %8919 = vrcp.f32 %v6970_v11 }
0x349b   :  { %v7055_v28 = vpop.permute.xlu0 %7054 }
0x349c   :  { %8510 = vmatpush3.msra.mxu0 %v7055_v28 }
0x349d   :  { %8663 = vmatprep.subr.bf16.mxu0 %v8967_v16 }
0x349e   :  { %v8918_v48 = vpop.eup %8917 }
0x349f   :  { %v6977_v4 = vmul.f32 %v8918_v48, %v8914_v2  ;;  %v7133_v24 = vpop.permute.xlu0 %7132  ;;  %v99_v2 = vld [vmem:[%s10226_s11 + $0xe8] sm:$0xff]  ;;  %v8667_v48 = vpack.c.bf16 %v101_v9, %v100_v59 }
0x34a0   :  { %v7154_v58 = vsel %vm535_vm6, %v10004_v5, %v7133_v24  ;;  %v8664_v34 = vpack.c.bf16 %v99_v2, %v98_v3 }
0x34a1   :  { %8512 = vmatmul.mubr.msk.f32.vlgmr.msra.gmra.mrb[80].mxu0 %vm535_vm6, %v6977_v4 }
0x34a2   :  { %v8920_v55 = vpop.eup %8919  ;;  %8533 = vmatprep.mubr.msk.f32.mxu0 %vm8952_vm5, %v8951_v46  ;;  %8665 = vmatpush3.bf16.msra.mxu0 %v8664_v34 }
0x34a3   :  { %v6975_v30 = vmul.f32 %v8920_v55, %v8916_v8  ;;  %v7141_v32 = vpop.permute.xlu0 %7140  ;;  %8666 = vmatprep.subr.bf16.mxu0 %v8967_v16  ;;  %v10166_v55 = vld [vmem:[%s10230_s14] ss:$0 sm:$0xff] }
0x34a4   :  { %v7156_v35 = vsel %vm1877_vm8, %v7154_v58, %v7141_v32 }
0x34a5   :  { %8507 = vmatmul.mubr.msk.f32.vlgmr.msra.gmra.mrb[74].mxu1 %vm535_vm6, %v6975_v30 }
0x34a6   :  { %8522 = vmatprep.mubr.msk.f32.mxu1 %vm8952_vm5, %v8951_v46  ;;  %8659 = vmatpush3.bf16.msra.mxu1 %v8658_v18  ;;  %v5574_v18 = vrot.slane %v9885_v33, %v9320_v31 }
0x34a7   :  { %8660 = vmatprep.subr.bf16.mxu1 %v8967_v16  ;;  %8668 = vmatpush3.bf16.msra.mxu0 %v8667_v48 }
0x34aa   :  { %8662 = vmatpush3.bf16.msra.mxu1 %v8661_v20 }
0x34ab   :  { %8669 = vmatprep.subr.bf16.mxu1 %v8967_v16 }
0x3574   :  { %v7126_v21 = vpop.f32.mrb[80].mxu0 }
0x3575   :  { %7150 = vrot.lane.b32.xlu1 %v7126_v21, %s8966_s30  ;;  %v8513_v43 = vpop.f32.mrb[81].mxu0  ;;  %v5575_v21 = vmul.f32 %v5574_v18, %v9927_v17 }
0x3578   :  { %v7050_v7 = vpop.f32.mrb[74].mxu1 }
0x3579   :  { %7148 = vrot.lane.b32.xlu1 %v7050_v7, %s8966_s30  ;;  %v8508_v23 = vpop.f32.mrb[75].mxu1  ;;  %v5579_v7 = vrot.slane %v9885_v33, %v9354_v22  ;;  %v8670_v22 = vpack.c.bf16 %v7348_v50, %v7347_v45 }
0x357a   :  { %v7261_v23 = vrot.slane %v9885_v33, %v9665_v13 }
0x357b   :  { %v5580_v53 = vadd.f32 %v5579_v7, %v5575_v21 }
0x35e7   :  { %v7151_v40 = vpop.permute.xlu1 %7150 }
0x35e8   :  { %v7159_v1 = vsel %vm1880_vm7, %v7157_v29, %v7151_v40 }
0x35e9   :  { %v7166_v36 = vrot.slane %v7159_v1, 7 }
0x35eb   :  { %v7149_v37 = vpop.permute.xlu1 %7148 }
0x35ec   :  { %v7158_v38 = vsel %vm1880_vm7, %v7156_v35, %v7149_v37 }
0x35ed   :  { %v7167_v39 = vsel %vm3716_vm11, %v7166_v36, %v7158_v38 }
0x35ee   :  { %8523 = vmatmul.mubr.msk.f32.vlgmr.msra.gmra.mrb[76].mxu1 %vm407_vm2, %v7167_v39 }
0x35ef   :  { %8544 = vmatprep.mubr.msk.f32.mxu1 %vm8952_vm5, %v8951_v46  ;;  %v10140_v46 = vld [vmem:[%s10229_s13 + $0x10] sm:$0xff]  ;;  %8671 = vmatpush3.bf16.msra.mxu1 %v8670_v22 }
0x35f0   :  { %v8741_v51 = vpack.i.bf16 %v10145_v42, %v10140_v46  ;;  %8672 = vmatprep.subr.bf16.mxu1 %v8967_v16  ;;  %v8673_v13 = vpack.c.bf16 %v10145_v42, %v10140_v46 }
0x35f3   :  { %8674 = vmatpush3.bf16.msra.mxu1 %v8673_v13 }
0x36c1   :  { %v7236_v44 = vpop.f32.mrb[76].mxu1 }
0x36c2   :  { %v7237_v61 = vadd.f32 %v7236_v44, %v7163_v14  ;;  %v8524_v49 = vpop.f32.mrb[77].mxu1 }
0x36c4   :  { %v7240_v5 = vsel %vm2105_vm9, %v7237_v61, 0.0 }
0x36c5   :  { %7241 = vadd.xlane.f32.xlu0 %v7240_v5 }
0x36db   :  { %8732 = vrot.lane.b32.xlu0 %v8731_v25, %s8969_s12 }
0x36df   :  { %8742 = vrot.lane.b32.xlu0 %v8741_v51, %s8969_s12 }
0x36e3   :  { %7455 = vrot.lane.b32.xlu0 %v10166_v55, %s8969_s12 }
0x3752   :  { %v7242_v52 = vpop.xlane.xlu0 %7241 }
0x3753   :  { %v7243_v12 = vmul.f32 0.03125, %v7242_v52 }
0x3755   :  { %v7244_v57 = vsub.f32 %v7237_v61, %v7243_v12 }
0x3756   :  { %v8733_v8 = vpop.permute.xlu0 %8732 }
0x3757   :  { %v7245_v54 = vmul.f32 %v7244_v57, %v7244_v57  ;;  %v8735_v11 = vunpack.i.h.bf16 %v8733_v8  ;;  %v8734_v28 = vunpack.i.l.bf16 %v8733_v8 }
0x3759   :  { %v7246_v60 = vsel %vm2105_vm9, %v7245_v54, 0.0  ;;  %v8675_v4 = vpack.c.bf16 %v8735_v11, %v8734_v28 }
0x375a   :  { %7247 = vadd.xlane.f32.xlu1 %v7246_v60  ;;  %v8743_v20 = vpop.permute.xlu0 %8742 }
0x375b   :  { %8676 = vmatprep.subr.bf16.mxu0 %v8675_v4  ;;  %v8745_v24 = vunpack.i.h.bf16 %v8743_v20  ;;  %v8744_v26 = vunpack.i.l.bf16 %v8743_v20 }
0x375d   :  { %v8679_v31 = vpack.c.bf16 %v8745_v24, %v8744_v26 }
0x375e   :  { %v7456_v14 = vpop.permute.xlu0 %7455 }
0x376b   :  { %8737 = vrot.lane.b32.xlu1 %v8731_v25, %s8970_s20 }
0x376f   :  { %8747 = vrot.lane.b32.xlu1 %v8741_v51, %s8970_s20 }
0x3773   :  { %7566 = vrot.lane.b32.xlu1 %v10166_v55, %s8970_s20 }
0x37e7   :  { %v7248_v30 = vpop.xlane.xlu1 %7247 }
0x37e8   :  { %v7249_v6 = vmul.f32 0.03125, %v7248_v30 }
0x37ea   :  { %v7250_v62 = vadd.f32 1e-05, %v7249_v6 }
0x37eb   :  { %v8738_v47 = vpop.permute.xlu1 %8737 }
0x37ec   :  { %8921 = vrsqrt.f32 %v7250_v62  ;;  %v8740_v17 = vunpack.i.h.bf16 %v8738_v47  ;;  %v8739_v32 = vunpack.i.l.bf16 %v8738_v47 }
0x37ee   :  { %v8683_v1 = vpack.c.bf16 %v8740_v17, %v8739_v32 }
0x37f0   :  { %8684 = vmatprep.subr.bf16.mxu1 %v8683_v1 }
0x37f6   :  { %v8922_v10 = vpop.eup %8921 }
0x37f7   :  { %v7252_v43 = vmul.f32 %v8922_v10, %v7244_v57 }
0x37f9   :  { %v7257_v56 = vmul.f32 %v7256_v19, %v7252_v43 }
0x37fb   :  { %v7262_v29 = vadd.f32 %v7261_v23, %v7257_v56 }
0x37fd   :  { %v7263_v40 = vadd.f32 %v7262_v29, %v5580_v53 }
0x37ff   :  { %8534 = vmatmul.mubr.msk.f32.vlgmr.msra.gmra.mrb[82].mxu0 %vm407_vm2, %v7263_v40 }
0x3800   :  { %8678 = vmatpush3.bf16.msra.mxu0 %v8675_v4  ;;  %8555 = vmatprep.mubr.msk.f32.mxu0 %vm407_vm2, %v9902_v27  ;;  %v7683_v27 = vld [vmem:[%s10231_s8] ss:$0 sm:$0xff] }
0x3801   :  { %8680 = vmatprep.subr.bf16.mxu0 %v8679_v31  ;;  %v389_v58 = vadd.f32 %v7683_v27, %v9153_v0  ;;  %v394_v38 = vadd.f32 %v9151_v63, %v7683_v27 }
0x3803   :  { %v399_v35 = vmul.f32 0.70710677, %v389_v58  ;;  %v400_v44 = vmul.f32 0.70710677, %v394_v38  ;;  %v397_v52 = vmul.f32 0.5, %v389_v58  ;;  %v398_v59 = vmul.f32 0.5, %v394_v38 }
0x3804   :  { %8682 = vmatpush3.bf16.msra.mxu0 %v8679_v31 }
0x3805   :  { %8923 = verf.f32 %v399_v35 }
0x3807   :  { %8556 = vmatmul.mubr.msk.f32.vlgmr.msra.gmra.mrb[84].mxu0 %vm407_vm2, %v9900_v41  ;;  %v7267_v41 = vrot.slane %v9885_v33, %v9670_v15  ;;  %v8748_v15 = vpop.permute.xlu1 %8747 }
0x3808   :  { %v8750_v63 = vunpack.i.h.bf16 %v8748_v15  ;;  %v8749_v51 = vunpack.i.l.bf16 %v8748_v15 }
0x380a   :  { %v8687_v60 = vpack.c.bf16 %v8750_v63, %v8749_v51 }
0x380b   :  { %v7567_v10 = vpop.permute.xlu1 %7566 }
0x380f   :  { %v8924_v33 = vpop.eup %8923 }
0x3810   :  { %v403_v12 = vadd.f32 1.0, %v8924_v33 }
0x3812   :  { %v405_v2 = vmul.f32 %v403_v12, %v397_v52 }
0x38d2   :  { %v7337_v16 = vpop.f32.mrb[82].mxu0 }
0x38d3   :  { %v7338_v36 = vadd.f32 %v7337_v16, %v7267_v41  ;;  %v8535_v37 = vpop.f32.mrb[83].mxu0 }
0x38d5   :  { %v7342_v39 = vmul.f32 0.70710677, %v7338_v36  ;;  %v7341_v25 = vmul.f32 0.5, %v7338_v36 }
0x38d7   :  { %8925 = verf.f32 %v7342_v39 }
0x38d8   :  { %8927 = verf.f32 %v400_v44 }
0x38da   :  { %v8557_v61 = vpop.f32.mrb[84].mxu0 }
0x38db   :  { %v7536_v49 = vadd.f32 %v8557_v61, %v7456_v14  ;;  %v7530_v5 = vpop.f32.mrb[85].mxu0 }
0x38dc   :  { %v7531_v45 = vadd.f32 %v7530_v5, %v7456_v14 }
0x38dd   :  { %v7811_v0 = vmul.f32 -1.442695, %v7536_v49 }
0x38de   :  { %v7810_v50 = vmul.f32 -1.442695, %v7531_v45 }
0x38df   :  { %8929 = vpow2.f32 %v7811_v0 }
0x38e0   :  { %8931 = vpow2.f32 %v7810_v50 }
0x38e1   :  { %v8926_v46 = vpop.eup %8925 }
0x38e2   :  { %v7344_v42 = vadd.f32 1.0, %v8926_v46  ;;  %v8928_v3 = vpop.eup %8927 }
0x38e3   :  { %v404_v9 = vadd.f32 1.0, %v8928_v3 }
0x38e4   :  { %v7345_v57 = vmul.f32 %v7344_v42, %v7341_v25 }
0x38e5   :  { %v406_v48 = vmul.f32 %v404_v9, %v398_v59 }
0x38e6   :  { %v7346_v54 = vadd.f32 %v7345_v57, %v7263_v40 }
0x38e8   :  { %8545 = vmatmul.mubr.msk.f32.vlgmr.msra.gmra.mrb[78].mxu1 %vm407_vm2, %v7346_v54 }
0x38e9   :  { %v8930_v34 = vpop.eup %8929  ;;  %8686 = vmatpush3.bf16.msra.mxu1 %v8683_v1  ;;  %8566 = vmatprep.mubr.msk.f32.mxu1 %vm407_vm2, %v405_v2 }
0x38ea   :  { %v8932_v8 = vpop.eup %8931  ;;  %v7546_v11 = vadd.f32 1.0, %v8930_v34  ;;  %8688 = vmatprep.subr.bf16.mxu1 %v8687_v60 }
0x38eb   :  { %v7545_v28 = vadd.f32 1.0, %v8932_v8 }
0x38ec   :  { %8933 = vrcp.f32 %v7546_v11 }
0x38ed   :  { %8935 = vrcp.f32 %v7545_v28  ;;  %8690 = vmatpush3.bf16.msra.mxu1 %v8687_v60 }
0x38f0   :  { %8567 = vmatmul.mubr.msk.f32.vlgmr.msra.gmra.mrb[80].mxu1 %vm407_vm2, %v406_v48 }
0x38f6   :  { %v8934_v4 = vpop.eup %8933 }
0x38f7   :  { %v8936_v30 = vpop.eup %8935  ;;  %7553 = vst.msk [vmem:[%s10232_s16 + $0x8] sm:$0xff] %vm7551_vm12, %v8934_v4 }
0x38f8   :  { %7552 = vst.msk [vmem:[%s10232_s16] sm:$0xff] %vm7551_vm12, %v8936_v30 }
0x39bb   :  { %v7427_v6 = vpop.f32.mrb[78].mxu1 }
0x39bc   :  { %v7428_v62 = vadd.f32 %v10166_v55, %v7427_v6  ;;  %v8546_v18 = vpop.f32.mrb[79].mxu1 }
0x39be   :  { %v7807_v19 = vmul.f32 -1.442695, %v7428_v62 }
0x39c0   :  { %8937 = vpow2.f32 %v7807_v19 }
0x39c3   :  { %v8568_v20 = vpop.f32.mrb[80].mxu1 }
0x39c4   :  { %v7647_v21 = vadd.f32 %v8568_v20, %v7567_v10  ;;  %v7641_v43 = vpop.f32.mrb[81].mxu1 }
0x39c5   :  { %v7642_v7 = vadd.f32 %v7641_v43, %v7567_v10 }
0x39c6   :  { %v7815_v23 = vmul.f32 -1.442695, %v7647_v21 }
0x39c7   :  { %v7814_v56 = vmul.f32 -1.442695, %v7642_v7 }
0x39c8   :  { %8939 = vpow2.f32 %v7815_v23 }
0x39c9   :  { %8941 = vpow2.f32 %v7814_v56 }
0x39ca   :  { %v8938_v24 = vpop.eup %8937 }
0x39cb   :  { %v7434_v26 = vadd.f32 1.0, %v8938_v24 }
0x39cd   :  { %8943 = vrcp.f32 %v7434_v26 }
0x39d2   :  { %v8940_v53 = vpop.eup %8939 }
0x39d3   :  { %v8942_v29 = vpop.eup %8941  ;;  %v7657_v31 = vadd.f32 1.0, %v8940_v53 }
0x39d4   :  { %v7656_v40 = vadd.f32 1.0, %v8942_v29 }
0x39d5   :  { %8945 = vrcp.f32 %v7657_v31 }
0x39d6   :  { %8947 = vrcp.f32 %v7656_v40 }
0x39d7   :  { %v8944_v55 = vpop.eup %8943 }
0x39d8   :  { %7438 = vst.msk [vmem:[%s10233_s15] sm:$0x3] %vm7437_vm13, %v8944_v55 }
0x39df   :  { %v8946_v22 = vpop.eup %8945 }
0x39e0   :  { %v8948_v47 = vpop.eup %8947  ;;  %7663 = vst.msk [vmem:[%s10234_s17 + $0x8] sm:$0xff] %vm7551_vm12, %v8946_v22 }
0x39e1   :  { %7662 = vst.msk [vmem:[%s10234_s17] sm:$0xff] %vm7551_vm12, %v8948_v47 }

</bundles_post_ra>
